<compile_context>
chip_gen: v7x
topology: tpu7x:2x2x1
jax: 0.10.0
libtpu: 0.0.40
codegen_flags: <defaults>
</compile_context>

<pallas_src>
import jax
import jax.numpy as jnp
import numpy as np
from jax import lax
from jax.experimental import pallas as pl
from jax.experimental.pallas import tpu as pltpu

EPS = 1e-5


# ----------------------------------------------------------------------------
# Fused kernel:
#   conv1 (im2col matmul) + BN1 + PReLU1  ->  act1 (bf16 VMEM scratch)
#   conv2 (9 accumulating segment matmuls) + BN2 + PReLU2
#   AdaptiveAvgPool2d((1,1)) via pooling-matrix matmul.
# ----------------------------------------------------------------------------
def _fused_convs_kernel(p1_ref, w1_ref, ss1_ref, w2_ref, ss2_ref, pmat_ref,
                        alpha_ref, o_ref, act1_ref):
    n_seg = w2_ref.shape[0]      # 9 kernel positions of conv2
    m2 = pmat_ref.shape[1]       # B * H2 * W2 output rows of conv2
    n2 = w2_ref.shape[2]         # 128 output channels

    # ---- conv1 + folded BN1 + PReLU1 --------------------------------------
    y1 = jnp.dot(p1_ref[...], w1_ref[...], preferred_element_type=jnp.float32)
    y1 = y1 * ss1_ref[0:1, :] + ss1_ref[1:2, :]
    a1 = alpha_ref[0]
    y1 = jnp.where(y1 > 0.0, y1, a1 * y1)
    act1_ref[...] = y1.astype(act1_ref.dtype)

    # ---- conv2 as 9 contiguous-segment matmuls (rows pre-ordered so that
    # ---- segment s occupies act1 rows [s*m2, (s+1)*m2)) --------------------
    acc = jnp.zeros((m2, n2), jnp.float32)
    for s in range(n_seg):                       # static unrolled loop
        lhs = act1_ref[pl.ds(s * m2, m2), :]     # (m2, 1280) bf16, 8-aligned
        acc = acc + jnp.dot(lhs, w2_ref[s], preferred_element_type=jnp.float32)

    # ---- folded BN2 + PReLU2 + AdaptiveAvgPool2d((1,1)) --------------------
    y2 = acc * ss2_ref[0:1, :] + ss2_ref[1:2, :]
    a2 = alpha_ref[1]
    y2 = jnp.where(y2 > 0.0, y2, a2 * y2)
    o_ref[...] = jnp.dot(pmat_ref[...], y2,
                         preferred_element_type=jnp.float32).astype(o_ref.dtype)


def fused_convs(patches1, w1, ss1, w2, ss2, pmat, alphas):
    m1, k1 = patches1.shape
    _, n1 = w1.shape
    n_seg, _, n2 = w2.shape
    b, m2 = pmat.shape
    assert m1 == n_seg * m2

    cost = pl.CostEstimate(
        flops=2 * m1 * k1 * n1 + 2 * m2 * n_seg * n1 * n2 + 2 * b * m2 * n2,
        transcendentals=0,
        bytes_accessed=(patches1.size * patches1.dtype.itemsize
                        + w1.size * w1.dtype.itemsize
                        + w2.size * w2.dtype.itemsize
                        + ss1.size * 4 + ss2.size * 4 + pmat.size * 4
                        + alphas.size * 4 + b * n2 * 4),
    )

    return pl.pallas_call(
        _fused_convs_kernel,
        out_shape=jax.ShapeDtypeStruct((b, n2), jnp.float32),
        grid_spec=pltpu.PrefetchScalarGridSpec(
            num_scalar_prefetch=0,
            grid=(1,),
            in_specs=[
                pl.BlockSpec((m1, k1), lambda i: (0, 0)),
                pl.BlockSpec((k1, n1), lambda i: (0, 0)),
                pl.BlockSpec((2, n1), lambda i: (0, 0)),
                pl.BlockSpec((n_seg, n1, n2), lambda i: (0, 0, 0)),
                pl.BlockSpec((2, n2), lambda i: (0, 0)),
                pl.BlockSpec((b, m2), lambda i: (0, 0)),
                pl.BlockSpec(memory_space=pltpu.MemorySpace.SMEM),
            ],
            out_specs=pl.BlockSpec((b, n2), lambda i: (0, 0)),
            scratch_shapes=[pltpu.VMEM((m1, n1), jnp.bfloat16)],
        ),
        compiler_params=pltpu.CompilerParams(
            dimension_semantics=("arbitrary",)),
        cost_estimate=cost,
    )(patches1, w1, ss1, w2, ss2, pmat, alphas)


# ----------------------------------------------------------------------------
# One-time parameter preparation (outside the per-call hot path).
# ----------------------------------------------------------------------------
def _fold_bn_ss(conv_bias, gamma, beta, mean, var):
    scale = gamma / jnp.sqrt(var + EPS)
    shift = (conv_bias - mean) * scale + beta
    return jnp.stack([scale, shift], axis=0).astype(jnp.float32)   # (2, N)


def prepare_params(p):
    C = p["w1"].shape[1]
    # conv1 weight -> (C*9, 1280); row order (c, kh1, kw1) matches patches1 cols.
    w1 = jnp.transpose(p["w1"].reshape(1280, C * 9)).astype(jnp.bfloat16)
    # conv2 weight -> (9, 1280, 128); [kh*3+kw, c, n] = W2_torch[n, c, kh, kw].
    w2 = jnp.transpose(p["w2"], (2, 3, 1, 0)).reshape(9, 1280, 128)
    w2 = w2.astype(jnp.bfloat16)
    alphas = jnp.concatenate(
        [p["a1"].reshape(1), p["a2"].reshape(1)]).astype(jnp.float32)
    return {
        "w1": w1,
        "w2": w2,
        "ss1": _fold_bn_ss(p["b1"], p["g1"], p["be1"], p["m1"], p["v1"]),
        "ss2": _fold_bn_ss(p["b2"], p["g2"], p["be2"], p["m2"], p["v2"]),
        "alphas": alphas,
    }


# ----------------------------------------------------------------------------
# Forward pass (hot path). Only cheap layout glue on the tiny input x (~20 KB)
# happens in plain JAX; everything else is inside the single fused kernel.
# ----------------------------------------------------------------------------
def convs_forward(x, q):
    B, C, H, W = x.shape
    H1, W1 = H // 3, W // 3          # conv1 output spatial (stride = kernel = 3)
    H2o, W2o = H1 // 3, W1 // 3      # conv2 output spatial
    pool = H2o * W2o
    m2 = B * pool

    # patches1 rows ordered (kh2, kw2, b, h2, w2) so conv2 kernel-position
    # segments are contiguous m2-row blocks; columns ordered (c, kh1, kw1)
    # to match the OIHW conv1 weight reshape.
    p = x.reshape(B, C, H2o, 3, 3, W2o, 3, 3)        # (b,c,h2,kh2,kh1,w2,kw2,kw1)
    p = p.transpose(3, 6, 0, 2, 5, 1, 4, 7)          # (kh2,kw2,b,h2,w2,c,kh1,kw1)
    patches1 = p.reshape(9 * m2, C * 9).astype(jnp.bfloat16)

    # Pooling matrix (compile-time constant): out[b] = mean over its pool rows.
    pmat = jnp.asarray(np.kron(np.eye(B, dtype=np.float32),
                               np.full((1, pool), 1.0 / pool, np.float32)))

    return fused_convs(patches1, q["w1"], q["ss1"], q["w2"], q["ss2"],
                       pmat, q["alphas"])                         # (B, 128)


# ----------------------------------------------------------------------------
# Pure-JAX reference (NCHW, same eval-mode BN semantics) for verification.
# ----------------------------------------------------------------------------
def reference(x, p):
    def conv(y, w, b, stride):
        y = lax.conv_general_dilated(y, w, (stride, stride), "VALID",
                                     dimension_numbers=("NCHW", "OIHW", "NCHW"))
        return y + b[None, :, None, None]

    def bn(y, g, be, m, v):
        return ((y - m[None, :, None, None])
                / jnp.sqrt(v + EPS)[None, :, None, None]
                * g[None, :, None, None] + be[None, :, None, None])

    def prelu(y, a):
        return jnp.where(y > 0, y, a * y)

    y = prelu(bn(conv(x, p["w1"], p["b1"], 3),
                 p["g1"], p["be1"], p["m1"], p["v1"]), p["a1"])
    y = prelu(bn(conv(y, p["w2"], p["b2"], 3),
                 p["g2"], p["be2"], p["m2"], p["v2"]), p["a2"])
    return y.mean(axis=(2, 3))                                    # (B, 128)


if __name__ == "__main__":
    key = jax.random.PRNGKey(0)
    ks = jax.random.split(key, 16)

    B, emb_dim, H, W = 2, 8, 18, 18
    x = jax.random.normal(ks[0], (B, emb_dim, H, W), jnp.float32)

    params = {
        # conv1: (out=1280, in=emb_dim, 3, 3)
        "w1": 0.05 * jax.random.normal(ks[1], (1280, emb_dim, 3, 3), jnp.float32),
        "b1": 0.05 * jax.random.normal(ks[2], (1280,), jnp.float32),
        "g1": 1.0 + 0.1 * jax.random.normal(ks[3], (1280,), jnp.float32),
        "be1": 0.1 * jax.random.normal(ks[4], (1280,), jnp.float32),
        "m1": 0.1 * jax.random.normal(ks[5], (1280,), jnp.float32),
        "v1": 0.5 + jax.random.uniform(ks[6], (1280,), jnp.float32),
        "a1": jnp.full((1,), 0.25, jnp.float32),                  # PReLU default
        # conv2: (out=128, in=1280, 3, 3)
        "w2": 0.02 * jax.random.normal(ks[7], (128, 1280, 3, 3), jnp.float32),
        "b2": 0.05 * jax.random.normal(ks[8], (128,), jnp.float32),
        "g2": 1.0 + 0.1 * jax.random.normal(ks[9], (128,), jnp.float32),
        "be2": 0.1 * jax.random.normal(ks[10], (128,), jnp.float32),
        "m2": 0.1 * jax.random.normal(ks[11], (128,), jnp.float32),
        "v2": 0.5 + jax.random.uniform(ks[12], (128,), jnp.float32),
        "a2": jnp.full((1,), 0.25, jnp.float32),
    }

    # Parameter prep runs once, outside the per-call hot path.
    prepped = jax.tree_util.tree_map(jax.block_until_ready, prepare_params(params))

    fwd = jax.jit(convs_forward)
    out = jax.block_until_ready(fwd(x, prepped))
    ref = jax.block_until_ready(reference(x, params))

    assert out.shape == (B, 128), out.shape
    np.testing.assert_allclose(np.asarray(out), np.asarray(ref),
                               rtol=3e-2, atol=3e-2)
    print("KERNEL_OK")
</pallas_src>

<mosaic_0001>
module attributes {stable_mosaic.version = 11 : i64} {
  func.func @_fused_convs_kernel(%arg0: i32, %arg1: memref<72x72xbf16, #tpu.memory_space<vmem>>, %arg2: memref<72x1280xbf16, #tpu.memory_space<vmem>>, %arg3: memref<2x1280xf32, #tpu.memory_space<vmem>>, %arg4: memref<9x1280x128xbf16, #tpu.memory_space<vmem>>, %arg5: memref<2x128xf32, #tpu.memory_space<vmem>>, %arg6: memref<2x8xf32, #tpu.memory_space<vmem>>, %arg7: memref<2xf32, #tpu.memory_space<smem>>, %arg8: memref<2x128xf32, #tpu.memory_space<vmem>>, %arg9: memref<72x1280xbf16, #tpu.memory_space<vmem>>) attributes {dimension_semantics = [#tpu.dimension_semantics<arbitrary>], iteration_bounds = array<i64: 1>, scalar_prefetch = 0 : i64, scratch_operands = 1 : i64, tpu.core_type = #tpu.core_type<tc>, window_params = [{pipeline_mode = #tpu.pipeline_mode<synchronous>, transform_indices = @transform_0, window_bounds = array<i64: 72, 72>}, {pipeline_mode = #tpu.pipeline_mode<synchronous>, transform_indices = @transform_1, window_bounds = array<i64: 72, 1280>}, {pipeline_mode = #tpu.pipeline_mode<synchronous>, transform_indices = @transform_2, window_bounds = array<i64: 2, 1280>}, {pipeline_mode = #tpu.pipeline_mode<synchronous>, transform_indices = @transform_3, window_bounds = array<i64: 9, 1280, 128>}, {pipeline_mode = #tpu.pipeline_mode<synchronous>, transform_indices = @transform_4, window_bounds = array<i64: 2, 128>}, {pipeline_mode = #tpu.pipeline_mode<synchronous>, transform_indices = @transform_5, window_bounds = array<i64: 2, 8>}, {transform_indices = @transform_6, window_bounds = array<i64: 2>}, {pipeline_mode = #tpu.pipeline_mode<synchronous>, transform_indices = @transform_7, window_bounds = array<i64: 2, 128>}]} {
    %c0 = arith.constant 0 : index
    %c0_0 = arith.constant 0 : index
    %0 = vector.load %arg1[%c0, %c0_0] : memref<72x72xbf16, #tpu.memory_space<vmem>>, vector<72x72xbf16>
    %c0_1 = arith.constant 0 : index
    %c0_2 = arith.constant 0 : index
    %1 = vector.load %arg2[%c0_1, %c0_2] : memref<72x1280xbf16, #tpu.memory_space<vmem>>, vector<72x1280xbf16>
    %cst = arith.constant dense<0.000000e+00> : vector<72x1280xf32>
    %2 = tpu.matmul %0, %1, %cst {dimension_numbers = #tpu.dot_dimension_numbers<[1], [0], [0], [1], [0, 0, 1, 1], [], []>} : vector<72x72xbf16>, vector<72x1280xbf16>, vector<72x1280xf32> -> vector<72x1280xf32>
    %c0_3 = arith.constant 0 : index
    %c0_4 = arith.constant 0 : index
    %3 = vector.load %arg3[%c0_3, %c0_4] : memref<2x1280xf32, #tpu.memory_space<vmem>>, vector<1x1280xf32>
    %4 = vector.broadcast %3 : vector<1x1280xf32> to vector<72x1280xf32>
    %5 = arith.mulf %2, %4 : vector<72x1280xf32>
    %c1 = arith.constant 1 : index
    %c0_5 = arith.constant 0 : index
    %6 = vector.load %arg3[%c1, %c0_5] : memref<2x1280xf32, #tpu.memory_space<vmem>>, vector<1x1280xf32>
    %7 = vector.broadcast %6 : vector<1x1280xf32> to vector<72x1280xf32>
    %8 = arith.addf %5, %7 : vector<72x1280xf32>
    %c0_6 = arith.constant 0 : index
    %9 = memref.load %arg7[%c0_6] : memref<2xf32, #tpu.memory_space<smem>>
    %cst_7 = arith.constant 0.000000e+00 : f32
    %10 = vector.broadcast %cst_7 : f32 to vector<72x1280xf32>
    %11 = arith.cmpf ogt, %8, %10 : vector<72x1280xf32>
    %12 = vector.broadcast %9 : f32 to vector<72x1280xf32>
    %13 = arith.mulf %12, %8 : vector<72x1280xf32>
    %14 = arith.select %11, %8, %13 : vector<72x1280xi1>, vector<72x1280xf32>
    %15 = arith.truncf %14 : vector<72x1280xf32> to vector<72x1280xbf16>
    %c0_8 = arith.constant 0 : index
    %c0_9 = arith.constant 0 : index
    %16 = vector.load %arg9[%c0_8, %c0_9] : memref<72x1280xbf16, #tpu.memory_space<vmem>>, vector<72x1280xbf16>
    tpu.vector_store %arg9[%c0_8, %c0_9], %15 {strides = array<i32>} : memref<72x1280xbf16, #tpu.memory_space<vmem>>, vector<72x1280xbf16>,
    %cst_10 = arith.constant 0.000000e+00 : f32
    %17 = vector.broadcast %cst_10 : f32 to vector<8x128xf32>
    %c0_11 = arith.constant 0 : index
    %c0_12 = arith.constant 0 : index
    %18 = vector.load %arg9[%c0_11, %c0_12] : memref<72x1280xbf16, #tpu.memory_space<vmem>>, vector<8x1280xbf16>
    %c0_13 = arith.constant 0 : index
    %c0_14 = arith.constant 0 : index
    %c0_15 = arith.constant 0 : index
    %19 = vector.load %arg4[%c0_13, %c0_14, %c0_15] : memref<9x1280x128xbf16, #tpu.memory_space<vmem>>, vector<1x1280x128xbf16>
    %20 = vector.shape_cast %19 : vector<1x1280x128xbf16> to vector<1280x128xbf16>
    %cst_16 = arith.constant dense<0.000000e+00> : vector<8x128xf32>
    %21 = tpu.matmul %18, %20, %cst_16 {dimension_numbers = #tpu.dot_dimension_numbers<[1], [0], [0], [1], [0, 0, 1, 1], [], []>} : vector<8x1280xbf16>, vector<1280x128xbf16>, vector<8x128xf32> -> vector<8x128xf32>
    %22 = arith.addf %17, %21 : vector<8x128xf32>
    %c8 = arith.constant 8 : index
    %c0_17 = arith.constant 0 : index
    %23 = vector.load %arg9[%c8, %c0_17] : memref<72x1280xbf16, #tpu.memory_space<vmem>>, vector<8x1280xbf16>
    %c1_18 = arith.constant 1 : index
    %c0_19 = arith.constant 0 : index
    %c0_20 = arith.constant 0 : index
    %24 = vector.load %arg4[%c1_18, %c0_19, %c0_20] : memref<9x1280x128xbf16, #tpu.memory_space<vmem>>, vector<1x1280x128xbf16>
    %25 = vector.shape_cast %24 : vector<1x1280x128xbf16> to vector<1280x128xbf16>
    %cst_21 = arith.constant dense<0.000000e+00> : vector<8x128xf32>
    %26 = tpu.matmul %23, %25, %cst_21 {dimension_numbers = #tpu.dot_dimension_numbers<[1], [0], [0], [1], [0, 0, 1, 1], [], []>} : vector<8x1280xbf16>, vector<1280x128xbf16>, vector<8x128xf32> -> vector<8x128xf32>
    %27 = arith.addf %22, %26 : vector<8x128xf32>
    %c16 = arith.constant 16 : index
    %c0_22 = arith.constant 0 : index
    %28 = vector.load %arg9[%c16, %c0_22] : memref<72x1280xbf16, #tpu.memory_space<vmem>>, vector<8x1280xbf16>
    %c2 = arith.constant 2 : index
    %c0_23 = arith.constant 0 : index
    %c0_24 = arith.constant 0 : index
    %29 = vector.load %arg4[%c2, %c0_23, %c0_24] : memref<9x1280x128xbf16, #tpu.memory_space<vmem>>, vector<1x1280x128xbf16>
    %30 = vector.shape_cast %29 : vector<1x1280x128xbf16> to vector<1280x128xbf16>
    %cst_25 = arith.constant dense<0.000000e+00> : vector<8x128xf32>
    %31 = tpu.matmul %28, %30, %cst_25 {dimension_numbers = #tpu.dot_dimension_numbers<[1], [0], [0], [1], [0, 0, 1, 1], [], []>} : vector<8x1280xbf16>, vector<1280x128xbf16>, vector<8x128xf32> -> vector<8x128xf32>
    %32 = arith.addf %27, %31 : vector<8x128xf32>
    %c24 = arith.constant 24 : index
    %c0_26 = arith.constant 0 : index
    %33 = vector.load %arg9[%c24, %c0_26] : memref<72x1280xbf16, #tpu.memory_space<vmem>>, vector<8x1280xbf16>
    %c3 = arith.constant 3 : index
    %c0_27 = arith.constant 0 : index
    %c0_28 = arith.constant 0 : index
    %34 = vector.load %arg4[%c3, %c0_27, %c0_28] : memref<9x1280x128xbf16, #tpu.memory_space<vmem>>, vector<1x1280x128xbf16>
    %35 = vector.shape_cast %34 : vector<1x1280x128xbf16> to vector<1280x128xbf16>
    %cst_29 = arith.constant dense<0.000000e+00> : vector<8x128xf32>
    %36 = tpu.matmul %33, %35, %cst_29 {dimension_numbers = #tpu.dot_dimension_numbers<[1], [0], [0], [1], [0, 0, 1, 1], [], []>} : vector<8x1280xbf16>, vector<1280x128xbf16>, vector<8x128xf32> -> vector<8x128xf32>
    %37 = arith.addf %32, %36 : vector<8x128xf32>
    %c32 = arith.constant 32 : index
    %c0_30 = arith.constant 0 : index
    %38 = vector.load %arg9[%c32, %c0_30] : memref<72x1280xbf16, #tpu.memory_space<vmem>>, vector<8x1280xbf16>
    %c4 = arith.constant 4 : index
    %c0_31 = arith.constant 0 : index
    %c0_32 = arith.constant 0 : index
    %39 = vector.load %arg4[%c4, %c0_31, %c0_32] : memref<9x1280x128xbf16, #tpu.memory_space<vmem>>, vector<1x1280x128xbf16>
    %40 = vector.shape_cast %39 : vector<1x1280x128xbf16> to vector<1280x128xbf16>
    %cst_33 = arith.constant dense<0.000000e+00> : vector<8x128xf32>
    %41 = tpu.matmul %38, %40, %cst_33 {dimension_numbers = #tpu.dot_dimension_numbers<[1], [0], [0], [1], [0, 0, 1, 1], [], []>} : vector<8x1280xbf16>, vector<1280x128xbf16>, vector<8x128xf32> -> vector<8x128xf32>
    %42 = arith.addf %37, %41 : vector<8x128xf32>
    %c40 = arith.constant 40 : index
    %c0_34 = arith.constant 0 : index
    %43 = vector.load %arg9[%c40, %c0_34] : memref<72x1280xbf16, #tpu.memory_space<vmem>>, vector<8x1280xbf16>
    %c5 = arith.constant 5 : index
    %c0_35 = arith.constant 0 : index
    %c0_36 = arith.constant 0 : index
    %44 = vector.load %arg4[%c5, %c0_35, %c0_36] : memref<9x1280x128xbf16, #tpu.memory_space<vmem>>, vector<1x1280x128xbf16>
    %45 = vector.shape_cast %44 : vector<1x1280x128xbf16> to vector<1280x128xbf16>
    %cst_37 = arith.constant dense<0.000000e+00> : vector<8x128xf32>
    %46 = tpu.matmul %43, %45, %cst_37 {dimension_numbers = #tpu.dot_dimension_numbers<[1], [0], [0], [1], [0, 0, 1, 1], [], []>} : vector<8x1280xbf16>, vector<1280x128xbf16>, vector<8x128xf32> -> vector<8x128xf32>
    %47 = arith.addf %42, %46 : vector<8x128xf32>
    %c48 = arith.constant 48 : index
    %c0_38 = arith.constant 0 : index
    %48 = vector.load %arg9[%c48, %c0_38] : memref<72x1280xbf16, #tpu.memory_space<vmem>>, vector<8x1280xbf16>
    %c6 = arith.constant 6 : index
    %c0_39 = arith.constant 0 : index
    %c0_40 = arith.constant 0 : index
    %49 = vector.load %arg4[%c6, %c0_39, %c0_40] : memref<9x1280x128xbf16, #tpu.memory_space<vmem>>, vector<1x1280x128xbf16>
    %50 = vector.shape_cast %49 : vector<1x1280x128xbf16> to vector<1280x128xbf16>
    %cst_41 = arith.constant dense<0.000000e+00> : vector<8x128xf32>
    %51 = tpu.matmul %48, %50, %cst_41 {dimension_numbers = #tpu.dot_dimension_numbers<[1], [0], [0], [1], [0, 0, 1, 1], [], []>} : vector<8x1280xbf16>, vector<1280x128xbf16>, vector<8x128xf32> -> vector<8x128xf32>
    %52 = arith.addf %47, %51 : vector<8x128xf32>
    %c56 = arith.constant 56 : index
    %c0_42 = arith.constant 0 : index
    %53 = vector.load %arg9[%c56, %c0_42] : memref<72x1280xbf16, #tpu.memory_space<vmem>>, vector<8x1280xbf16>
    %c7 = arith.constant 7 : index
    %c0_43 = arith.constant 0 : index
    %c0_44 = arith.constant 0 : index
    %54 = vector.load %arg4[%c7, %c0_43, %c0_44] : memref<9x1280x128xbf16, #tpu.memory_space<vmem>>, vector<1x1280x128xbf16>
    %55 = vector.shape_cast %54 : vector<1x1280x128xbf16> to vector<1280x128xbf16>
    %cst_45 = arith.constant dense<0.000000e+00> : vector<8x128xf32>
    %56 = tpu.matmul %53, %55, %cst_45 {dimension_numbers = #tpu.dot_dimension_numbers<[1], [0], [0], [1], [0, 0, 1, 1], [], []>} : vector<8x1280xbf16>, vector<1280x128xbf16>, vector<8x128xf32> -> vector<8x128xf32>
    %57 = arith.addf %52, %56 : vector<8x128xf32>
    %c64 = arith.constant 64 : index
    %c0_46 = arith.constant 0 : index
    %58 = vector.load %arg9[%c64, %c0_46] : memref<72x1280xbf16, #tpu.memory_space<vmem>>, vector<8x1280xbf16>
    %c8_47 = arith.constant 8 : index
    %c0_48 = arith.constant 0 : index
    %c0_49 = arith.constant 0 : index
    %59 = vector.load %arg4[%c8_47, %c0_48, %c0_49] : memref<9x1280x128xbf16, #tpu.memory_space<vmem>>, vector<1x1280x128xbf16>
    %60 = vector.shape_cast %59 : vector<1x1280x128xbf16> to vector<1280x128xbf16>
    %cst_50 = arith.constant dense<0.000000e+00> : vector<8x128xf32>
    %61 = tpu.matmul %58, %60, %cst_50 {dimension_numbers = #tpu.dot_dimension_numbers<[1], [0], [0], [1], [0, 0, 1, 1], [], []>} : vector<8x1280xbf16>, vector<1280x128xbf16>, vector<8x128xf32> -> vector<8x128xf32>
    %62 = arith.addf %57, %61 : vector<8x128xf32>
    %c0_51 = arith.constant 0 : index
    %c0_52 = arith.constant 0 : index
    %63 = vector.load %arg5[%c0_51, %c0_52] : memref<2x128xf32, #tpu.memory_space<vmem>>, vector<1x128xf32>
    %64 = vector.broadcast %63 : vector<1x128xf32> to vector<8x128xf32>
    %65 = arith.mulf %62, %64 : vector<8x128xf32>
    %c1_53 = arith.constant 1 : index
    %c0_54 = arith.constant 0 : index
    %66 = vector.load %arg5[%c1_53, %c0_54] : memref<2x128xf32, #tpu.memory_space<vmem>>, vector<1x128xf32>
    %67 = vector.broadcast %66 : vector<1x128xf32> to vector<8x128xf32>
    %68 = arith.addf %65, %67 : vector<8x128xf32>
    %c1_55 = arith.constant 1 : index
    %69 = memref.load %arg7[%c1_55] : memref<2xf32, #tpu.memory_space<smem>>
    %cst_56 = arith.constant 0.000000e+00 : f32
    %70 = vector.broadcast %cst_56 : f32 to vector<8x128xf32>
    %71 = arith.cmpf ogt, %68, %70 : vector<8x128xf32>
    %72 = vector.broadcast %69 : f32 to vector<8x128xf32>
    %73 = arith.mulf %72, %68 : vector<8x128xf32>
    %74 = arith.select %71, %68, %73 : vector<8x128xi1>, vector<8x128xf32>
    %c0_57 = arith.constant 0 : index
    %c0_58 = arith.constant 0 : index
    %75 = vector.load %arg6[%c0_57, %c0_58] : memref<2x8xf32, #tpu.memory_space<vmem>>, vector<2x8xf32>
    %cst_59 = arith.constant dense<0.000000e+00> : vector<2x128xf32>
    %76 = tpu.matmul %75, %74, %cst_59 {dimension_numbers = #tpu.dot_dimension_numbers<[1], [0], [0], [1], [0, 0, 1, 1], [], []>} : vector<2x8xf32>, vector<8x128xf32>, vector<2x128xf32> -> vector<2x128xf32>
    %c0_60 = arith.constant 0 : index
    %c0_61 = arith.constant 0 : index
    %77 = vector.load %arg8[%c0_60, %c0_61] : memref<2x128xf32, #tpu.memory_space<vmem>>, vector<2x128xf32>
    tpu.vector_store %arg8[%c0_60, %c0_61], %76 {strides = array<i32>} : memref<2x128xf32, #tpu.memory_space<vmem>>, vector<2x128xf32>,
    return
  }
  func.func @transform_0(%arg0: i32) -> (i32, i32) {
    %c0_i32 = arith.constant 0 : i32
    %c0_i32_0 = arith.constant 0 : i32
    %c0_i32_1 = arith.constant 0 : i32
    return %c0_i32, %c0_i32_0 : i32, i32
  }
  func.func @transform_1(%arg0: i32) -> (i32, i32) {
    %c0_i32 = arith.constant 0 : i32
    %c0_i32_0 = arith.constant 0 : i32
    %c0_i32_1 = arith.constant 0 : i32
    return %c0_i32, %c0_i32_0 : i32, i32
  }
  func.func @transform_2(%arg0: i32) -> (i32, i32) {
    %c0_i32 = arith.constant 0 : i32
    %c0_i32_0 = arith.constant 0 : i32
    %c0_i32_1 = arith.constant 0 : i32
    return %c0_i32, %c0_i32_0 : i32, i32
  }
  func.func @transform_3(%arg0: i32) -> (i32, i32, i32) {
    %c0_i32 = arith.constant 0 : i32
    %c0_i32_0 = arith.constant 0 : i32
    %c0_i32_1 = arith.constant 0 : i32
    %c0_i32_2 = arith.constant 0 : i32
    return %c0_i32, %c0_i32_0, %c0_i32_1 : i32, i32, i32
  }
  func.func @transform_4(%arg0: i32) -> (i32, i32) {
    %c0_i32 = arith.constant 0 : i32
    %c0_i32_0 = arith.constant 0 : i32
    %c0_i32_1 = arith.constant 0 : i32
    return %c0_i32, %c0_i32_0 : i32, i32
  }
  func.func @transform_5(%arg0: i32) -> (i32, i32) {
    %c0_i32 = arith.constant 0 : i32
    %c0_i32_0 = arith.constant 0 : i32
    %c0_i32_1 = arith.constant 0 : i32
    return %c0_i32, %c0_i32_0 : i32, i32
  }
  func.func @transform_6(%arg0: i32) -> i32 {
    %c0_i32 = arith.constant 0 : i32
    %c0_i32_0 = arith.constant 0 : i32
    return %c0_i32 : i32
  }
  func.func @transform_7(%arg0: i32) -> (i32, i32) {
    %c0_i32 = arith.constant 0 : i32
    %c0_i32_0 = arith.constant 0 : i32
    %c0_i32_1 = arith.constant 0 : i32
    return %c0_i32, %c0_i32_0 : i32, i32
  }
}

</mosaic_0001>

<bundles_post_ra>
// kernel: convs_forward.1
= control target key start
LH: loop header
LB: loop body
LE: loop exit
PB: predicated region body
PF: predicated region fallthrough
CT: control target
= control target key end

     0   :  { %12 = vsyncpa [#allocation4], 0  ;;  %s13859_s0 = inlined_call_operand.vmem [shape: bf16[72,72], index: 0, kind: input, shape index: {}]   ;;  %s13860_s1 = inlined_call_operand.hbm [shape: bf16[72,1280], index: 1, kind: input, shape index: {}]   ;;  %s13861_s2 = inlined_call_operand.hbm [shape: f32[2,1280], index: 2, kind: input, shape index: {}]   ;;  %s13862_s3 = inlined_call_operand.hbm [shape: bf16[9,1280,128], index: 3, kind: input, shape index: {}]   ;;  %s13863_s4 = inlined_call_operand.hbm [shape: f32[2,128], index: 4, kind: input, shape index: {}]   ;;  %s13864_s5 = inlined_call_operand.hbm [shape: f32[2,8], index: 5, kind: input, shape index: {}]   ;;  %s13865_s6 = inlined_call_operand.hbm [shape: f32[2], index: 6, kind: input, shape index: {}]   ;;  %s13866_s7 = inlined_call_operand.hbm [shape: f32[2,128], index: 7, kind: output, shape index: {}]  }
   0x1   :  { %13 = vsyncpa [#allocation8], 0 }
   0x2   :  { %14 = vsyncpa [#allocation11], 0 }
   0x3   :  { %15 = vsyncpa [#allocation6], 0 }
   0x4   :  { %16 = vsyncpa [#allocation5], 0  ;;  %s12826_s24 = smov [#allocation7]   ;;  %s12827_s26 = smov [#allocation10]  }
   0x5   :  { %s37_s25 = sshll.u32 %s12826_s24, 4  ;;  %s59_s27 = sshll.u32 %s12827_s26, 4  ;;  %s38_s25 = int_to_ptr.vmem [resolvable:$true] %s37_s25  ;;  %s60_s27 = int_to_ptr.vmem [resolvable:$true] %s59_s27 }
   0x6   :  { %s12674_s30 = scalar_lea.hbm %s13861_s2, 320 }
   0x7   :  { %p12675_p0 = scmp.ne.s32.totalorder %s13861_s2, %s12674_s30  ;;  %p12678_p1 = scmp.lt.u32.totalorder %s12674_s30, %s13861_s2 }
   0x9   :  { %p12680_p2 = pnand %p12678_p1, %p12675_p0 }
   0xb   :  { %12683 = shalt.err (!%p12680_p2)
}
   0xc   :  { %s12684_s12 = scalar_lea.vmem %s38_s25, 320  ;;  %p12689_p4 = scmp.lt.s32.totalorder %s38_s25, %s38_s25 }
   0xd   :  { %p12685_p3 = scmp.ne.s32.totalorder %s38_s25, %s12684_s12  ;;  %p12690_p5 = scmp.lt.s32.totalorder %s12684_s12, %s12684_s12 }
   0xf   :  { %p12691_p6 = por %p12690_p5, %p12689_p4 }
  0x11   :  { %p12692_p7 = pnand %p12691_p6, %p12685_p3 }
  0x13   :  { %12695 = shalt.err (!%p12692_p7)
}
  0x14   :  { %40 = dma.hbm_to_vmem [thread:$0]  %s13861_s2, 320, %s38_s25, [#allocation8]  }
  0x15   :  { %s12696_s17 = scalar_lea.hbm %s13863_s4, 32 }
  0x16   :  { %p12697_p8 = scmp.ne.s32.totalorder %s13863_s4, %s12696_s17  ;;  %p12700_p9 = scmp.lt.u32.totalorder %s12696_s17, %s13863_s4 }
  0x18   :  { %p12702_p10 = pnand %p12700_p9, %p12697_p8 }
  0x1a   :  { %12705 = shalt.err (!%p12702_p10)
}
  0x1b   :  { %s12706_s22 = scalar_lea.vmem %s60_s27, 32  ;;  %p12711_p12 = scmp.lt.s32.totalorder %s60_s27, %s60_s27 }
  0x1c   :  { %p12707_p11 = scmp.ne.s32.totalorder %s60_s27, %s12706_s22  ;;  %p12712_p13 = scmp.lt.s32.totalorder %s12706_s22, %s12706_s22 }
  0x1e   :  { %p12713_p0 = por %p12712_p13, %p12711_p12 }
  0x20   :  { %p12714_p1 = pnand %p12713_p0, %p12707_p11 }
  0x22   :  { %12717 = shalt.err (!%p12714_p1)
}
  0x23   :  { %62 = dma.hbm_to_vmem [thread:$0]  %s13863_s4, 32, %s60_s27, [#allocation11]  }
  0x24   :  { %s12828_s24 = smov [#allocation3]   ;;  %s12718_s29 = scalar_lea.hbm %s13860_s1, 5760 }
  0x25   :  { %s24_s25 = sshll.u32 %s12828_s24, 4  ;;  %p12719_p2 = scmp.ne.s32.totalorder %s13860_s1, %s12718_s29  ;;  %s25_s25 = int_to_ptr.vmem [resolvable:$true] %s24_s25 }
  0x26   :  { %p12722_p3 = scmp.lt.u32.totalorder %s12718_s29, %s13860_s1 }
  0x28   :  { %p12724_p4 = pnand %p12722_p3, %p12719_p2 }
  0x2a   :  { %12727 = shalt.err (!%p12724_p4)
}
  0x2b   :  { %s12728_s11 = scalar_lea.vmem %s25_s25, 5760  ;;  %p12733_p6 = scmp.lt.s32.totalorder %s25_s25, %s25_s25 }
  0x2c   :  { %p12729_p5 = scmp.ne.s32.totalorder %s25_s25, %s12728_s11  ;;  %p12734_p7 = scmp.lt.s32.totalorder %s12728_s11, %s12728_s11 }
  0x2e   :  { %p12735_p8 = por %p12734_p7, %p12733_p6 }
  0x30   :  { %p12736_p9 = pnand %p12735_p8, %p12729_p5 }
  0x32   :  { %12739 = shalt.err (!%p12736_p9)
}
  0x33   :  { %s12829_s4 = smov 640   ;;  %s12830_s27 = smov 40  }
  0x34   :  { %30 = dma.hbm_to_vmem [thread:$0]  %s13860_s1, 5760, %s25_s25, [#allocation4], %s12829_s4, %s12829_s4, %s12830_s27  }
  0x35   :  { %s12831_s14 = smov [#allocation9]   ;;  %s12740_s18 = scalar_lea.hbm %s13862_s3, 92160 }
  0x36   :  { %s46_s15 = sshll.u32 %s12831_s14, 4  ;;  %p12741_p10 = scmp.ne.s32.totalorder %s13862_s3, %s12740_s18  ;;  %s47_s15 = int_to_ptr.vmem [resolvable:$true] %s46_s15 }
  0x37   :  { %p12744_p11 = scmp.lt.u32.totalorder %s12740_s18, %s13862_s3 }
  0x39   :  { %p12746_p12 = pnand %p12744_p11, %p12741_p10 }
  0x3b   :  { %12749 = shalt.err (!%p12746_p12)
}
  0x3c   :  { %s12750_s2 = scalar_lea.vmem %s47_s15, 92160  ;;  %p12755_p0 = scmp.lt.s32.totalorder %s47_s15, %s47_s15 }
  0x3d   :  { %p12751_p13 = scmp.ne.s32.totalorder %s47_s15, %s12750_s2  ;;  %p12756_p1 = scmp.lt.s32.totalorder %s12750_s2, %s12750_s2 }
  0x3f   :  { %p12757_p2 = por %p12756_p1, %p12755_p0 }
  0x41   :  { %p12758_p3 = pnand %p12757_p2, %p12751_p13 }
  0x43   :  { %12761 = shalt.err (!%p12758_p3)
}
  0x44   :  { %s12832_s1 = smov 64   ;;  %s12833_s23 = smov 4  }
  0x45   :  { %52 = dma.hbm_to_vmem [thread:$0]  %s13862_s3, 92160, %s47_s15, [#allocation8], %s12832_s1, %s12832_s1, %s12833_s23  }
  0x46   :  { %s12834_s26 = smov [#allocation12]   ;;  %s12762_s8 = scalar_lea.hbm %s13864_s5, 32 }
  0x47   :  { %s69_s28 = sshll.u32 %s12834_s26, 4  ;;  %p12763_p4 = scmp.ne.s32.totalorder %s13864_s5, %s12762_s8  ;;  %s70_s28 = int_to_ptr.vmem [resolvable:$true] %s69_s28 }
  0x48   :  { %p12766_p5 = scmp.lt.u32.totalorder %s12762_s8, %s13864_s5 }
  0x4a   :  { %p12768_p6 = pnand %p12766_p5, %p12763_p4 }
  0x4c   :  { %12771 = shalt.err (!%p12768_p6)
}
  0x4d   :  { %s12772_s27 = scalar_lea.vmem %s70_s28, 32  ;;  %p12777_p8 = scmp.lt.s32.totalorder %s70_s28, %s70_s28 }
  0x4e   :  { %p12773_p7 = scmp.ne.s32.totalorder %s70_s28, %s12772_s27  ;;  %p12778_p9 = scmp.lt.s32.totalorder %s12772_s27, %s12772_s27 }
  0x50   :  { %p12779_p10 = por %p12778_p9, %p12777_p8 }
  0x52   :  { %p12780_p11 = pnand %p12779_p10, %p12773_p7 }
  0x54   :  { %12783 = shalt.err (!%p12780_p11)
}
  0x55   :  { %72 = dma.hbm_to_vmem [thread:$0]  %s13864_s5, 32, %s70_s28, [#allocation11]  }
  0x56   :  { %s12784_s15 = scalar_lea.hbm %s13865_s6, 16 }
  0x57   :  { %p12785_p12 = scmp.ne.s32.totalorder %s13865_s6, %s12784_s15  ;;  %p12788_p13 = scmp.lt.u32.totalorder %s12784_s15, %s13865_s6 }
  0x59   :  { %p12790_p0 = pnand %p12788_p13, %p12785_p12 }
  0x5b   :  { %12793 = shalt.err (!%p12790_p0)
}
  0x5c   :  { %s12835_s20 = smov [#allocation13]  }
  0x5d   :  { %80 = dma.hbm_to_smem %s13865_s6, 16, %s12835_s20, [#allocation6]  }
  0x5e   :  { %12816 = dma.done.wait [#allocation4], 5760  }
  0x5f   :  { %12817 = vsyncadd [#allocation4], 4294961536 }
  0x60   :  { %12818 = dma.done.wait [#allocation8], 92480  }
  0x61   :  { %12819 = vsyncadd [#allocation8], 4294874816 }
  0x62   :  { %12820 = dma.done.wait [#allocation11], 64  }
  0x63   :  { %12821 = vsyncadd [#allocation11], 4294967232 }
  0x64   :  { %12822 = dma.done.wait [#allocation6], 16  }
  0x65   :  { %12823 = vsyncadd [#allocation6], 4294967280 }
  0x66   :  { %99 = sfence }
  0x67   :  { %v11879_v0 = vld [vmem:[#allocation3 + $0x4] ss:$40 sps:$4 sm:$0xff]   ;;  %v11881_v1 = vld [vmem:[#allocation3] ss:$40 sps:$4 sm:$0xff]   ;;  %v12836_v2 = vmov 0   ;;  %vm419_vm0 = vcmask 1043456  }
  0x68   :  { %482 = vmatprep.mubr.bf16.mxu0 %v12836_v2  ;;  %563 = vmatprep.mubr.bf16.mxu1 %v12836_v2  ;;  %v11882_v3 = vld [vmem:[#allocation3 + $0x54] ss:$40 sps:$4 sm:$0xff]   ;;  %v11884_v4 = vld [vmem:[#allocation3 + $0x50] ss:$40 sps:$4 sm:$0xff]   ;;  %v11885_v5 = vld [vmem:[#allocation3 + $0xa4] ss:$40 sps:$4 sm:$0xff]  }
  0x69   :  { %450 = vmatprep.subr.bf16.mxu0 %v11879_v0  ;;  %v11887_v6 = vld [vmem:[#allocation3 + $0xa0] ss:$40 sps:$4 sm:$0xff]   ;;  %v11894_v7 = vld [vmem:[#allocation3 + $0xc] ss:$40 sps:$4 sm:$0xff]   ;;  %v11900_v11 = vld [vmem:[#allocation3 + $0x5c] ss:$40 sps:$4 sm:$0xff]  }
  0x6a   :  { %451 = vmatpush1.bf16.msra.mxu0 %v11881_v1  ;;  %v11896_v8 = vld [vmem:[#allocation3 + $0x8] ss:$40 sps:$4 sm:$0xff]   ;;  %v11888_v9 = vld [vmem:[#allocation3 + $0xf4] ss:$40 sps:$4 sm:$0xff]   ;;  %v150_v10 = vld [vmem:[#allocation3 + $0x140] sm:$0xff]  ;;  %531 = vmatprep.subr.bf16.mxu1 %v11894_v7  ;;  %vm403_vm1 = vcmask 588800  }
  0x6b   :  { %452 = vmatprep.subr.bf16.mxu0 %v11882_v3  ;;  %532 = vmatpush1.bf16.msra.mxu1 %v11896_v8  ;;  %v11890_v12 = vld [vmem:[#allocation3 + $0xf0] ss:$40 sps:$4 sm:$0xff]   ;;  %v9835_v14 = vcombine.high %v150_v10, %v150_v10  ;;  %v9834_v15 = vcombine.low %v150_v10, %v150_v10  ;;  %v11904_v16 = vld [vmem:[#allocation3 + $0xac] ss:$40 sps:$4 sm:$0xff]   ;;  %v11910_v18 = vld [vmem:[#allocation3 + $0xfc] ss:$40 sps:$4 sm:$0xff]  }
  0x6c   :  { %v11903_v13 = vld [vmem:[#allocation3 + $0x58] ss:$40 sps:$4 sm:$0xff]   ;;  %533 = vmatprep.subr.bf16.mxu1 %v11900_v11  ;;  %v11906_v17 = vld [vmem:[#allocation3 + $0xa8] ss:$40 sps:$4 sm:$0xff]   ;;  %v11899_v20 = vld [vmem:[#allocation3 + $0x14] ss:$40 sps:$4 sm:$0xff]  }
  0x6d   :  { %v421_v19 = vsel %vm419_vm0, %v9834_v15, 0  ;;  %v151_v21 = vld [vmem:[#allocation3 + $0x148] sm:$0xff]  ;;  %v12959_v22 = vld [vmem:[%s13859_s0] sm:$0xff]   ;;  %v11897_v24 = vld [vmem:[#allocation3 + $0x10] ss:$40 sps:$4 sm:$0xff]   ;;  %s10731_s30 = sld [smem:[#allocation13 + $0x1]] }
  0x6e   :  { %453 = vmatpush1.bf16.msra.mxu0 %v11884_v4  ;;  %v11913_v23 = vld [vmem:[#allocation3 + $0xf8] ss:$40 sps:$4 sm:$0xff]   ;;  %v9836_v25 = vcombine.low %v151_v21, %v151_v21  ;;  %v11909_v26 = vld [vmem:[#allocation3 + $0x64] ss:$40 sps:$4 sm:$0xff]   ;;  %v9837_v27 = vcombine.high %v151_v21, %v151_v21  ;;  %v11918_v31 = vld [vmem:[#allocation3 + $0xb4] ss:$40 sps:$4 sm:$0xff]  }
  0x6f   :  { %454 = vmatprep.subr.bf16.mxu0 %v11885_v5  ;;  %534 = vmatpush1.bf16.msra.mxu1 %v11903_v13  ;;  %v11907_v28 = vld [vmem:[#allocation3 + $0x60] ss:$40 sps:$4 sm:$0xff]   ;;  %v11928_v30 = vld [vmem:[#allocation3 + $0x1c] ss:$40 sps:$4 sm:$0xff]   ;;  %v11916_v33 = vld [vmem:[#allocation3 + $0xb0] ss:$40 sps:$4 sm:$0xff]  }
  0x70   :  { %535 = vmatprep.subr.bf16.mxu1 %v11904_v16  ;;  %v427_v29 = vsel %vm419_vm0, %v9836_v25, 0  ;;  %v12969_v32 = vld [vmem:[%s13859_s0 + $0x8] sm:$0xff]   ;;  %v152_v35 = vld [vmem:[#allocation3 + $0x150] sm:$0xff]  ;;  %v11926_v36 = vld [vmem:[#allocation3 + $0x18] ss:$40 sps:$4 sm:$0xff]   ;;  %s12839_s8 = smov [#allocation14]  }
  0x71   :  { %v11922_v34 = vld [vmem:[#allocation3 + $0x104] ss:$40 sps:$4 sm:$0xff]   ;;  %v11920_v38 = vld [vmem:[#allocation3 + $0x100] ss:$40 sps:$4 sm:$0xff]   ;;  %v9838_v39 = vcombine.low %v152_v35, %v152_v35  ;;  %v12980_v40 = vld [vmem:[%s13859_s0 + $0x10] sm:$0xff]   ;;  %v9839_v41 = vcombine.high %v152_v35, %v152_v35  ;;  %s9777_s9 = sshll.u32 %s12839_s8, 4  ;;  %s9778_s9 = int_to_ptr.vmem [resolvable:$true] %s9777_s9 }
  0x72   :  { %455 = vmatpush1.bf16.msra.mxu0 %v11887_v6  ;;  %v11934_v37 = vld [vmem:[#allocation3 + $0x6c] ss:$40 sps:$4 sm:$0xff]   ;;  %v11932_v42 = vld [vmem:[#allocation3 + $0x68] ss:$40 sps:$4 sm:$0xff]   ;;  %v11937_v43 = vld [vmem:[#allocation3 + $0xbc] ss:$40 sps:$4 sm:$0xff]   ;;  %p12799_p2 = scmp.lt.s32.totalorder %s9778_s9, %s9778_s9 }
  0x73   :  { %456 = vmatprep.subr.bf16.mxu0 %v11888_v9  ;;  %536 = vmatpush1.bf16.msra.mxu1 %v11906_v17  ;;  %v11931_v44 = vld [vmem:[#allocation3 + $0x24] ss:$40 sps:$4 sm:$0xff]   ;;  %v153_v45 = vld [vmem:[#allocation3 + $0x158] sm:$0xff]  ;;  %v433_v46 = vsel %vm419_vm0, %v9838_v39, 0  ;;  %v11941_v52 = vld [vmem:[#allocation3 + $0x108] ss:$40 sps:$4 sm:$0xff]  }
  0x74   :  { %537 = vmatprep.subr.bf16.mxu1 %v11910_v18  ;;  %v12983_v47 = vld [vmem:[#allocation3 + $0x160] sm:$0xff]  ;;  %v11943_v49 = vld [vmem:[#allocation3 + $0x10c] ss:$40 sps:$4 sm:$0xff]   ;;  %v9840_v50 = vcombine.low %v153_v45, %v153_v45  ;;  %v12997_v53 = vld [vmem:[%s13859_s0 + $0x18] sm:$0xff]   ;;  %v9841_v54 = vcombine.high %v153_v45, %v153_v45  ;;  %s12794_s10 = scalar_lea.vmem %s9778_s9, 32 }
  0x75   :  { %v11935_v48 = vld [vmem:[#allocation3 + $0xb8] ss:$40 sps:$4 sm:$0xff]   ;;  %v9842_v51 = vcombine.low %v12983_v47, %v12983_v47  ;;  %v11940_v60 = vld [vmem:[#allocation3 + $0x74] ss:$40 sps:$4 sm:$0xff]   ;;  %v11948_v62 = vld [vmem:[#allocation3 + $0xc4] ss:$40 sps:$4 sm:$0xff]   ;;  %v9843_v7 = vcombine.high %v12983_v47, %v12983_v47  ;;  %p12795_p1 = scmp.ne.s32.totalorder %s9778_s9, %s12794_s10  ;;  %p12800_p3 = scmp.lt.s32.totalorder %s12794_s10, %s12794_s10 }
  0x76   :  { %457 = vmatpush1.bf16.msra.mxu0 %v11890_v12  ;;  %v439_v55 = vsel %vm419_vm0, %v9840_v50, 0  ;;  %v11954_v57 = vld [vmem:[#allocation9 + $0x2c0] sm:$0xff]   ;;  %v11938_v61 = vld [vmem:[#allocation3 + $0x70] ss:$40 sps:$4 sm:$0xff]   ;;  %v11956_v3 = vld [vmem:[#allocation9 + $0x2c8] sm:$0xff]  }
  0x77   :  { %9844 = vmatprep.subr.msk.bf16.mxu0 %vm419_vm0, %v9835_v14  ;;  %538 = vmatpush1.bf16.msra.mxu1 %v11913_v23  ;;  %v445_v56 = vsel %vm419_vm0, %v9842_v51, 0  ;;  %v13011_v58 = vld [vmem:[%s13859_s0 + $0x20] ss:$0 sps:$4 sm:$0xff]   ;;  %v11951_v0 = vld [vmem:[#allocation3 + $0x114] ss:$40 sps:$4 sm:$0xff]   ;;  %v11957_v5 = vld [vmem:[#allocation9 + $0x288] sm:$0xff]   ;;  %p12801_p4 = por %p12800_p3, %p12799_p2 }
  0x78   :  { %9850 = vmatprep.subr.msk.bf16.mxu1 %vm419_vm0, %v9837_v27  ;;  %v11929_v59 = vld [vmem:[#allocation3 + $0x20] ss:$40 sps:$4 sm:$0xff]   ;;  %v11949_v4 = vld [vmem:[#allocation3 + $0x110] ss:$40 sps:$4 sm:$0xff]   ;;  %s1146_s0 = sld [smem:[#allocation13]] }
  0x79   :  { %v11946_v63 = vld [vmem:[#allocation3 + $0xc0] ss:$40 sps:$4 sm:$0xff]   ;;  %v11958_v6 = vld [vmem:[#allocation9 + $0x2d0] sm:$0xff]   ;;  %v11960_v9 = vld [vmem:[#allocation9 + $0x2d8] sm:$0xff]   ;;  %p12802_p5 = pnand %p12801_p4, %p12795_p1 }
  0x7a   :  { %459 = vmatpush1.bf16.msra.mxu0 %v421_v19  ;;  %v11955_v1 = vld [vmem:[#allocation9 + $0x280] sm:$0xff]   ;;  %v11959_v8 = vld [vmem:[#allocation9 + $0x290] sm:$0xff]   ;;  %v11961_v10 = vld [vmem:[#allocation9 + $0x298] sm:$0xff]  }
  0x7b   :  { %612 = vmatprep.subr.bf16.mxu0 %v11899_v20  ;;  %540 = vmatpush1.bf16.msra.mxu1 %v427_v29  ;;  %v11962_v11 = vld [vmem:[#allocation9 + $0x2e0] sm:$0xff]   ;;  %v11964_v13 = vld [vmem:[#allocation9 + $0x2e8] sm:$0xff]   ;;  %v11966_v15 = vld [vmem:[#allocation9 + $0x2f0] sm:$0xff]  }
  0x7c   :  { %693 = vmatprep.subr.bf16.mxu1 %v11928_v30  ;;  %v11963_v12 = vld [vmem:[#allocation9 + $0x2a0] sm:$0xff]   ;;  %v11965_v14 = vld [vmem:[#allocation9 + $0x2a8] sm:$0xff]   ;;  %v11967_v16 = vld [vmem:[#allocation9 + $0x2b0] sm:$0xff]  }
  0x7d   :  { %9845 = vmatmul.mubr.msk.bf16.vlgmr.msra.gmra.mrb[0].mxu0 %vm403_vm1, %v12959_v22  ;;  %v11968_v17 = vld [vmem:[#allocation9 + $0x2f8] sm:$0xff]   ;;  %v11970_v19 = vld [vmem:[#allocation9 + $0x340] sm:$0xff]   ;;  %v11981_v23 = vld [vmem:[#allocation9 + $0x388] sm:$0xff]  }
  0x7e   :  { %492 = vmatprep.mubr.bf16.mxu0 %v12836_v2  ;;  %613 = vmatpush1.bf16.msra.mxu0 %v11897_v24  ;;  %v11969_v18 = vld [vmem:[#allocation9 + $0x2b8] sm:$0xff]   ;;  %v11976_v20 = vld [vmem:[#allocation9 + $0x3c0] sm:$0xff]   ;;  %v11984_v24 = vld [vmem:[#allocation9 + $0x3d0] sm:$0xff]  }
  0x7f   :  { %614 = vmatprep.subr.bf16.mxu0 %v11909_v26  ;;  %9851 = vmatmul.mubr.msk.bf16.vlgmr.msra.gmra.mrb[0].mxu1 %vm403_vm1, %v12959_v22  ;;  %v11977_v21 = vld [vmem:[#allocation9 + $0x380] sm:$0xff]   ;;  %v11985_v25 = vld [vmem:[#allocation9 + $0x390] sm:$0xff]   ;;  %v11988_v26 = vld [vmem:[#allocation9 + $0x3d8] sm:$0xff]  }
  0x80   :  { %573 = vmatprep.mubr.bf16.mxu1 %v12836_v2  ;;  %694 = vmatpush1.bf16.msra.mxu1 %v11926_v36  ;;  %v11989_v27 = vld [vmem:[#allocation9 + $0x398] sm:$0xff]   ;;  %v11993_v29 = vld [vmem:[#allocation9 + $0x3a0] sm:$0xff]   ;;  %v11997_v30 = vld [vmem:[#allocation9 + $0x3a8] sm:$0xff]   ;;  %v860_v36 = vlaneseq }
  0x81   :  { %695 = vmatprep.subr.bf16.mxu1 %v11934_v37  ;;  %v12011_v35 = vld [vmem:[#allocation9 + $0x4c0] sm:$0xff]  }
  0x82   :  { %615 = vmatpush1.bf16.msra.mxu0 %v11907_v28  ;;  %v11992_v28 = vld [vmem:[#allocation9 + $0x3e0] sm:$0xff]   ;;  %v13068_v37 = vshrl.u32 %v860_v36, 7 }
  0x83   :  { %616 = vmatprep.subr.bf16.mxu0 %v11918_v31  ;;  %v11999_v31 = vld [vmem:[#allocation9 + $0x3f0] sm:$0xff]  }
  0x84   :  { %696 = vmatpush1.bf16.msra.mxu1 %v11932_v42  ;;  %v13073_v39 = vsub.s32 0, %v13068_v37  ;;  %v870_v47 = vsub.s32 2, %v13068_v37 }
  0x85   :  { %9846 = vmatmul.mubr.msk.bf16.gmra.mrb[4].mxu0 %vm403_vm1, %v12969_v32  ;;  %697 = vmatprep.subr.bf16.mxu1 %v11937_v43 }
  0x86   :  { %502 = vmatprep.mubr.bf16.mxu0 %v12836_v2  ;;  %617 = vmatpush1.bf16.msra.mxu0 %v11916_v33  ;;  %v12003_v33 = vld [vmem:[#allocation9 + $0x3f8] sm:$0xff]  }
  0x87   :  { %618 = vmatprep.subr.bf16.mxu0 %v11922_v34  ;;  %9852 = vmatmul.mubr.msk.bf16.gmra.mrb[4].mxu1 %vm403_vm1, %v12969_v32  ;;  %v12005_v34 = vld [vmem:[#allocation9 + $0x3b8] sm:$0xff]  }
  0x88   :  { %583 = vmatprep.mubr.bf16.mxu1 %v12836_v2  ;;  %698 = vmatpush1.bf16.msra.mxu1 %v11935_v48 }
  0x89   :  { %699 = vmatprep.subr.bf16.mxu1 %v11943_v49 }
  0x8a   :  { %619 = vmatpush1.bf16.msra.mxu0 %v11920_v38  ;;  %v13070_v38 = vld [vmem:[#allocation7] ss:$2 sm:$0xff] }
  0x8b   :  { %9856 = vmatprep.subr.msk.bf16.mxu0 %vm419_vm0, %v9839_v41  ;;  %v13078_v41 = vld [vmem:[#allocation7 + $0x1] ss:$2 sm:$0xff]  ;;  %v13082_v42 = vrot.slane %v13070_v38, %v13073_v39 }
  0x8c   :  { %700 = vmatpush1.bf16.msra.mxu1 %v11941_v52 }
  0x8d   :  { %9847 = vmatmul.mubr.msk.bf16.gmra.mrb[8].mxu0 %vm403_vm1, %v12980_v40  ;;  %9862 = vmatprep.subr.msk.bf16.mxu1 %vm419_vm0, %v9841_v54 }
  0x8e   :  { %512 = vmatprep.mubr.bf16.mxu0 %v12836_v2  ;;  %621 = vmatpush1.bf16.msra.mxu0 %v433_v46 }
  0x8f   :  { %774 = vmatprep.subr.bf16.mxu0 %v11931_v44  ;;  %9853 = vmatmul.mubr.msk.bf16.gmra.mrb[8].mxu1 %vm403_vm1, %v12980_v40  ;;  %v13090_v44 = vrot.slane %v13078_v41, %v13073_v39 }
  0x90   :  { %593 = vmatprep.mubr.bf16.mxu1 %v12836_v2  ;;  %702 = vmatpush1.bf16.msra.mxu1 %v439_v55 }
  0x91   :  { %10868 = vmatprep.subr.bf16.mxu1 %v11954_v57  ;;  %v13108_v57 = vrot.slane %v13070_v38, %v870_v47 }
  0x95   :  { %9848 = vmatmul.mubr.msk.bf16.gmra.mrb[12].mxu0 %vm403_vm1, %v12997_v53 }
  0x96   :  { %522 = vmatprep.mubr.bf16.mxu0 %v12836_v2 }
  0x97   :  { %9854 = vmatmul.mubr.msk.bf16.gmra.mrb[12].mxu1 %vm403_vm1, %v12997_v53 }
  0x98   :  { %603 = vmatprep.mubr.bf16.mxu1 %v12836_v2 }
  0x9d   :  { %9849 = vmatmul.mubr.msk.bf16.gmra.mrb[16].mxu0 %vm403_vm1, %v13011_v58 }
  0x9e   :  { %644 = vmatprep.mubr.bf16.mxu0 %v12836_v2 }
  0x9f   :  { %9855 = vmatmul.mubr.msk.bf16.gmra.mrb[16].mxu1 %vm403_vm1, %v13011_v58 }
  0xa0   :  { %725 = vmatprep.mubr.bf16.mxu1 %v12836_v2 }
  0xa5   :  { %9857 = vmatmul.mubr.msk.bf16.vlgmr.msra.gmra.mrb[20].mxu0 %vm403_vm1, %v12959_v22 }
  0xa6   :  { %654 = vmatprep.mubr.bf16.mxu0 %v12836_v2  ;;  %775 = vmatpush1.bf16.msra.mxu0 %v11929_v59  ;;  %v13111_v59 = vstv %s1146_s0 }
  0xa7   :  { %776 = vmatprep.subr.bf16.mxu0 %v11940_v60  ;;  %9863 = vmatmul.mubr.msk.bf16.vlgmr.msra.gmra.mrb[20].mxu1 %vm403_vm1, %v12959_v22 }
  0xa8   :  { %735 = vmatprep.mubr.bf16.mxu1 %v12836_v2  ;;  %10869 = vmatpush3.bf16.msra.mxu1 %v11955_v1 }
  0xa9   :  { %10870 = vmatprep.subr.bf16.mxu1 %v11956_v3 }
  0xaa   :  { %777 = vmatpush1.bf16.msra.mxu0 %v11938_v61  ;;  %v13115_v61 = vrot.slane %v13078_v41, %v870_v47 }
  0xab   :  { %778 = vmatprep.subr.bf16.mxu0 %v11948_v62 }
  0xac   :  { %10871 = vmatpush3.bf16.msra.mxu1 %v11957_v5  ;;  %v874_v5 = vsub.s32 3, %v13068_v37 }
  0xad   :  { %9858 = vmatmul.mubr.msk.bf16.gmra.mrb[24].mxu0 %vm403_vm1, %v12969_v32  ;;  %10872 = vmatprep.subr.bf16.mxu1 %v11958_v6 }
  0xae   :  { %664 = vmatprep.mubr.bf16.mxu0 %v12836_v2  ;;  %779 = vmatpush1.bf16.msra.mxu0 %v11946_v63  ;;  %v13152_v47 = vrot.slane %v13078_v41, %v874_v5 }
  0xaf   :  { %780 = vmatprep.subr.bf16.mxu0 %v11951_v0  ;;  %9864 = vmatmul.mubr.msk.bf16.gmra.mrb[24].mxu1 %vm403_vm1, %v12969_v32 }
  0xb0   :  { %745 = vmatprep.mubr.bf16.mxu1 %v12836_v2  ;;  %10873 = vmatpush3.bf16.msra.mxu1 %v11959_v8 }
  0xb1   :  { %10874 = vmatprep.subr.bf16.mxu1 %v11960_v9 }
  0xb2   :  { %781 = vmatpush1.bf16.msra.mxu0 %v11949_v4 }
  0xb3   :  { %9868 = vmatprep.subr.msk.bf16.mxu0 %vm419_vm0, %v9843_v7 }
  0xb4   :  { %10875 = vmatpush3.bf16.msra.mxu1 %v11961_v10 }
  0xb5   :  { %9859 = vmatmul.mubr.msk.bf16.gmra.mrb[28].mxu0 %vm403_vm1, %v12980_v40  ;;  %10876 = vmatprep.subr.bf16.mxu1 %v11962_v11 }
  0xb6   :  { %674 = vmatprep.mubr.bf16.mxu0 %v12836_v2  ;;  %783 = vmatpush1.bf16.msra.mxu0 %v445_v56 }
  0xb7   :  { %9865 = vmatmul.mubr.msk.bf16.gmra.mrb[28].mxu1 %vm403_vm1, %v12980_v40  ;;  %10912 = vmatprep.subr.bf16.mxu0 %v11976_v20 }
  0xb8   :  { %755 = vmatprep.mubr.bf16.mxu1 %v12836_v2  ;;  %10877 = vmatpush3.bf16.msra.mxu1 %v11963_v12 }
  0xb9   :  { %10878 = vmatprep.subr.bf16.mxu1 %v11964_v13 }
  0xbc   :  { %10879 = vmatpush3.bf16.msra.mxu1 %v11965_v14 }
  0xbd   :  { %9860 = vmatmul.mubr.msk.bf16.gmra.mrb[32].mxu0 %vm403_vm1, %v12997_v53  ;;  %10880 = vmatprep.subr.bf16.mxu1 %v11966_v15 }
  0xbe   :  { %684 = vmatprep.mubr.bf16.mxu0 %v12836_v2 }
  0xbf   :  { %9866 = vmatmul.mubr.msk.bf16.gmra.mrb[32].mxu1 %vm403_vm1, %v12997_v53 }
  0xc0   :  { %765 = vmatprep.mubr.bf16.mxu1 %v12836_v2  ;;  %10881 = vmatpush3.bf16.msra.mxu1 %v11967_v16 }
  0xc1   :  { %10882 = vmatprep.subr.bf16.mxu1 %v11968_v17 }
  0xc4   :  { %10883 = vmatpush3.bf16.msra.mxu1 %v11969_v18 }
  0xc5   :  { %9861 = vmatmul.mubr.msk.bf16.gmra.mrb[36].mxu0 %vm403_vm1, %v13011_v58  ;;  %10890 = vmatprep.subr.bf16.mxu1 %v11970_v19  ;;  %v11971_v19 = vld [vmem:[#allocation9 + $0x300] sm:$0xff]  }
  0xc6   :  { %806 = vmatprep.mubr.bf16.mxu0 %v12836_v2 }
  0xc7   :  { %9867 = vmatmul.mubr.msk.bf16.gmra.mrb[36].mxu1 %vm403_vm1, %v13011_v58 }
  0xcd   :  { %9869 = vmatmul.mubr.msk.bf16.vlgmr.msra.gmra.mrb[40].mxu0 %vm403_vm1, %v12959_v22  ;;  %v11980_v22 = vld [vmem:[#allocation9 + $0x3c8] sm:$0xff]  }
  0xce   :  { %816 = vmatprep.mubr.bf16.mxu0 %v12836_v2  ;;  %10913 = vmatpush3.bf16.msra.mxu0 %v11977_v21 }
  0xcf   :  { %10914 = vmatprep.subr.bf16.mxu0 %v11980_v22 }
  0xd2   :  { %10915 = vmatpush3.bf16.msra.mxu0 %v11981_v23  ;;  %v11972_v23 = vld [vmem:[#allocation9 + $0x348] sm:$0xff]  }
  0xd3   :  { %10916 = vmatprep.subr.bf16.mxu0 %v11984_v24 }
  0xd5   :  { %9870 = vmatmul.mubr.msk.bf16.gmra.mrb[44].mxu0 %vm403_vm1, %v12969_v32  ;;  %v12001_v32 = vld [vmem:[#allocation9 + $0x3b0] sm:$0xff]  }
  0xd6   :  { %826 = vmatprep.mubr.bf16.mxu0 %v12836_v2  ;;  %10917 = vmatpush3.bf16.msra.mxu0 %v11985_v25 }
  0xd7   :  { %10918 = vmatprep.subr.bf16.mxu0 %v11988_v26  ;;  %v13145_v26 = vrot.slane %v13070_v38, %v874_v5  ;;  %v11979_v5 = vld [vmem:[#allocation9 + $0x318] sm:$0xff]  }
  0xda   :  { %10919 = vmatpush3.bf16.msra.mxu0 %v11989_v27  ;;  %v11973_v27 = vld [vmem:[#allocation9 + $0x308] sm:$0xff]  }
  0xdb   :  { %10920 = vmatprep.subr.bf16.mxu0 %v11992_v28 }
  0xdd   :  { %9871 = vmatmul.mubr.msk.bf16.gmra.mrb[48].mxu0 %vm403_vm1, %v12980_v40  ;;  %v13076_v40 = vsub.s32 1, %v13068_v37 }
  0xde   :  { %836 = vmatprep.mubr.bf16.mxu0 %v12836_v2  ;;  %10921 = vmatpush3.bf16.msra.mxu0 %v11993_v29 }
  0xdf   :  { %v13086_v43 = vrot.slane %v13070_v38, %v13076_v40  ;;  %v13094_v46 = vrot.slane %v13078_v41, %v13076_v40 }
  0xe5   :  { %9872 = vmatmul.mubr.msk.bf16.gmra.mrb[52].mxu0 %vm403_vm1, %v12997_v53 }
  0xe6   :  { %846 = vmatprep.mubr.bf16.mxu0 %v12836_v2  ;;  %v11996_v2 = vld [vmem:[#allocation9 + $0x3e8] sm:$0xff]  }
  0xe7   :  { %10922 = vmatprep.subr.bf16.mxu0 %v11996_v2  ;;  %v11974_v2 = vld [vmem:[#allocation9 + $0x350] sm:$0xff]  }
  0xe8   :  { %10923 = vmatpush3.bf16.msra.mxu0 %v11997_v30 }
  0xe9   :  { %10924 = vmatprep.subr.bf16.mxu0 %v11999_v31 }
  0xec   :  { %10925 = vmatpush3.bf16.msra.mxu0 %v12001_v32 }
  0xed   :  { %9873 = vmatmul.mubr.msk.bf16.gmra.mrb[56].mxu0 %vm403_vm1, %v13011_v58  ;;  %10926 = vmatprep.subr.bf16.mxu0 %v12003_v33 }
  0xf0   :  { %10927 = vmatpush3.bf16.msra.mxu0 %v12005_v34 }
  0xf1   :  { %10956 = vmatprep.subr.bf16.mxu0 %v12011_v35 }
 0x150   :  { %v484_v45 = vpop.f32.mrb[0].mxu0 }
 0x151   :  { %v910_v48 = vmul.f32 %v13082_v42, %v484_v45  ;;  %v486_v49 = vpop.f32.mrb[1].mxu0 }
 0x152   :  { %v911_v50 = vmul.f32 %v13086_v43, %v486_v49  ;;  %v488_v51 = vpop.f32.mrb[2].mxu0  ;;  %v565_v63 = vpop.f32.mrb[0].mxu1 }
 0x153   :  { %v13100_v52 = vadd.f32 %v13090_v44, %v910_v48  ;;  %v920_v53 = vmul.f32 %v13082_v42, %v488_v51  ;;  %v490_v54 = vpop.f32.mrb[3].mxu0  ;;  %v912_v3 = vmul.f32 %v13108_v57, %v565_v63  ;;  %v13120_v4 = vpop.f32.mrb[1].mxu1 }
 0x154   :  { %v13104_v55 = vadd.f32 %v13094_v46, %v911_v50  ;;  %v921_v56 = vmul.f32 %v13086_v43, %v490_v54  ;;  %v13124_v9 = vpop.f32.mrb[2].mxu1  ;;  %v11975_v54 = vld [vmem:[#allocation9 + $0x310] sm:$0xff]  }
 0x155   :  { %v1066_v58 = vadd.f32 %v13090_v44, %v920_v53  ;;  %v13128_v13 = vadd.f32 %v13115_v61, %v912_v3  ;;  %v571_v14 = vpop.f32.mrb[3].mxu1  ;;  %vm1147_vm14 = vcmp.gt.f32.partialorder %v13100_v52, 0.0 }
 0x156   :  { %v1067_v60 = vadd.f32 %v13094_v46, %v921_v56  ;;  %v923_v48 = vmul.f32 %v13145_v26, %v571_v14  ;;  %vm1148_vm10 = vcmp.gt.f32.partialorder %v13104_v55, 0.0 }
 0x157   :  { %vm1157_vm2 = vcmp.gt.f32.partialorder %v1066_v58, 0.0  ;;  %v1248_v62 = vmul.f32 %v13111_v59, %v1066_v58  ;;  %vm1149_vm0 = vcmp.gt.f32.partialorder %v13128_v13, 0.0 }
 0x158   :  { %v1249_v0 = vmul.f32 %v13111_v59, %v1067_v60  ;;  %v494_v1 = vpop.f32.mrb[4].mxu0  ;;  %vm1158_vm3 = vcmp.gt.f32.partialorder %v1067_v60, 0.0  ;;  %v1069_v3 = vadd.f32 %v13152_v47, %v923_v48  ;;  %v11987_v48 = vld [vmem:[#allocation9 + $0x328] sm:$0xff]  }
 0x159   :  { %v1338_v6 = vsel %vm1157_vm2, %v1066_v58, %v1248_v62  ;;  %v930_v7 = vmul.f32 %v13082_v42, %v494_v1  ;;  %v496_v8 = vpop.f32.mrb[5].mxu0  ;;  %v11978_v62 = vld [vmem:[#allocation9 + $0x358] sm:$0xff]  }
 0x15a   :  { %v931_v10 = vmul.f32 %v13086_v43, %v496_v8  ;;  %v498_v11 = vpop.f32.mrb[6].mxu0  ;;  %v1339_v12 = vsel %vm1158_vm3, %v1067_v60, %v1249_v0  ;;  %v10778_v20 = vpack.c.bf16 %v1338_v6, %v1338_v6  ;;  %v575_v28 = vpop.f32.mrb[4].mxu1  ;;  %v11982_v8 = vld [vmem:[#allocation9 + $0x360] sm:$0xff]   ;;  %vm1160_vm4 = vcmp.gt.f32.partialorder %v1069_v3, 0.0 }
 0x15b   :  { %v13131_v15 = vadd.f32 %v13090_v44, %v930_v7  ;;  %v940_v16 = vmul.f32 %v13082_v42, %v498_v11  ;;  %v500_v17 = vpop.f32.mrb[7].mxu0  ;;  %v10779_v18 = vpack.c.bf16 %v1339_v12, %v1339_v12  ;;  %v577_v30 = vpop.f32.mrb[5].mxu1  ;;  %v932_v33 = vmul.f32 %v13108_v57, %v575_v28 }
 0x15c   :  { %v13135_v21 = vadd.f32 %v13094_v46, %v931_v10  ;;  %v941_v22 = vmul.f32 %v13086_v43, %v500_v17  ;;  %v933_v34 = vmul.f32 %v13145_v26, %v577_v30  ;;  %v579_v35 = vpop.f32.mrb[6].mxu1  ;;  %v11983_v30 = vld [vmem:[#allocation9 + $0x320] sm:$0xff]  }
 0x15d   :  { %v13139_v24 = vadd.f32 %v13090_v44, %v940_v16  ;;  %2621 = vmatprep.mubr.bf16.mxu1 %v10779_v18  ;;  %v581_v49 = vpop.f32.mrb[7].mxu1  ;;  %v13160_v56 = vadd.f32 %v13115_v61, %v932_v33  ;;  %v942_v10 = vmul.f32 %v13108_v57, %v579_v35  ;;  %v11986_v33 = vld [vmem:[#allocation9 + $0x368] sm:$0xff]  }
 0x15e   :  { %v13142_v25 = vadd.f32 %v13094_v46, %v941_v22  ;;  %2622 = vmatmul.mubr.bf16.vlgmr.msra.gmra.mrb[40].mxu1 %v10778_v20  ;;  %v13167_v63 = vadd.f32 %v13152_v47, %v933_v34  ;;  %v943_v16 = vmul.f32 %v13145_v26, %v581_v49  ;;  %v922_v20 = vmul.f32 %v13108_v57, %v13124_v9 }
 0x15f   :  { %10891 = vmatpush3.bf16.msra.mxu1 %v11971_v19  ;;  %v1251_v22 = vmul.f32 %v13111_v59, %v1069_v3 }
 0x160   :  { %v504_v29 = vpop.f32.mrb[8].mxu0  ;;  %10892 = vmatprep.subr.bf16.mxu1 %v11972_v23  ;;  %v13184_v23 = vadd.f32 %v13115_v61, %v942_v10 }
 0x161   :  { %v950_v31 = vmul.f32 %v13082_v42, %v504_v29  ;;  %v506_v32 = vpop.f32.mrb[9].mxu0 }
 0x162   :  { %v951_v36 = vmul.f32 %v13086_v43, %v506_v32  ;;  %v508_v45 = vpop.f32.mrb[10].mxu0  ;;  %v585_v6 = vpop.f32.mrb[8].mxu1 }
 0x163   :  { %v13156_v50 = vadd.f32 %v13090_v44, %v950_v31  ;;  %v960_v51 = vmul.f32 %v13082_v42, %v508_v45  ;;  %10893 = vmatpush3.bf16.msra.mxu1 %v11973_v27  ;;  %v510_v53 = vpop.f32.mrb[11].mxu0  ;;  %v587_v11 = vpop.f32.mrb[9].mxu1  ;;  %v13191_v31 = vadd.f32 %v13152_v47, %v943_v16  ;;  %v1341_v45 = vsel %vm1160_vm4, %v1069_v3, %v1251_v22  ;;  %v11991_v22 = vld [vmem:[#allocation9 + $0x330] sm:$0xff]  }
 0x164   :  { %v13163_v58 = vadd.f32 %v13094_v46, %v951_v36  ;;  %v961_v60 = vmul.f32 %v13086_v43, %v510_v53  ;;  %10894 = vmatprep.subr.bf16.mxu1 %v11974_v2  ;;  %v589_v17 = vpop.f32.mrb[10].mxu1  ;;  %v1068_v36 = vadd.f32 %v13115_v61, %v922_v20  ;;  %v11990_v53 = vld [vmem:[#allocation9 + $0x370] sm:$0xff]   ;;  %v953_v10 = vmul.f32 %v13145_v26, %v587_v11 }
 0x165   :  { %v13170_v0 = vadd.f32 %v13090_v44, %v960_v51  ;;  %v591_v27 = vpop.f32.mrb[11].mxu1 }
 0x166   :  { %v13173_v1 = vadd.f32 %v13094_v46, %v961_v60  ;;  %v952_v60 = vmul.f32 %v13108_v57, %v585_v6  ;;  %v1250_v16 = vmul.f32 %v13111_v59, %v1068_v36  ;;  %v963_v6 = vmul.f32 %v13145_v26, %v591_v27  ;;  %v11994_v27 = vld [vmem:[#allocation9 + $0x378] sm:$0xff]  }
 0x167   :  { %13898 = vst [vmem:[#allocation20_spill] sm:$0xff] %v13170_v0  ;;  %10895 = vmatpush3.bf16.msra.mxu1 %v11975_v54  ;;  %v10781_v54 = vpack.c.bf16 %v1341_v45, %v1341_v45  ;;  %vm1159_vm5 = vcmp.gt.f32.partialorder %v1068_v36, 0.0 }
 0x168   :  { %13899 = vst [vmem:[#allocation21_spill] sm:$0xff] %v13173_v1  ;;  %v514_v7 = vpop.f32.mrb[12].mxu0  ;;  %10896 = vmatprep.subr.bf16.mxu1 %v11978_v62 }
 0x169   :  { %v970_v12 = vmul.f32 %v13082_v42, %v514_v7  ;;  %v516_v14 = vpop.f32.mrb[13].mxu0  ;;  %2661 = vmatprep.mubr.bf16.mxu1 %v10781_v54  ;;  %v11998_v54 = vld [vmem:[#allocation9 + $0x440] sm:$0xff]  }
 0x16a   :  { %v971_v18 = vmul.f32 %v13086_v43, %v516_v14  ;;  %v518_v19 = vpop.f32.mrb[14].mxu0  ;;  %v595_v49 = vpop.f32.mrb[12].mxu1 }
 0x16b   :  { %v13187_v28 = vadd.f32 %v13090_v44, %v970_v12  ;;  %v980_v29 = vmul.f32 %v13082_v42, %v518_v19  ;;  %10897 = vmatpush3.bf16.msra.mxu1 %v11979_v5  ;;  %v520_v2 = vpop.f32.mrb[15].mxu0  ;;  %v597_v62 = vpop.f32.mrb[13].mxu1  ;;  %v962_v12 = vmul.f32 %v13108_v57, %v589_v17  ;;  %v13212_v19 = vadd.f32 %v13115_v61, %v952_v60 }
 0x16c   :  { %v13194_v9 = vadd.f32 %v13094_v46, %v971_v18  ;;  %v981_v32 = vmul.f32 %v13086_v43, %v520_v2  ;;  %10898 = vmatprep.subr.bf16.mxu1 %v11982_v8  ;;  %v878_v8 = vsub.s32 4, %v13068_v37  ;;  %v599_v3 = vpop.f32.mrb[14].mxu1  ;;  %v13219_v17 = vadd.f32 %v13152_v47, %v953_v10 }
 0x16d   :  { %13900 = vst [vmem:[#allocation22_spill] sm:$0xff] %v13187_v28  ;;  %v13198_v34 = vadd.f32 %v13090_v44, %v980_v29  ;;  %13904 = vst [vmem:[#allocation26_spill] sm:$0xff] %v13212_v19  ;;  %v972_v29 = vmul.f32 %v13108_v57, %v595_v49  ;;  %v973_v49 = vmul.f32 %v13145_v26, %v597_v62  ;;  %v12046_v19 = vld [vmem:[#allocation9 + $0x68] sm:$0xff]  }
 0x16e   :  { %13901 = vst [vmem:[#allocation23_spill] sm:$0xff] %v13194_v9  ;;  %v13201_v35 = vadd.f32 %v13094_v46, %v981_v32  ;;  %v882_v32 = vsub.s32 5, %v13068_v37  ;;  %v13236_v45 = vrot.slane %v13078_v41, %v878_v8  ;;  %v982_v60 = vmul.f32 %v13108_v57, %v599_v3 }
 0x16f   :  { %13902 = vst [vmem:[#allocation24_spill] sm:$0xff] %v13198_v34  ;;  %10899 = vmatpush3.bf16.msra.mxu1 %v11983_v30  ;;  %v13232_v30 = vrot.slane %v13070_v38, %v878_v8  ;;  %v12013_v34 = vld [vmem:[#allocation9 + $0x480] sm:$0xff]  }
 0x170   :  { %13903 = vst [vmem:[#allocation25_spill] sm:$0xff] %v13201_v35  ;;  %v524_v51 = vpop.f32.mrb[16].mxu0  ;;  %10900 = vmatprep.subr.bf16.mxu1 %v11986_v33  ;;  %v1340_v33 = vsel %vm1159_vm5, %v1068_v36, %v1250_v16  ;;  %v13248_v8 = vrot.slane %v13070_v38, %v882_v32  ;;  %v12015_v35 = vld [vmem:[#allocation9 + $0x4c8] sm:$0xff]   ;;  %vm1168_vm5 = vcmp.gt.f32.partialorder %v13135_v21, 0.0 }
 0x171   :  { %v990_v5 = vmul.f32 %v13082_v42, %v524_v51  ;;  %v526_v7 = vpop.f32.mrb[17].mxu0  ;;  %v601_v42 = vpop.f32.mrb[15].mxu1  ;;  %v10780_v16 = vpack.c.bf16 %v1340_v33, %v1340_v33 }
 0x172   :  { %v991_v14 = vmul.f32 %v13086_v43, %v526_v7  ;;  %v528_v18 = vpop.f32.mrb[18].mxu0  ;;  %v13222_v43 = vadd.f32 %v13115_v61, %v962_v12  ;;  %v605_v51 = vpop.f32.mrb[16].mxu1  ;;  %v12000_v12 = vld [vmem:[#allocation9 + $0x400] sm:$0xff]  }
 0x173   :  { %v13216_v20 = vadd.f32 %v13090_v44, %v990_v5  ;;  %10901 = vmatpush3.bf16.msra.mxu1 %v11987_v48  ;;  %v529_v11 = vpop.f32.mrb[19].mxu0  ;;  %v13229_v44 = vadd.f32 %v13152_v47, %v963_v6  ;;  %v11995_v48 = vld [vmem:[#allocation9 + $0x338] sm:$0xff]   ;;  %v983_v5 = vmul.f32 %v13145_v26, %v601_v42  ;;  %v607_v7 = vpop.f32.mrb[17].mxu1  ;;  %v13251_v18 = vadd.f32 %v13152_v47, %v973_v49 }
 0x174   :  { %13906 = vst [vmem:[#allocation28_spill] sm:$0xff] %v13222_v43  ;;  %v13226_v2 = vadd.f32 %v13094_v46, %v991_v14  ;;  %10902 = vmatprep.subr.bf16.mxu1 %v11990_v53  ;;  %v13239_v46 = vadd.f32 %v13115_v61, %v972_v29  ;;  %v609_v14 = vpop.f32.mrb[18].mxu1  ;;  %v13254_v6 = vadd.f32 %v13115_v61, %v982_v60  ;;  %v12029_v43 = vld [vmem:[#allocation9] sm:$0xff]  }
 0x175   :  { %13905 = vst [vmem:[#allocation27_spill] sm:$0xff] %v13216_v20  ;;  %13908 = vst [vmem:[#allocation30_spill] sm:$0xff] %v13229_v44  ;;  %v13257_v3 = vadd.f32 %v13152_v47, %v983_v5  ;;  %v610_v42 = vpop.f32.mrb[19].mxu1  ;;  %v992_v33 = vmul.f32 %v13108_v57, %v605_v51  ;;  %v13265_v49 = vrot.slane %v13078_v41, %v882_v32  ;;  %v12004_v14 = vld [vmem:[#allocation9 + $0x408] sm:$0xff]   ;;  %v12044_v44 = vld [vmem:[#allocation9 + $0x20] sm:$0xff]  }
 0x176   :  { %13907 = vst [vmem:[#allocation29_spill] sm:$0xff] %v13226_v2  ;;  %13909 = vst [vmem:[#allocation31_spill] sm:$0xff] %v13239_v46  ;;  %v12016_v46 = vld [vmem:[#allocation9 + $0x428] sm:$0xff]  }
 0x177   :  { %10903 = vmatpush3.bf16.msra.mxu1 %v11991_v22  ;;  %13910 = vst [vmem:[#allocation32_spill] sm:$0xff] %v13251_v18  ;;  %13911 = vst [vmem:[#allocation33_spill] sm:$0xff] %v13254_v6  ;;  %v13273_v57 = vadd.f32 %v13115_v61, %v992_v33  ;;  %v12026_v18 = vld [vmem:[#allocation9 + $0x4e0] sm:$0xff]  }
 0x178   :  { %v646_v53 = vpop.f32.mrb[20].mxu0  ;;  %10904 = vmatprep.subr.bf16.mxu1 %v11994_v27  ;;  %13912 = vst [vmem:[#allocation34_spill] sm:$0xff] %v13257_v3  ;;  %v12002_v27 = vld [vmem:[#allocation9 + $0x448] sm:$0xff]   ;;  %v12008_v3 = vld [vmem:[#allocation9 + $0x458] sm:$0xff]  }
 0x179   :  { %v914_v36 = vmul.f32 %v13232_v30, %v646_v53  ;;  %v13245_v10 = vpop.f32.mrb[21].mxu0  ;;  %13913 = vst [vmem:[#allocation35_spill] sm:$0xff] %v13273_v57 }
 0x17a   :  { %v650_v62 = vpop.f32.mrb[22].mxu0  ;;  %v727_v32 = vpop.f32.mrb[20].mxu1 }
 0x17b   :  { %v13260_v11 = vadd.f32 %v13236_v45, %v914_v36  ;;  %v924_v22 = vmul.f32 %v13232_v30, %v650_v62  ;;  %10905 = vmatpush3.bf16.msra.mxu1 %v11995_v48  ;;  %v652_v29 = vpop.f32.mrb[23].mxu0  ;;  %v886_v36 = vsub.s32 6, %v13068_v37  ;;  %v13276_v42 = vpop.f32.mrb[21].mxu1 }
 0x17c   :  { %v925_v53 = vmul.f32 %v13248_v8, %v652_v29  ;;  %10934 = vmatprep.subr.bf16.mxu1 %v11998_v54  ;;  %v12006_v54 = vld [vmem:[#allocation9 + $0x450] sm:$0xff]  }
 0x17d   :  { %v1070_v60 = vadd.f32 %v13236_v45, %v924_v22  ;;  %v13282_v57 = vrot.slane %v13070_v38, %v886_v36  ;;  %vm1151_vm2 = vcmp.gt.f32.partialorder %v13260_v11, 0.0 }
 0x17e   :  { %v1071_v5 = vadd.f32 %v13265_v49, %v925_v53  ;;  %2662 = vmatmul.mubr.bf16.vlgmr.msra.gmra.mrb[44].mxu1 %v10780_v16  ;;  %v890_v53 = vsub.s32 7, %v13068_v37 }
 0x17f   :  { %vm1161_vm6 = vcmp.gt.f32.partialorder %v1070_v60, 0.0  ;;  %v1252_v48 = vmul.f32 %v13111_v59, %v1070_v60  ;;  %10935 = vmatpush3.bf16.msra.mxu1 %v12000_v12  ;;  %v731_v12 = vpop.f32.mrb[22].mxu1 }
 0x180   :  { %v1253_v51 = vmul.f32 %v13111_v59, %v1071_v5  ;;  %v656_v62 = vpop.f32.mrb[24].mxu0  ;;  %10936 = vmatprep.subr.bf16.mxu1 %v12002_v27  ;;  %vm1162_vm7 = vcmp.gt.f32.partialorder %v1071_v5, 0.0  ;;  %v13285_v27 = vrot.slane %v13078_v41, %v886_v36  ;;  %v733_v2 = vpop.f32.mrb[23].mxu1 }
 0x181   :  { %v1342_v16 = vsel %vm1161_vm6, %v1070_v60, %v1252_v48  ;;  %v934_v22 = vmul.f32 %v13232_v30, %v656_v62  ;;  %v658_v29 = vpop.f32.mrb[25].mxu0  ;;  %v12007_v62 = vld [vmem:[#allocation9 + $0x410] sm:$0xff]  }
 0x182   :  { %v935_v20 = vmul.f32 %v13248_v8, %v658_v29  ;;  %v660_v61 = vpop.f32.mrb[26].mxu0  ;;  %v1343_v33 = vsel %vm1162_vm7, %v1071_v5, %v1253_v51  ;;  %v993_v29 = vmul.f32 %v13145_v26, %v607_v7  ;;  %v10782_v5 = vpack.c.bf16 %v1342_v16, %v1342_v16 }
 0x183   :  { %v13288_v6 = vadd.f32 %v13236_v45, %v934_v22  ;;  %v944_v60 = vmul.f32 %v13232_v30, %v660_v61  ;;  %10937 = vmatpush3.bf16.msra.mxu1 %v12004_v14  ;;  %v662_v48 = vpop.f32.mrb[27].mxu0  ;;  %v10783_v37 = vpack.c.bf16 %v1343_v33, %v1343_v33  ;;  %v916_v22 = vmul.f32 %v13282_v57, %v727_v32  ;;  %v12009_v32 = vld [vmem:[#allocation9 + $0x418] sm:$0xff]   ;;  %v12010_v33 = vld [vmem:[#allocation9 + $0x460] sm:$0xff]  }
 0x184   :  { %v13293_v51 = vadd.f32 %v13265_v49, %v935_v20  ;;  %v945_v36 = vmul.f32 %v13248_v8, %v662_v48  ;;  %10938 = vmatprep.subr.bf16.mxu1 %v12006_v54  ;;  %v13304_v7 = vadd.f32 %v13152_v47, %v993_v29  ;;  %v13310_v54 = vrot.slane %v13070_v38, %v890_v53 }
 0x185   :  { %v13298_v61 = vadd.f32 %v13236_v45, %v944_v60  ;;  %2701 = vmatprep.mubr.bf16.mxu0 %v10783_v37  ;;  %v13307_v20 = vadd.f32 %v13285_v27, %v916_v22  ;;  %v12012_v37 = vld [vmem:[#allocation9 + $0x420] sm:$0xff]   ;;  %v13314_v29 = vrot.slane %v13078_v41, %v890_v53  ;;  %vm1170_vm7 = vcmp.gt.f32.partialorder %v13167_v63, 0.0 }
 0x186   :  { %v13301_v14 = vadd.f32 %v13265_v49, %v945_v36  ;;  %2702 = vmatmul.mubr.bf16.vlgmr.msra.gmra.mrb[60].mxu0 %v10782_v5  ;;  %13914 = vst [vmem:[#allocation36_spill] sm:$0xff] %v13304_v7  ;;  %v12017_v5 = vld [vmem:[#allocation9 + $0x488] sm:$0xff]   ;;  %v927_v38 = vmul.f32 %v13310_v54, %v733_v2 }
 0x187   :  { %10939 = vmatpush3.bf16.msra.mxu1 %v12007_v62  ;;  %10957 = vmatpush3.bf16.msra.mxu0 %v12013_v34  ;;  %v12019_v62 = vld [vmem:[#allocation9 + $0x4d0] sm:$0xff]   ;;  %v12014_v7 = vld [vmem:[#allocation9 + $0x468] sm:$0xff]   ;;  %vm1153_vm4 = vcmp.gt.f32.partialorder %v13307_v20, 0.0 }
 0x188   :  { %v666_v16 = vpop.f32.mrb[28].mxu0  ;;  %10940 = vmatprep.subr.bf16.mxu1 %v12008_v3  ;;  %10958 = vmatprep.subr.bf16.mxu0 %v12015_v35  ;;  %v1073_v2 = vadd.f32 %v13314_v29, %v927_v38 }
 0x189   :  { %v954_v60 = vmul.f32 %v13232_v30, %v666_v16  ;;  %v668_v48 = vpop.f32.mrb[29].mxu0  ;;  %v926_v16 = vmul.f32 %v13282_v57, %v731_v12 }
 0x18a   :  { %v955_v36 = vmul.f32 %v13248_v8, %v668_v48  ;;  %v670_v22 = vpop.f32.mrb[30].mxu0  ;;  %vm1164_vm8 = vcmp.gt.f32.partialorder %v1073_v2, 0.0 }
 0x18b   :  { %v13319_v34 = vadd.f32 %v13236_v45, %v954_v60  ;;  %v964_v3 = vmul.f32 %v13232_v30, %v670_v22  ;;  %10941 = vmatpush3.bf16.msra.mxu1 %v12009_v32  ;;  %v672_v35 = vpop.f32.mrb[31].mxu0  ;;  %10959 = vmatpush3.bf16.msra.mxu0 %v12017_v5  ;;  %v12021_v60 = vld [vmem:[#allocation9 + $0x490] sm:$0xff]   ;;  %v12023_v32 = vld [vmem:[#allocation9 + $0x4d8] sm:$0xff]   ;;  %v1072_v12 = vadd.f32 %v13285_v27, %v926_v16 }
 0x18c   :  { %v13324_v41 = vadd.f32 %v13265_v49, %v955_v36  ;;  %v965_v53 = vmul.f32 %v13248_v8, %v672_v35  ;;  %10942 = vmatprep.subr.bf16.mxu1 %v12010_v33  ;;  %10960 = vmatprep.subr.bf16.mxu0 %v12019_v62  ;;  %v1255_v36 = vmul.f32 %v13111_v59, %v1073_v2  ;;  %v12018_v33 = vld [vmem:[#allocation9 + $0x470] sm:$0xff]   ;;  %v12025_v5 = vld [vmem:[#allocation9 + $0x498] sm:$0xff]  }
 0x18d   :  { %13915 = vst [vmem:[#allocation37_spill] sm:$0xff] %v13319_v34  ;;  %v13328_v48 = vadd.f32 %v13236_v45, %v964_v3  ;;  %v1254_v9 = vmul.f32 %v13111_v59, %v1072_v12  ;;  %vm1163_vm9 = vcmp.gt.f32.partialorder %v1072_v12, 0.0 }
 0x18e   :  { %13916 = vst [vmem:[#allocation38_spill] sm:$0xff] %v13324_v41  ;;  %v13332_v22 = vadd.f32 %v13265_v49, %v965_v53  ;;  %v1345_v28 = vsel %vm1164_vm8, %v1073_v2, %v1255_v36  ;;  %vm1167_vm8 = vcmp.gt.f32.partialorder %v13131_v15, 0.0 }
 0x18f   :  { %13917 = vst [vmem:[#allocation39_spill] sm:$0xff] %v13328_v48  ;;  %10943 = vmatpush3.bf16.msra.mxu1 %v12012_v37  ;;  %10961 = vmatpush3.bf16.msra.mxu0 %v12021_v60  ;;  %v10785_v37 = vpack.c.bf16 %v1345_v28, %v1345_v28  ;;  %v12028_v28 = vld [vmem:[#allocation9 + $0x4a0] sm:$0xff]  }
 0x190   :  { %13918 = vst [vmem:[#allocation40_spill] sm:$0xff] %v13332_v22  ;;  %v676_v35 = vpop.f32.mrb[32].mxu0  ;;  %10944 = vmatprep.subr.bf16.mxu1 %v12014_v7  ;;  %10962 = vmatprep.subr.bf16.mxu0 %v12023_v32  ;;  %v12022_v32 = vld [vmem:[#allocation9 + $0x478] sm:$0xff]  }
 0x191   :  { %v974_v3 = vmul.f32 %v13232_v30, %v676_v35  ;;  %v678_v38 = vpop.f32.mrb[33].mxu0  ;;  %v12020_v35 = vld [vmem:[#allocation9 + $0x430] sm:$0xff]   ;;  %2741 = vmatprep.mubr.bf16.mxu1 %v10785_v37  ;;  %v857_v37 = vld [vmem:[#allocation7 + $0x10] ss:$2 sm:$0x3] }
 0x192   :  { %v975_v53 = vmul.f32 %v13248_v8, %v678_v38  ;;  %v680_v62 = vpop.f32.mrb[34].mxu0 }
 0x193   :  { %v13339_v16 = vadd.f32 %v13236_v45, %v974_v3  ;;  %v984_v7 = vmul.f32 %v13232_v30, %v680_v62  ;;  %10945 = vmatpush3.bf16.msra.mxu1 %v12016_v46  ;;  %v682_v48 = vpop.f32.mrb[35].mxu0  ;;  %10963 = vmatpush3.bf16.msra.mxu0 %v12025_v5  ;;  %v12030_v3 = vld [vmem:[#allocation9 + $0x4e8] sm:$0xff]   ;;  %v1239_v46 = vmul.f32 %v13111_v59, %v13104_v55  ;;  %v12024_v62 = vld [vmem:[#allocation9 + $0x438] sm:$0xff]  }
 0x194   :  { %v13344_v60 = vadd.f32 %v13265_v49, %v975_v53  ;;  %v985_v2 = vmul.f32 %v13248_v8, %v682_v48  ;;  %10946 = vmatprep.subr.bf16.mxu1 %v12018_v33  ;;  %10964 = vmatprep.subr.bf16.mxu0 %v12026_v18  ;;  %v1344_v53 = vsel %vm1163_vm9, %v1072_v12, %v1254_v9  ;;  %v12027_v33 = vld [vmem:[#allocation9 + $0x40] sm:$0xff]   ;;  %v1003_v18 = vld [vmem:[#allocation7 + $0x11] ss:$2 sm:$0x3]  ;;  %v12034_v12 = vld [vmem:[#allocation9 + $0x4f0] sm:$0xff]   ;;  %vm1172_vm9 = vcmp.gt.f32.partialorder %v13293_v51, 0.0 }
 0x195   :  { %13919 = vst [vmem:[#allocation41_spill] sm:$0xff] %v13339_v16  ;;  %v13348_v36 = vadd.f32 %v13236_v45, %v984_v7  ;;  %v737_v7 = vpop.f32.mrb[24].mxu1  ;;  %v12032_v16 = vld [vmem:[#allocation9 + $0x4a8] sm:$0xff]   ;;  %v1329_v9 = vsel %vm1148_vm10, %v13104_v55, %v1239_v46  ;;  %vm1169_vm10 = vcmp.gt.f32.partialorder %v13160_v56, 0.0 }
 0x196   :  { %13920 = vst [vmem:[#allocation42_spill] sm:$0xff] %v13344_v60  ;;  %v13353_v38 = vadd.f32 %v13265_v49, %v985_v2  ;;  %v10784_v60 = vpack.c.bf16 %v1344_v53, %v1344_v53  ;;  %v10789_v46 = vpack.c.bf16 %v1329_v9, %v1329_v9  ;;  %v12033_v9 = vld [vmem:[#allocation9 + $0x8] sm:$0xff]  }
 0x197   :  { %13921 = vst [vmem:[#allocation43_spill] sm:$0xff] %v13348_v36  ;;  %10947 = vmatpush3.bf16.msra.mxu1 %v12020_v35  ;;  %10965 = vmatpush3.bf16.msra.mxu0 %v12028_v28 }
 0x198   :  { %13922 = vst [vmem:[#allocation44_spill] sm:$0xff] %v13353_v38  ;;  %v686_v48 = vpop.f32.mrb[36].mxu0  ;;  %10948 = vmatprep.subr.bf16.mxu1 %v12022_v32  ;;  %10966 = vmatprep.subr.bf16.mxu0 %v12030_v3  ;;  %v13368_v3 = vrot.slane %v857_v37, %v13073_v39 }
 0x199   :  { %v994_v5 = vmul.f32 %v13232_v30, %v686_v48  ;;  %v688_v36 = vpop.f32.mrb[37].mxu0  ;;  %v936_v30 = vmul.f32 %v13282_v57, %v737_v7  ;;  %v739_v48 = vpop.f32.mrb[25].mxu1  ;;  %v12038_v7 = vld [vmem:[#allocation9 + $0x4f8] sm:$0xff]  }
 0x19a   :  { %v995_v2 = vmul.f32 %v13248_v8, %v688_v36  ;;  %v690_v38 = vpop.f32.mrb[38].mxu0  ;;  %v12031_v36 = vld [vmem:[#allocation9 + $0x48] sm:$0xff]   ;;  %v741_v55 = vpop.f32.mrb[26].mxu1 }
 0x19b   :  { %v13360_v35 = vadd.f32 %v13236_v45, %v994_v5  ;;  %10949 = vmatpush3.bf16.msra.mxu1 %v12024_v62  ;;  %v691_v32 = vpop.f32.mrb[39].mxu0  ;;  %v937_v38 = vmul.f32 %v13310_v54, %v739_v48  ;;  %10967 = vmatpush3.bf16.msra.mxu0 %v12032_v16  ;;  %v12036_v45 = vld [vmem:[#allocation9 + $0x4b0] sm:$0xff]   ;;  %v13371_v53 = vadd.f32 %v13285_v27, %v936_v30  ;;  %v743_v62 = vpop.f32.mrb[27].mxu1 }
 0x19c   :  { %v13364_v28 = vadd.f32 %v13265_v49, %v995_v2  ;;  %10978 = vmatprep.subr.bf16.mxu1 %v12027_v33  ;;  %10968 = vmatprep.subr.bf16.mxu0 %v12034_v12  ;;  %v946_v33 = vmul.f32 %v13282_v57, %v741_v55  ;;  %v913_v2 = vmul.f32 %v13145_v26, %v13120_v4  ;;  %v747_v48 = vpop.f32.mrb[28].mxu1  ;;  %v12040_v4 = vld [vmem:[#allocation9 + $0x4b8] sm:$0xff]  }
 0x19d   :  { %13923 = vst [vmem:[#allocation45_spill] sm:$0xff] %v13360_v35  ;;  %v13374_v5 = vadd.f32 %v13314_v29, %v937_v38  ;;  %v13380_v16 = vrot.slane %v1003_v18, %v13073_v39  ;;  %v947_v32 = vmul.f32 %v13310_v54, %v743_v62  ;;  %v956_v39 = vmul.f32 %v13282_v57, %v747_v48  ;;  %v12037_v35 = vld [vmem:[#allocation9 + $0x10] sm:$0xff]   ;;  %v749_v48 = vpop.f32.mrb[29].mxu1 }
 0x19e   :  { %13924 = vst [vmem:[#allocation46_spill] sm:$0xff] %v13364_v28  ;;  %2742 = vmatmul.mubr.bf16.vlgmr.msra.gmra.mrb[48].mxu1 %v10784_v60  ;;  %v12035_v60 = vld [vmem:[#allocation9 + $0x50] sm:$0xff]   ;;  %v13384_v12 = vadd.f32 %v13285_v27, %v946_v33  ;;  %v1059_v62 = vadd.f32 %v13152_v47, %v913_v2  ;;  %v12039_v28 = vld [vmem:[#allocation9 + $0x58] sm:$0xff]   ;;  %v957_v47 = vmul.f32 %v13310_v54, %v749_v48  ;;  %v751_v2 = vpop.f32.mrb[30].mxu1  ;;  %v12042_v48 = vld [vmem:[#allocation9 + $0x60] sm:$0xff]  }
 0x19f   :  { %10979 = vmatpush3.bf16.msra.mxu1 %v12029_v43  ;;  %3336 = vmatprep.mubr.bf16.mxu1 %v10789_v46  ;;  %v13390_v26 = vadd.f32 %v13314_v29, %v947_v32  ;;  %v13394_v43 = vrot.slane %v857_v37, %v13076_v40  ;;  %v12043_v46 = vld [vmem:[#allocation9 + $0xc0] sm:$0xff]   ;;  %v13402_v32 = vadd.f32 %v13285_v27, %v956_v39 }
 0x1a0   :  { %v808_v30 = vpop.f32.mrb[40].mxu0  ;;  %10980 = vmatprep.subr.bf16.mxu1 %v12031_v36  ;;  %10969 = vmatpush3.bf16.msra.mxu0 %v12036_v45  ;;  %v13405_v37 = vrot.slane %v1003_v18, %v13076_v40  ;;  %v1241_v39 = vmul.f32 %v13111_v59, %v1059_v62  ;;  %v12041_v18 = vld [vmem:[#allocation9 + $0x18] sm:$0xff]   ;;  %vm1150_vm13 = vcmp.gt.f32.partialorder %v1059_v62, 0.0  ;;  %v13415_v22 = vadd.f32 %v13314_v29, %v957_v47 }
 0x1a1   :  { %v918_v38 = vmul.f32 %v13368_v3, %v808_v30  ;;  %v13387_v55 = vpop.f32.mrb[41].mxu0  ;;  %10970 = vmatprep.subr.bf16.mxu0 %v12038_v7  ;;  %13925 = vst [vmem:[#allocation47_spill] sm:$0xff] %v13402_v32 }
 0x1a2   :  { %v812_v36 = vpop.f32.mrb[42].mxu0  ;;  %v1331_v1 = vsel %vm1150_vm13, %v1059_v62, %v1241_v39 }
 0x1a3   :  { %v13398_v33 = vadd.f32 %v13380_v16, %v918_v38  ;;  %v928_v30 = vmul.f32 %v13368_v3, %v812_v36  ;;  %10981 = vmatpush3.bf16.msra.mxu1 %v12033_v9  ;;  %v814_v45 = vpop.f32.mrb[43].mxu0  ;;  %v753_v9 = vpop.f32.mrb[31].mxu1 }
 0x1a4   :  { %v929_v7 = vmul.f32 %v13394_v43, %v814_v45  ;;  %10982 = vmatprep.subr.bf16.mxu1 %v12035_v60  ;;  %10971 = vmatpush3.bf16.msra.mxu0 %v12040_v4  ;;  %v757_v45 = vpop.f32.mrb[32].mxu1  ;;  %v967_v32 = vmul.f32 %v13310_v54, %v753_v9 }
 0x1a5   :  { %v1074_v38 = vadd.f32 %v13380_v16, %v928_v30  ;;  %11000 = vmatprep.subr.bf16.mxu0 %v12043_v46  ;;  %v759_v30 = vpop.f32.mrb[33].mxu1  ;;  %v976_v47 = vmul.f32 %v13282_v57, %v757_v45  ;;  %vm1155_vm6 = vcmp.gt.f32.partialorder %v13398_v33, 0.0 }
 0x1a6   :  { %v1075_v36 = vadd.f32 %v13405_v37, %v929_v7  ;;  %v966_v7 = vmul.f32 %v13282_v57, %v751_v2  ;;  %v761_v34 = vpop.f32.mrb[34].mxu1  ;;  %v12047_v2 = vld [vmem:[#allocation9 + $0xc8] sm:$0xff]  }
 0x1a7   :  { %vm1165_vm11 = vcmp.gt.f32.partialorder %v1074_v38, 0.0  ;;  %v1256_v40 = vmul.f32 %v13111_v59, %v1074_v38  ;;  %10983 = vmatpush3.bf16.msra.mxu1 %v12037_v35  ;;  %v12045_v35 = vld [vmem:[#allocation9 + $0x80] sm:$0xff]   ;;  %v986_v62 = vmul.f32 %v13282_v57, %v761_v34  ;;  %v12050_v34 = vld [vmem:[#allocation9 + $0x70] sm:$0xff]  }
 0x1a8   :  { %v1257_v60 = vmul.f32 %v13111_v59, %v1075_v36  ;;  %10984 = vmatprep.subr.bf16.mxu1 %v12039_v28  ;;  %vm1166_vm12 = vcmp.gt.f32.partialorder %v1075_v36, 0.0  ;;  %v13420_v41 = vadd.f32 %v13285_v27, %v966_v7  ;;  %v12051_v7 = vld [vmem:[#allocation9 + $0xd0] sm:$0xff]  }
 0x1a9   :  { %v1346_v4 = vsel %vm1165_vm11, %v1074_v38, %v1256_v40  ;;  %v977_v38 = vmul.f32 %v13310_v54, %v759_v30  ;;  %v13425_v40 = vadd.f32 %v13314_v29, %v967_v32  ;;  %v12049_v32 = vld [vmem:[#allocation9 + $0x88] sm:$0xff]   ;;  %vm1174_vm11 = vcmp.gt.f32.partialorder %v13374_v5, 0.0 }
 0x1aa   :  { %v1347_v46 = vsel %vm1166_vm12, %v1075_v36, %v1257_v60  ;;  %v10786_v28 = vpack.c.bf16 %v1346_v4, %v1346_v4  ;;  %v763_v36 = vpop.f32.mrb[35].mxu1  ;;  %v12048_v60 = vld [vmem:[#allocation9 + $0x28] sm:$0xff]   ;;  %v13438_v4 = vadd.f32 %v13285_v27, %v986_v62  ;;  %vm1171_vm12 = vcmp.gt.f32.partialorder %v13288_v6, 0.0 }
 0x1ab   :  { %10985 = vmatpush3.bf16.msra.mxu1 %v12041_v18  ;;  %v10787_v0 = vpack.c.bf16 %v1347_v46, %v1347_v46  ;;  %v987_v9 = vmul.f32 %v13310_v54, %v763_v36  ;;  %v767_v39 = vpop.f32.mrb[36].mxu1  ;;  %v10791_v18 = vpack.c.bf16 %v1331_v1, %v1331_v1  ;;  %v13433_v45 = vadd.f32 %v13314_v29, %v977_v38  ;;  %v12054_v38 = vld [vmem:[#allocation9 + $0x78] sm:$0xff]  }
 0x1ac   :  { %10986 = vmatprep.subr.bf16.mxu1 %v12042_v48  ;;  %v13430_v48 = vadd.f32 %v13285_v27, %v976_v47  ;;  %v769_v30 = vpop.f32.mrb[37].mxu1  ;;  %v996_v47 = vmul.f32 %v13282_v57, %v767_v39  ;;  %v12055_v36 = vld [vmem:[#allocation9 + $0xd8] sm:$0xff]   ;;  %v1238_v57 = vmul.f32 %v13111_v59, %v13100_v52  ;;  %v12058_v39 = vld [vmem:[#allocation9 + $0xe0] sm:$0xff]  }
 0x1ad   :  { %2781 = vmatprep.mubr.bf16.mxu0 %v10787_v0  ;;  %v915_v0 = vmul.f32 %v13248_v8, %v13245_v10  ;;  %v13441_v1 = vadd.f32 %v13314_v29, %v987_v9  ;;  %v771_v46 = vpop.f32.mrb[38].mxu1  ;;  %v997_v10 = vmul.f32 %v13310_v54, %v769_v30  ;;  %v12052_v8 = vld [vmem:[#allocation9 + $0x30] sm:$0xff]   ;;  %v12057_v9 = vld [vmem:[#allocation9 + $0x98] sm:$0xff]   ;;  %v12061_v30 = vld [vmem:[#allocation9 + $0x100] sm:$0xff]  }
 0x1ae   :  { %2782 = vmatmul.mubr.bf16.vlgmr.msra.gmra.mrb[64].mxu0 %v10786_v28  ;;  %v772_v28 = vpop.f32.mrb[39].mxu1  ;;  %v13447_v62 = vadd.f32 %v13285_v27, %v996_v47  ;;  %v1328_v27 = vsel %vm1147_vm14, %v13100_v52, %v1238_v57  ;;  %vm1173_vm14 = vcmp.gt.f32.partialorder %v13371_v53, 0.0 }
 0x1af   :  { %10987 = vmatpush3.bf16.msra.mxu1 %v12044_v44  ;;  %11001 = vmatpush3.bf16.msra.mxu0 %v12045_v35  ;;  %v1061_v44 = vadd.f32 %v13265_v49, %v915_v0  ;;  %v12053_v35 = vld [vmem:[#allocation9 + $0x90] sm:$0xff]   ;;  %v10788_v46 = vpack.c.bf16 %v1328_v27, %v1328_v27 }
 0x1b0   :  { %3376 = vmatprep.mubr.bf16.mxu0 %v10791_v18  ;;  %10988 = vmatprep.subr.bf16.mxu1 %v12046_v19  ;;  %13926 = vst [vmem:[#allocation48_spill] sm:$0xff] %v13447_v62  ;;  %v13450_v19 = vadd.f32 %v13314_v29, %v997_v10  ;;  %v12059_v18 = vld [vmem:[#allocation9 + $0x140] sm:$0xff]  }
 0x1b1   :  { %11002 = vmatprep.subr.bf16.mxu0 %v12047_v2  ;;  %v1243_v49 = vmul.f32 %v13111_v59, %v1061_v44  ;;  %v12056_v2 = vld [vmem:[#allocation9 + $0x38] sm:$0xff]   ;;  %vm1152_vm15 = vcmp.gt.f32.partialorder %v1061_v44, 0.0 }
 0x1b2   :  { %13927 = vst [vmem:[#allocation49_spill] sm:$0xff] %v13450_v19 }
 0x1b3   :  { %10989 = vmatpush3.bf16.msra.mxu1 %v12048_v60  ;;  %11003 = vmatpush3.bf16.msra.mxu0 %v12049_v32  ;;  %v12060_v60 = vld [vmem:[#allocation9 + $0xa0] sm:$0xff]   ;;  %v1333_v0 = vsel %vm1152_vm15, %v1061_v44, %v1243_v49  ;;  %v12062_v32 = vld [vmem:[#allocation9 + $0xe8] sm:$0xff]   ;;  %v917_v44 = vmul.f32 %v13310_v54, %v13276_v42  ;;  %v12068_v54 = vld [vmem:[#allocation9 + $0xb0] sm:$0xff]   ;;  %vm1178_vm15 = vcmp.gt.f32.partialorder %v13142_v25, 0.0 }
 0x1b4   :  { %10990 = vmatprep.subr.bf16.mxu1 %v12050_v34  ;;  %11004 = vmatprep.subr.bf16.mxu0 %v12051_v7  ;;  %v818_v34 = vpop.f32.mrb[44].mxu0  ;;  %v12063_v7 = vld [vmem:[#allocation9 + $0x148] sm:$0xff]  }
 0x1b5   :  { %v938_v28 = vmul.f32 %v13368_v3, %v818_v34  ;;  %v820_v47 = vpop.f32.mrb[45].mxu0  ;;  %v1063_v42 = vadd.f32 %v13314_v29, %v917_v44  ;;  %v12071_v34 = vld [vmem:[#allocation9 + $0x158] sm:$0xff]   ;;  %v1240_v29 = vmul.f32 %v13111_v59, %v13128_v13 }
 0x1b6   :  { %v939_v10 = vmul.f32 %v13394_v43, %v820_v47  ;;  %v12073_v44 = vld [vmem:[#allocation9 + $0x118] sm:$0xff]  }
 0x1b7   :  { %10991 = vmatpush3.bf16.msra.mxu1 %v12052_v8  ;;  %11005 = vmatpush3.bf16.msra.mxu0 %v12053_v35  ;;  %v10793_v8 = vpack.c.bf16 %v1333_v0, %v1333_v0  ;;  %v12064_v35 = vld [vmem:[#allocation9 + $0xa8] sm:$0xff]   ;;  %v13460_v52 = vadd.f32 %v13380_v16, %v938_v28  ;;  %vm1154_vm1 = vcmp.gt.f32.partialorder %v1063_v42, 0.0 }
 0x1b8   :  { %10992 = vmatprep.subr.bf16.mxu1 %v12054_v38  ;;  %11006 = vmatprep.subr.bf16.mxu0 %v12055_v36  ;;  %v822_v38 = vpop.f32.mrb[46].mxu0  ;;  %v12065_v36 = vld [vmem:[#allocation9 + $0x108] sm:$0xff]   ;;  %v13465_v57 = vadd.f32 %v13405_v37, %v939_v10 }
 0x1b9   :  { %v948_v49 = vmul.f32 %v13368_v3, %v822_v38  ;;  %v12072_v38 = vld [vmem:[#allocation9 + $0xb8] sm:$0xff]  }
 0x1ba   :  { %vm1176_vm13 = vcmp.gt.f32.partialorder %v13465_v57, 0.0 }
 0x1bb   :  { %10993 = vmatpush3.bf16.msra.mxu1 %v12056_v2  ;;  %11007 = vmatpush3.bf16.msra.mxu0 %v12057_v9  ;;  %v12066_v2 = vld [vmem:[#allocation9 + $0xf0] sm:$0xff]  }
 0x1bc   :  { %11008 = vmatprep.subr.bf16.mxu0 %v12058_v39  ;;  %11022 = vmatprep.subr.bf16.mxu1 %v12059_v18  ;;  %v12067_v9 = vld [vmem:[#allocation9 + $0x150] sm:$0xff]   ;;  %v824_v39 = vpop.f32.mrb[47].mxu0  ;;  %v13469_v18 = vadd.f32 %v13380_v16, %v948_v49 }
 0x1bd   :  { %v949_v27 = vmul.f32 %v13394_v43, %v824_v39  ;;  %v828_v0 = vpop.f32.mrb[48].mxu0 }
 0x1be   :  { %3337 = vmatmul.mubr.bf16.vlgmr.msra.gmra.mrb[52].mxu1 %v10788_v46  ;;  %v958_v46 = vmul.f32 %v13368_v3, %v828_v0  ;;  %v12077_v0 = vld [vmem:[#allocation9 + $0x180] sm:$0xff]  }
 0x1bf   :  { %11009 = vmatpush3.bf16.msra.mxu0 %v12060_v60  ;;  %11023 = vmatpush3.bf16.msra.mxu1 %v12061_v30  ;;  %v12069_v60 = vld [vmem:[#allocation9 + $0x110] sm:$0xff]   ;;  %v13474_v30 = vadd.f32 %v13405_v37, %v949_v27 }
 0x1c0   :  { %3416 = vmatprep.mubr.bf16.mxu1 %v10793_v8  ;;  %11010 = vmatprep.subr.bf16.mxu0 %v12062_v32  ;;  %v12070_v32 = vld [vmem:[#allocation9 + $0xf8] sm:$0xff]   ;;  %v13482_v10 = vadd.f32 %v13380_v16, %v958_v46 }
 0x1c1   :  { %11024 = vmatprep.subr.bf16.mxu1 %v12063_v7  ;;  %v830_v7 = vpop.f32.mrb[49].mxu0 }
 0x1c2   :  { %v959_v28 = vmul.f32 %v13394_v43, %v830_v7  ;;  %v832_v47 = vpop.f32.mrb[50].mxu0 }
 0x1c3   :  { %11011 = vmatpush3.bf16.msra.mxu0 %v12064_v35  ;;  %11025 = vmatpush3.bf16.msra.mxu1 %v12065_v36  ;;  %v968_v8 = vmul.f32 %v13368_v3, %v832_v47  ;;  %v1245_v35 = vmul.f32 %v13111_v59, %v1063_v42  ;;  %v834_v49 = vpop.f32.mrb[51].mxu0  ;;  %v12079_v47 = vld [vmem:[#allocation9 + $0x1c8] sm:$0xff]  }
 0x1c4   :  { %11012 = vmatprep.subr.bf16.mxu0 %v12066_v2  ;;  %11026 = vmatprep.subr.bf16.mxu1 %v12067_v9  ;;  %v13487_v36 = vadd.f32 %v13405_v37, %v959_v28  ;;  %v12074_v2 = vld [vmem:[#allocation9 + $0x160] sm:$0xff]   ;;  %v969_v27 = vmul.f32 %v13394_v43, %v834_v49  ;;  %v838_v7 = vpop.f32.mrb[52].mxu0 }
 0x1c5   :  { %v12075_v9 = vld [vmem:[#allocation9 + $0x1c0] sm:$0xff]   ;;  %v13490_v39 = vadd.f32 %v13380_v16, %v968_v8  ;;  %v840_v8 = vpop.f32.mrb[53].mxu0  ;;  %v978_v49 = vmul.f32 %v13368_v3, %v838_v7  ;;  %v12085_v7 = vld [vmem:[#allocation9 + $0x190] sm:$0xff]  }
 0x1c6   :  { %v13497_v46 = vadd.f32 %v13405_v37, %v969_v27  ;;  %v979_v62 = vmul.f32 %v13394_v43, %v840_v8  ;;  %v12080_v27 = vld [vmem:[#allocation9 + $0x128] sm:$0xff]  }
 0x1c7   :  { %11013 = vmatpush3.bf16.msra.mxu0 %v12068_v54  ;;  %11027 = vmatpush3.bf16.msra.mxu1 %v12069_v60  ;;  %v1330_v54 = vsel %vm1149_vm0, %v13128_v13, %v1240_v29  ;;  %v12076_v60 = vld [vmem:[#allocation9 + $0x120] sm:$0xff]   ;;  %v919_v13 = vmul.f32 %v13394_v43, %v13387_v55  ;;  %vm1175_vm0 = vcmp.gt.f32.partialorder %v13460_v52, 0.0 }
 0x1c8   :  { %11014 = vmatprep.subr.bf16.mxu0 %v12070_v32  ;;  %11028 = vmatprep.subr.bf16.mxu1 %v12071_v34  ;;  %v1335_v32 = vsel %vm1154_vm1, %v1063_v42, %v1245_v35  ;;  %v12078_v34 = vld [vmem:[#allocation9 + $0x168] sm:$0xff]   ;;  %v10790_v28 = vpack.c.bf16 %v1330_v54, %v1330_v54  ;;  %v12082_v42 = vld [vmem:[#allocation9 + $0x170] sm:$0xff]   ;;  %v13504_v35 = vadd.f32 %v13380_v16, %v978_v49  ;;  %vm1180_vm1 = vcmp.gt.f32.partialorder %v13191_v31, 0.0 }
 0x1c9   :  { %v10795_v29 = vpack.c.bf16 %v1335_v32, %v1335_v32  ;;  %v12083_v54 = vld [vmem:[#allocation9 + $0x1d0] sm:$0xff]   ;;  %v1065_v8 = vadd.f32 %v13405_v37, %v919_v13 }
 0x1ca   :  { %v12084_v32 = vld [vmem:[#allocation9 + $0x130] sm:$0xff]  }
 0x1cb   :  { %11015 = vmatpush3.bf16.msra.mxu0 %v12072_v38  ;;  %11029 = vmatpush3.bf16.msra.mxu1 %v12073_v44  ;;  %v12081_v38 = vld [vmem:[#allocation9 + $0x188] sm:$0xff]   ;;  %v842_v44 = vpop.f32.mrb[54].mxu0  ;;  %v1247_v13 = vmul.f32 %v13111_v59, %v1065_v8  ;;  %vm1156_vm3 = vcmp.gt.f32.partialorder %v1065_v8, 0.0 }
 0x1cc   :  { %11030 = vmatprep.subr.bf16.mxu1 %v12074_v2  ;;  %11044 = vmatprep.subr.bf16.mxu0 %v12075_v9  ;;  %v13507_v2 = vadd.f32 %v13405_v37, %v979_v62  ;;  %v988_v9 = vmul.f32 %v13368_v3, %v842_v44  ;;  %v844_v55 = vpop.f32.mrb[55].mxu0  ;;  %v12087_v62 = vld [vmem:[#allocation9 + $0x1d8] sm:$0xff]  }
 0x1cd   :  { %v848_v49 = vpop.f32.mrb[56].mxu0  ;;  %v12089_v44 = vld [vmem:[#allocation9 + $0x198] sm:$0xff]  }
 0x1ce   :  { %3377 = vmatmul.mubr.bf16.vlgmr.msra.gmra.mrb[68].mxu0 %v10790_v28  ;;  %v13511_v28 = vadd.f32 %v13380_v16, %v988_v9  ;;  %v998_v9 = vmul.f32 %v13368_v3, %v848_v49  ;;  %v12092_v49 = vld [vmem:[#allocation9 + $0x1a0] sm:$0xff]  }
 0x1cf   :  { %11031 = vmatpush3.bf16.msra.mxu1 %v12076_v60  ;;  %11045 = vmatpush3.bf16.msra.mxu0 %v12077_v0  ;;  %v12086_v60 = vld [vmem:[#allocation9 + $0x178] sm:$0xff]   ;;  %v989_v0 = vmul.f32 %v13394_v43, %v844_v55  ;;  %v850_v55 = vpop.f32.mrb[57].mxu0 }
 0x1d0   :  { %3456 = vmatprep.mubr.bf16.mxu0 %v10795_v29  ;;  %11032 = vmatprep.subr.bf16.mxu1 %v12078_v34  ;;  %13928 = vst [vmem:[#allocation50_spill] sm:$0xff] %v13511_v28  ;;  %v12088_v29 = vld [vmem:[#allocation9 + $0x138] sm:$0xff]   ;;  %v12093_v28 = vld [vmem:[#allocation9 + $0x200] sm:$0xff]  }
 0x1d1   :  { %11046 = vmatprep.subr.bf16.mxu0 %v12079_v47  ;;  %v13516_v34 = vadd.f32 %v13405_v37, %v989_v0  ;;  %v1242_v47 = vmul.f32 %v13111_v59, %v13260_v11  ;;  %v13525_v0 = vadd.f32 %v13380_v16, %v998_v9  ;;  %v12097_v9 = vld [vmem:[#allocation9 + $0x208] sm:$0xff]  }
 0x1d3   :  { %11033 = vmatpush3.bf16.msra.mxu1 %v12080_v27  ;;  %11047 = vmatpush3.bf16.msra.mxu0 %v12081_v38  ;;  %v12090_v27 = vld [vmem:[#allocation9 + $0x1e0] sm:$0xff]   ;;  %v1332_v3 = vsel %vm1151_vm2, %v13260_v11, %v1242_v47  ;;  %v12098_v11 = vld [vmem:[#allocation9 + $0x1f0] sm:$0xff]   ;;  %vm1177_vm2 = vcmp.gt.f32.partialorder %v13139_v24, 0.0 }
 0x1d4   :  { %11034 = vmatprep.subr.bf16.mxu1 %v12082_v42  ;;  %11048 = vmatprep.subr.bf16.mxu0 %v12083_v54  ;;  %v12091_v38 = vld [vmem:[#allocation9 + $0x240] sm:$0xff]   ;;  %v999_v42 = vmul.f32 %v13394_v43, %v850_v55  ;;  %v852_v54 = vpop.f32.mrb[58].mxu0  ;;  %v1337_v43 = vsel %vm1156_vm3, %v1065_v8, %v1247_v13  ;;  %v12099_v47 = vld [vmem:[#allocation9 + $0x250] sm:$0xff]   ;;  %v12102_v8 = vld [vmem:[#allocation9 + $0x1f8] sm:$0xff]   ;;  %v1244_v55 = vmul.f32 %v13111_v59, %v13307_v20  ;;  %vm1182_vm3 = vcmp.gt.f32.partialorder %v13301_v14, 0.0 }
 0x1d5   :  { %v853_v19 = vpop.f32.mrb[59].mxu0  ;;  %v10797_v16 = vpack.c.bf16 %v1337_v43, %v1337_v43  ;;  %v12104_v13 = vld [vmem:[#allocation9 + $0x1b8] sm:$0xff]  }
 0x1d6   :  { %v12096_v19 = vld [vmem:[#allocation9 + $0x1a8] sm:$0xff]   ;;  %v1334_v54 = vsel %vm1153_vm4, %v13307_v20, %v1244_v55  ;;  %v12116_v20 = vld [vmem:[#allocation9 + $0x230] sm:$0xff]   ;;  %v12120_v55 = vld [vmem:[#allocation9 + $0x238] sm:$0xff]   ;;  %vm1179_vm4 = vcmp.gt.f32.partialorder %v13184_v23, 0.0 }
 0x1d7   :  { %11035 = vmatpush3.bf16.msra.mxu1 %v12084_v32  ;;  %11049 = vmatpush3.bf16.msra.mxu0 %v12085_v7  ;;  %v13531_v32 = vadd.f32 %v13405_v37, %v999_v42  ;;  %v12094_v7 = vld [vmem:[#allocation9 + $0x1e8] sm:$0xff]   ;;  %v12100_v37 = vld [vmem:[#allocation9 + $0x1b0] sm:$0xff]   ;;  %v12107_v42 = vld [vmem:[#allocation9 + $0x540] sm:$0xff]  }
 0x1d8   :  { %11036 = vmatprep.subr.bf16.mxu1 %v12086_v60  ;;  %11050 = vmatprep.subr.bf16.mxu0 %v12087_v62  ;;  %v10792_v60 = vpack.c.bf16 %v1332_v3, %v1332_v3  ;;  %v12095_v62 = vld [vmem:[#allocation9 + $0x248] sm:$0xff]   ;;  %v12108_v3 = vld [vmem:[#allocation9 + $0x220] sm:$0xff]  }
 0x1db   :  { %11037 = vmatpush3.bf16.msra.mxu1 %v12088_v29  ;;  %11051 = vmatpush3.bf16.msra.mxu0 %v12089_v44  ;;  %v12101_v29 = vld [vmem:[#allocation9 + $0x210] sm:$0xff]   ;;  %v12103_v44 = vld [vmem:[#allocation9 + $0x258] sm:$0xff]  }
 0x1dc   :  { %11052 = vmatprep.subr.bf16.mxu0 %v12090_v27  ;;  %11066 = vmatprep.subr.bf16.mxu1 %v12091_v38  ;;  %v12105_v27 = vld [vmem:[#allocation9 + $0x218] sm:$0xff]   ;;  %v12106_v38 = vld [vmem:[#allocation9 + $0x260] sm:$0xff]  }
 0x1de   :  { %3417 = vmatmul.mubr.bf16.vlgmr.msra.gmra.mrb[56].mxu1 %v10792_v60  ;;  %v12111_v60 = vld [vmem:[#allocation9 + $0x548] sm:$0xff]  }
 0x1df   :  { %11053 = vmatpush3.bf16.msra.mxu0 %v12092_v49  ;;  %11067 = vmatpush3.bf16.msra.mxu1 %v12093_v28  ;;  %v1259_v28 = vmul.f32 %v13111_v59, %v13135_v21  ;;  %v12109_v49 = vld [vmem:[#allocation9 + $0x500] sm:$0xff]  }
 0x1e0   :  { %3496 = vmatprep.mubr.bf16.mxu1 %v10797_v16  ;;  %11054 = vmatprep.subr.bf16.mxu0 %v12094_v7  ;;  %v12110_v7 = vld [vmem:[#allocation9 + $0x268] sm:$0xff]  }
 0x1e1   :  { %11068 = vmatprep.subr.bf16.mxu1 %v12095_v62  ;;  %v1349_v43 = vsel %vm1168_vm5, %v13135_v21, %v1259_v28  ;;  %v10794_v62 = vpack.c.bf16 %v1334_v54, %v1334_v54  ;;  %v1246_v21 = vmul.f32 %v13111_v59, %v13398_v33  ;;  %v12121_v28 = vld [vmem:[#allocation9 + $0x518] sm:$0xff]   ;;  %v12125_v54 = vld [vmem:[#allocation9 + $0x580] sm:$0xff]   ;;  %vm1184_vm5 = vcmp.gt.f32.partialorder %v13390_v26, 0.0 }
 0x1e2   :  { %v10799_v16 = vpack.c.bf16 %v1349_v43, %v1349_v43 }
 0x1e3   :  { %11055 = vmatpush3.bf16.msra.mxu0 %v12096_v19  ;;  %11069 = vmatpush3.bf16.msra.mxu1 %v12097_v9  ;;  %v12112_v19 = vld [vmem:[#allocation9 + $0x228] sm:$0xff]  }
 0x1e4   :  { %11056 = vmatprep.subr.bf16.mxu0 %v12098_v11  ;;  %11070 = vmatprep.subr.bf16.mxu1 %v12099_v47  ;;  %v12113_v9 = vld [vmem:[#allocation9 + $0x508] sm:$0xff]   ;;  %v12114_v11 = vld [vmem:[#allocation9 + $0x270] sm:$0xff]  }
 0x1e5   :  { %v12115_v47 = vld [vmem:[#allocation9 + $0x550] sm:$0xff]  }
 0x1e7   :  { %11057 = vmatpush3.bf16.msra.mxu0 %v12100_v37  ;;  %11071 = vmatpush3.bf16.msra.mxu1 %v12101_v29  ;;  %v12117_v37 = vld [vmem:[#allocation9 + $0x510] sm:$0xff]   ;;  %v12118_v29 = vld [vmem:[#allocation9 + $0x278] sm:$0xff]  }
 0x1e8   :  { %11058 = vmatprep.subr.bf16.mxu0 %v12102_v8  ;;  %11072 = vmatprep.subr.bf16.mxu1 %v12103_v44  ;;  %v12119_v8 = vld [vmem:[#allocation9 + $0x558] sm:$0xff]   ;;  %v1261_v44 = vmul.f32 %v13111_v59, %v13167_v63 }
 0x1eb   :  { %11059 = vmatpush3.bf16.msra.mxu0 %v12104_v13  ;;  %11073 = vmatpush3.bf16.msra.mxu1 %v12105_v27  ;;  %v12122_v13 = vld [vmem:[#allocation9 + $0x560] sm:$0xff]  }
 0x1ec   :  { %11074 = vmatprep.subr.bf16.mxu1 %v12106_v38  ;;  %11088 = vmatprep.subr.bf16.mxu0 %v12107_v42  ;;  %v12123_v27 = vld [vmem:[#allocation9 + $0x5c0] sm:$0xff]   ;;  %v1336_v38 = vsel %vm1155_vm6, %v13398_v33, %v1246_v21  ;;  %v12132_v33 = vld [vmem:[#allocation9 + $0x530] sm:$0xff]   ;;  %vm1181_vm6 = vcmp.gt.f32.partialorder %v13298_v61, 0.0 }
 0x1ed   :  { %v12124_v42 = vld [vmem:[#allocation9 + $0x520] sm:$0xff]   ;;  %v10796_v43 = vpack.c.bf16 %v1336_v38, %v1336_v38 }
 0x1ee   :  { %3457 = vmatmul.mubr.bf16.vlgmr.msra.gmra.mrb[72].mxu0 %v10794_v62  ;;  %v12128_v62 = vld [vmem:[#allocation9 + $0x528] sm:$0xff]   ;;  %v12138_v21 = vld [vmem:[#allocation9 + $0x5e0] sm:$0xff]  }
 0x1ef   :  { %11075 = vmatpush3.bf16.msra.mxu1 %v12108_v3  ;;  %11089 = vmatpush3.bf16.msra.mxu0 %v12109_v49  ;;  %v12126_v3 = vld [vmem:[#allocation9 + $0x568] sm:$0xff]   ;;  %v1351_v49 = vsel %vm1170_vm7, %v13167_v63, %v1261_v44  ;;  %v1258_v63 = vmul.f32 %v13111_v59, %v13131_v15  ;;  %v12139_v44 = vld [vmem:[#allocation9 + $0x640] sm:$0xff]   ;;  %vm1186_vm7 = vcmp.gt.f32.partialorder %v13474_v30, 0.0 }
 0x1f0   :  { %4217 = vmatprep.mubr.bf16.mxu0 %v10799_v16  ;;  %11076 = vmatprep.subr.bf16.mxu1 %v12110_v7  ;;  %v12127_v7 = vld [vmem:[#allocation9 + $0x5c8] sm:$0xff]  }
 0x1f1   :  { %11090 = vmatprep.subr.bf16.mxu0 %v12111_v60  ;;  %v10801_v60 = vpack.c.bf16 %v1351_v49, %v1351_v49  ;;  %v12129_v16 = vld [vmem:[#allocation9 + $0x588] sm:$0xff]  }
 0x1f2   :  { %v12144_v49 = vld [vmem:[#allocation9 + $0x5a8] sm:$0xff]  }
 0x1f3   :  { %11077 = vmatpush3.bf16.msra.mxu1 %v12112_v19  ;;  %11091 = vmatpush3.bf16.msra.mxu0 %v12113_v9  ;;  %v12130_v19 = vld [vmem:[#allocation9 + $0x570] sm:$0xff]  }
 0x1f4   :  { %11078 = vmatprep.subr.bf16.mxu1 %v12114_v11  ;;  %11092 = vmatprep.subr.bf16.mxu0 %v12115_v47  ;;  %v12131_v9 = vld [vmem:[#allocation9 + $0x5d0] sm:$0xff]   ;;  %v12134_v47 = vld [vmem:[#allocation9 + $0x578] sm:$0xff]  }
 0x1f5   :  { %v12133_v11 = vld [vmem:[#allocation9 + $0x590] sm:$0xff]  }
 0x1f7   :  { %11079 = vmatpush3.bf16.msra.mxu1 %v12116_v20  ;;  %11093 = vmatpush3.bf16.msra.mxu0 %v12117_v37  ;;  %v12135_v20 = vld [vmem:[#allocation9 + $0x5d8] sm:$0xff]   ;;  %v1263_v37 = vmul.f32 %v13111_v59, %v13293_v51 }
 0x1f8   :  { %11080 = vmatprep.subr.bf16.mxu1 %v12118_v29  ;;  %11094 = vmatprep.subr.bf16.mxu0 %v12119_v8  ;;  %v12136_v29 = vld [vmem:[#allocation9 + $0x538] sm:$0xff]  }
 0x1f9   :  { %v12137_v8 = vld [vmem:[#allocation9 + $0x598] sm:$0xff]   ;;  %v1353_v38 = vsel %vm1172_vm9, %v13293_v51, %v1263_v37  ;;  %v1260_v51 = vmul.f32 %v13111_v59, %v13160_v56  ;;  %v12156_v37 = vld [vmem:[#allocation9 + $0x620] sm:$0xff]   ;;  %vm1188_vm9 = vcmp.gt.f32.partialorder %v13163_v58, 0.0 }
 0x1fb   :  { %11081 = vmatpush3.bf16.msra.mxu1 %v12120_v55  ;;  %11095 = vmatpush3.bf16.msra.mxu0 %v12121_v28  ;;  %v1348_v55 = vsel %vm1167_vm8, %v13131_v15, %v1258_v63  ;;  %v12140_v28 = vld [vmem:[#allocation9 + $0x5a0] sm:$0xff]   ;;  %v12148_v15 = vld [vmem:[#allocation9 + $0x5b0] sm:$0xff]   ;;  %v1350_v63 = vsel %vm1169_vm10, %v13160_v56, %v1260_v51  ;;  %vm1183_vm8 = vcmp.gt.f32.partialorder %v13384_v12, 0.0  ;;  %vm1185_vm10 = vcmp.gt.f32.partialorder %v13469_v18, 0.0 }
 0x1fc   :  { %11096 = vmatprep.subr.bf16.mxu0 %v12122_v13  ;;  %11110 = vmatprep.subr.bf16.mxu1 %v12123_v27  ;;  %v12141_v13 = vld [vmem:[#allocation9 + $0x600] sm:$0xff]   ;;  %v12142_v27 = vld [vmem:[#allocation9 + $0x5e8] sm:$0xff]   ;;  %v12164_v56 = vld [vmem:[#allocation9 + $0x630] sm:$0xff]  }
 0x1fd   :  { %v12173_v51 = vld [vmem:[#allocation9 + $0x700] sm:$0xff]  }
 0x1fe   :  { %3497 = vmatmul.mubr.bf16.vlgmr.msra.gmra.mrb[60].mxu1 %v10796_v43  ;;  %v12146_v43 = vld [vmem:[#allocation9 + $0x5f0] sm:$0xff]  }
 0x1ff   :  { %11097 = vmatpush3.bf16.msra.mxu0 %v12124_v42  ;;  %11111 = vmatpush3.bf16.msra.mxu1 %v12125_v54  ;;  %v12143_v42 = vld [vmem:[#allocation9 + $0x648] sm:$0xff]   ;;  %v10798_v54 = vpack.c.bf16 %v1348_v55, %v1348_v55 }
 0x200   :  { %4257 = vmatprep.mubr.bf16.mxu1 %v10801_v60  ;;  %11098 = vmatprep.subr.bf16.mxu0 %v12126_v3  ;;  %v10803_v3 = vpack.c.bf16 %v1353_v38, %v1353_v38  ;;  %v12147_v60 = vld [vmem:[#allocation9 + $0x650] sm:$0xff]   ;;  %v12159_v55 = vld [vmem:[#allocation9 + $0x6c8] sm:$0xff]  }
 0x201   :  { %11112 = vmatprep.subr.bf16.mxu1 %v12127_v7  ;;  %v12145_v7 = vld [vmem:[#allocation9 + $0x608] sm:$0xff]   ;;  %v12162_v38 = vld [vmem:[#allocation9 + $0x670] sm:$0xff]  }
 0x203   :  { %11099 = vmatpush3.bf16.msra.mxu0 %v12128_v62  ;;  %11113 = vmatpush3.bf16.msra.mxu1 %v12129_v16  ;;  %v12149_v62 = vld [vmem:[#allocation9 + $0x610] sm:$0xff]   ;;  %v12150_v16 = vld [vmem:[#allocation9 + $0x5f8] sm:$0xff]  }
 0x204   :  { %11100 = vmatprep.subr.bf16.mxu0 %v12130_v19  ;;  %11114 = vmatprep.subr.bf16.mxu1 %v12131_v9  ;;  %v12151_v19 = vld [vmem:[#allocation9 + $0x658] sm:$0xff]   ;;  %v1265_v9 = vmul.f32 %v13111_v59, %v13374_v5 }
 0x207   :  { %11101 = vmatpush3.bf16.msra.mxu0 %v12132_v33  ;;  %11115 = vmatpush3.bf16.msra.mxu1 %v12133_v11  ;;  %v12152_v33 = vld [vmem:[#allocation9 + $0x5b8] sm:$0xff]  }
 0x208   :  { %11102 = vmatprep.subr.bf16.mxu0 %v12134_v47  ;;  %11116 = vmatprep.subr.bf16.mxu1 %v12135_v20  ;;  %v12153_v11 = vld [vmem:[#allocation9 + $0x618] sm:$0xff]   ;;  %v12154_v47 = vld [vmem:[#allocation9 + $0x660] sm:$0xff]  }
 0x209   :  { %v12155_v20 = vld [vmem:[#allocation9 + $0x6c0] sm:$0xff]  }
 0x20b   :  { %11103 = vmatpush3.bf16.msra.mxu0 %v12136_v29  ;;  %11117 = vmatpush3.bf16.msra.mxu1 %v12137_v8  ;;  %v12157_v29 = vld [vmem:[#allocation9 + $0x680] sm:$0xff]   ;;  %v1355_v8 = vsel %vm1174_vm11, %v13374_v5, %v1265_v9  ;;  %v12166_v5 = vld [vmem:[#allocation9 + $0x678] sm:$0xff]   ;;  %v12174_v9 = vld [vmem:[#allocation9 + $0x6e8] sm:$0xff]   ;;  %vm1190_vm11 = vcmp.gt.f32.partialorder %v13219_v17, 0.0 }
 0x20c   :  { %11118 = vmatprep.subr.bf16.mxu1 %v12138_v21  ;;  %11132 = vmatprep.subr.bf16.mxu0 %v12139_v44  ;;  %v12158_v21 = vld [vmem:[#allocation9 + $0x668] sm:$0xff]   ;;  %v10800_v44 = vpack.c.bf16 %v1350_v63, %v1350_v63 }
 0x20d   :  { %v12176_v63 = vld [vmem:[#allocation9 + $0x6a8] sm:$0xff]  }
 0x20e   :  { %4218 = vmatmul.mubr.bf16.vlgmr.msra.gmra.mrb[76].mxu0 %v10798_v54  ;;  %v12165_v54 = vld [vmem:[#allocation9 + $0x690] sm:$0xff]  }
 0x20f   :  { %11119 = vmatpush3.bf16.msra.mxu1 %v12140_v28  ;;  %11133 = vmatpush3.bf16.msra.mxu0 %v12141_v13  ;;  %v10805_v28 = vpack.c.bf16 %v1355_v8, %v1355_v8  ;;  %v12160_v13 = vld [vmem:[#allocation9 + $0x628] sm:$0xff]   ;;  %v12179_v8 = vld [vmem:[#allocation9 + $0x750] sm:$0xff]  }
 0x210   :  { %4297 = vmatprep.mubr.bf16.mxu0 %v10803_v3  ;;  %11120 = vmatprep.subr.bf16.mxu1 %v12142_v27  ;;  %v12161_v27 = vld [vmem:[#allocation9 + $0x688] sm:$0xff]   ;;  %v12167_v3 = vld [vmem:[#allocation9 + $0x6d8] sm:$0xff]  }
 0x211   :  { %11134 = vmatprep.subr.bf16.mxu0 %v12143_v42  ;;  %v12163_v42 = vld [vmem:[#allocation9 + $0x6d0] sm:$0xff]  }
 0x213   :  { %11121 = vmatpush3.bf16.msra.mxu1 %v12144_v49  ;;  %11135 = vmatpush3.bf16.msra.mxu0 %v12145_v7  ;;  %v1262_v49 = vmul.f32 %v13111_v59, %v13288_v6  ;;  %v1267_v7 = vmul.f32 %v13111_v59, %v13465_v57 }
 0x214   :  { %11122 = vmatprep.subr.bf16.mxu1 %v12146_v43  ;;  %11136 = vmatprep.subr.bf16.mxu0 %v12147_v60  ;;  %v12168_v43 = vld [vmem:[#allocation9 + $0x638] sm:$0xff]  }
 0x215   :  { %v12169_v60 = vld [vmem:[#allocation9 + $0x698] sm:$0xff]  }
 0x217   :  { %11123 = vmatpush3.bf16.msra.mxu1 %v12148_v15  ;;  %11137 = vmatpush3.bf16.msra.mxu0 %v12149_v62  ;;  %v12170_v15 = vld [vmem:[#allocation9 + $0x6e0] sm:$0xff]  }
 0x218   :  { %11124 = vmatprep.subr.bf16.mxu1 %v12150_v16  ;;  %11138 = vmatprep.subr.bf16.mxu0 %v12151_v19  ;;  %v12171_v62 = vld [vmem:[#allocation9 + $0x740] sm:$0xff]   ;;  %v1352_v16 = vsel %vm1171_vm12, %v13288_v6, %v1262_v49  ;;  %vm1187_vm12 = vcmp.gt.f32.partialorder %v13156_v50, 0.0 }
 0x219   :  { %v12172_v19 = vld [vmem:[#allocation9 + $0x6a0] sm:$0xff]  }
 0x21a   :  { %v12187_v49 = vld [vmem:[#allocation9 + $0x7c0] sm:$0xff]  }
 0x21b   :  { %11125 = vmatpush3.bf16.msra.mxu1 %v12152_v33  ;;  %11139 = vmatpush3.bf16.msra.mxu0 %v12153_v11  ;;  %v1357_v33 = vsel %vm1176_vm13, %v13465_v57, %v1267_v7  ;;  %v12175_v11 = vld [vmem:[#allocation9 + $0x748] sm:$0xff]  }
 0x21c   :  { %11140 = vmatprep.subr.bf16.mxu0 %v12154_v47  ;;  %11154 = vmatprep.subr.bf16.mxu1 %v12155_v20  ;;  %v10802_v47 = vpack.c.bf16 %v1352_v16, %v1352_v16  ;;  %v10807_v20 = vpack.c.bf16 %v1357_v33, %v1357_v33  ;;  %v12191_v16 = vld [vmem:[#allocation9 + $0x7c8] sm:$0xff]  }
 0x21d   :  { %v12193_v33 = vld [vmem:[#allocation9 + $0x788] sm:$0xff]  }
 0x21e   :  { %4258 = vmatmul.mubr.bf16.vlgmr.msra.gmra.mrb[64].mxu1 %v10800_v44  ;;  %v12181_v44 = vld [vmem:[#allocation9 + $0x710] sm:$0xff]  }
 0x21f   :  { %11141 = vmatpush3.bf16.msra.mxu0 %v12156_v37  ;;  %11155 = vmatpush3.bf16.msra.mxu1 %v12157_v29  ;;  %v12177_v37 = vld [vmem:[#allocation9 + $0x708] sm:$0xff]   ;;  %v12178_v29 = vld [vmem:[#allocation9 + $0x6f0] sm:$0xff]  }
 0x220   :  { %11142 = vmatprep.subr.bf16.mxu0 %v12158_v21  ;;  %11156 = vmatprep.subr.bf16.mxu1 %v12159_v55  ;;  %v12180_v21 = vld [vmem:[#allocation9 + $0x6b0] sm:$0xff]  }
 0x221   :  { %4337 = vmatprep.mubr.bf16.mxu1 %v10805_v28 }
 0x223   :  { %11143 = vmatpush3.bf16.msra.mxu0 %v12160_v13  ;;  %11157 = vmatpush3.bf16.msra.mxu1 %v12161_v27  ;;  %v12182_v13 = vld [vmem:[#allocation9 + $0x6f8] sm:$0xff]  }
 0x224   :  { %11144 = vmatprep.subr.bf16.mxu0 %v12162_v38  ;;  %11158 = vmatprep.subr.bf16.mxu1 %v12163_v42  ;;  %v12183_v38 = vld [vmem:[#allocation9 + $0x758] sm:$0xff]   ;;  %v1264_v42 = vmul.f32 %v13111_v59, %v13371_v53 }
 0x226   :  { %v1354_v7 = vsel %vm1173_vm14, %v13371_v53, %v1264_v42  ;;  %v12196_v53 = vld [vmem:[#allocation9 + $0x730] sm:$0xff]   ;;  %v12207_v42 = vld [vmem:[#allocation9 + $0x848] sm:$0xff]  }
 0x227   :  { %11145 = vmatpush3.bf16.msra.mxu0 %v12164_v56  ;;  %11159 = vmatpush3.bf16.msra.mxu1 %v12165_v54  ;;  %v1269_v56 = vmul.f32 %v13111_v59, %v13142_v25  ;;  %v12184_v54 = vld [vmem:[#allocation9 + $0x6b8] sm:$0xff]  }
 0x228   :  { %11146 = vmatprep.subr.bf16.mxu0 %v12166_v5  ;;  %11160 = vmatprep.subr.bf16.mxu1 %v12167_v3  ;;  %v12185_v5 = vld [vmem:[#allocation9 + $0x718] sm:$0xff]   ;;  %v12186_v3 = vld [vmem:[#allocation9 + $0x760] sm:$0xff]  }
 0x22b   :  { %11147 = vmatpush3.bf16.msra.mxu0 %v12168_v43  ;;  %11161 = vmatpush3.bf16.msra.mxu1 %v12169_v60  ;;  %v12188_v43 = vld [vmem:[#allocation9 + $0x720] sm:$0xff]  }
 0x22c   :  { %11162 = vmatprep.subr.bf16.mxu1 %v12170_v15  ;;  %11176 = vmatprep.subr.bf16.mxu0 %v12171_v62  ;;  %v12189_v60 = vld [vmem:[#allocation9 + $0x780] sm:$0xff]   ;;  %v12190_v15 = vld [vmem:[#allocation9 + $0x768] sm:$0xff]   ;;  %v1359_v62 = vsel %vm1178_vm15, %v13142_v25, %v1269_v56  ;;  %v1266_v25 = vmul.f32 %v13111_v59, %v13460_v52  ;;  %vm1194_vm15 = vcmp.gt.f32.partialorder %v13415_v22, 0.0 }
 0x22e   :  { %4298 = vmatmul.mubr.bf16.vlgmr.msra.gmra.mrb[80].mxu0 %v10802_v47  ;;  %v12195_v47 = vld [vmem:[#allocation9 + $0x7d0] sm:$0xff]  }
 0x22f   :  { %11163 = vmatpush3.bf16.msra.mxu1 %v12172_v19  ;;  %11177 = vmatpush3.bf16.msra.mxu0 %v12173_v51  ;;  %v10804_v19 = vpack.c.bf16 %v1354_v7, %v1354_v7  ;;  %v10809_v51 = vpack.c.bf16 %v1359_v62, %v1359_v62  ;;  %v12211_v7 = vld [vmem:[#allocation9 + $0x850] sm:$0xff]  }
 0x230   :  { %11164 = vmatprep.subr.bf16.mxu1 %v12174_v9  ;;  %11178 = vmatprep.subr.bf16.mxu0 %v12175_v11  ;;  %v12192_v9 = vld [vmem:[#allocation9 + $0x728] sm:$0xff]   ;;  %v12194_v11 = vld [vmem:[#allocation9 + $0x770] sm:$0xff]  }
 0x231   :  { %v10884_v6 = vpop.f32.mrb[40].mxu1  ;;  %4377 = vmatprep.mubr.bf16.mxu0 %v10807_v20  ;;  %v12197_v20 = vld [vmem:[#allocation9 + $0x790] sm:$0xff]  }
 0x232   :  { %v10885_v57 = vpop.f32.mrb[41].mxu1 }
 0x233   :  { %v13575_v55 = vadd.f32 %v10885_v57, %v10884_v6  ;;  %11165 = vmatpush3.bf16.msra.mxu1 %v12176_v63  ;;  %11179 = vmatpush3.bf16.msra.mxu0 %v12177_v37  ;;  %v10887_v28 = vpop.f32.mrb[42].mxu1  ;;  %v12198_v63 = vld [vmem:[#allocation9 + $0x778] sm:$0xff]   ;;  %v12203_v57 = vld [vmem:[#allocation9 + $0x840] sm:$0xff]  }
 0x234   :  { %v10888_v27 = vpop.f32.mrb[43].mxu1  ;;  %11166 = vmatprep.subr.bf16.mxu1 %v12178_v29  ;;  %11180 = vmatprep.subr.bf16.mxu0 %v12179_v8  ;;  %v12199_v37 = vld [vmem:[#allocation9 + $0x7d8] sm:$0xff]   ;;  %v1271_v29 = vmul.f32 %v13111_v59, %v13191_v31  ;;  %v12204_v28 = vld [vmem:[#allocation9 + $0x7a0] sm:$0xff]  }
 0x235   :  { %v12200_v8 = vld [vmem:[#allocation9 + $0x738] sm:$0xff]   ;;  %v12206_v27 = vld [vmem:[#allocation9 + $0x7e8] sm:$0xff]  }
 0x236   :  { %v12201_v6 = vld [vmem:[#allocation9 + $0x798] sm:$0xff]  }
 0x237   :  { %11167 = vmatpush3.bf16.msra.mxu1 %v12180_v21  ;;  %11181 = vmatpush3.bf16.msra.mxu0 %v12181_v44  ;;  %v12202_v21 = vld [vmem:[#allocation9 + $0x7e0] sm:$0xff]   ;;  %v1356_v44 = vsel %vm1175_vm0, %v13460_v52, %v1266_v25 }
 0x238   :  { %11168 = vmatprep.subr.bf16.mxu1 %v12182_v13  ;;  %11182 = vmatprep.subr.bf16.mxu0 %v12183_v38  ;;  %v12205_v13 = vld [vmem:[#allocation9 + $0x800] sm:$0xff]   ;;  %v1361_v38 = vsel %vm1180_vm1, %v13191_v31, %v1271_v29  ;;  %v10806_v56 = vpack.c.bf16 %v1356_v44, %v1356_v44  ;;  %v12222_v44 = vld [vmem:[#allocation9 + $0x868] sm:$0xff]   ;;  %vm1196_vm1 = vcmp.gt.f32.partialorder %v13487_v36, 0.0 }
 0x239   :  { %v12220_v29 = vld [vmem:[#allocation9 + $0x820] sm:$0xff]  }
 0x23b   :  { %11169 = vmatpush3.bf16.msra.mxu1 %v12184_v54  ;;  %11183 = vmatpush3.bf16.msra.mxu0 %v12185_v5  ;;  %v10811_v54 = vpack.c.bf16 %v1361_v38, %v1361_v38  ;;  %v12208_v5 = vld [vmem:[#allocation9 + $0x7a8] sm:$0xff]  }
 0x23c   :  { %11184 = vmatprep.subr.bf16.mxu0 %v12186_v3  ;;  %11198 = vmatprep.subr.bf16.mxu1 %v12187_v49  ;;  %v12209_v3 = vld [vmem:[#allocation9 + $0x808] sm:$0xff]   ;;  %v12210_v49 = vld [vmem:[#allocation9 + $0x7f0] sm:$0xff]  }
 0x23e   :  { %4338 = vmatmul.mubr.bf16.vlgmr.msra.gmra.mrb[68].mxu1 %v10804_v19 }
 0x23f   :  { %11185 = vmatpush3.bf16.msra.mxu0 %v12188_v43  ;;  %11199 = vmatpush3.bf16.msra.mxu1 %v12189_v60  ;;  %v12212_v43 = vld [vmem:[#allocation9 + $0x7b0] sm:$0xff]  }
 0x240   :  { %5099 = vmatprep.mubr.bf16.mxu1 %v10809_v51  ;;  %11186 = vmatprep.subr.bf16.mxu0 %v12190_v15  ;;  %v12213_v15 = vld [vmem:[#allocation9 + $0x810] sm:$0xff]   ;;  %v12215_v51 = vld [vmem:[#allocation9 + $0x858] sm:$0xff]  }
 0x241   :  { %11200 = vmatprep.subr.bf16.mxu1 %v12191_v16  ;;  %v12214_v16 = vld [vmem:[#allocation9 + $0x7f8] sm:$0xff]  }
 0x243   :  { %11187 = vmatpush3.bf16.msra.mxu0 %v12192_v9  ;;  %11201 = vmatpush3.bf16.msra.mxu1 %v12193_v33  ;;  %v1268_v9 = vmul.f32 %v13111_v59, %v13139_v24 }
 0x244   :  { %11188 = vmatprep.subr.bf16.mxu0 %v12194_v11  ;;  %11202 = vmatprep.subr.bf16.mxu1 %v12195_v47  ;;  %v1273_v11 = vmul.f32 %v13111_v59, %v13301_v14  ;;  %v12216_v47 = vld [vmem:[#allocation9 + $0x7b8] sm:$0xff]  }
 0x247   :  { %11189 = vmatpush3.bf16.msra.mxu0 %v12196_v53  ;;  %11203 = vmatpush3.bf16.msra.mxu1 %v12197_v20  ;;  %v12217_v53 = vld [vmem:[#allocation9 + $0x818] sm:$0xff]   ;;  %v12218_v20 = vld [vmem:[#allocation9 + $0x860] sm:$0xff]  }
 0x248   :  { %11190 = vmatprep.subr.bf16.mxu0 %v12198_v63  ;;  %11204 = vmatprep.subr.bf16.mxu1 %v12199_v37  ;;  %v12219_v63 = vld [vmem:[#allocation9 + $0x8c0] sm:$0xff]   ;;  %v1358_v37 = vsel %vm1177_vm2, %v13139_v24, %v1268_v9  ;;  %v12238_v9 = vld [vmem:[#allocation9 + $0x8e8] sm:$0xff]  }
 0x24b   :  { %11191 = vmatpush3.bf16.msra.mxu0 %v12200_v8  ;;  %11205 = vmatpush3.bf16.msra.mxu1 %v12201_v6  ;;  %v12221_v8 = vld [vmem:[#allocation9 + $0x880] sm:$0xff]  }
 0x24c   :  { %11206 = vmatprep.subr.bf16.mxu1 %v12202_v21  ;;  %11220 = vmatprep.subr.bf16.mxu0 %v12203_v57  ;;  %v1363_v57 = vsel %vm1182_vm3, %v13301_v14, %v1273_v11  ;;  %v12228_v14 = vld [vmem:[#allocation9 + $0x830] sm:$0xff]   ;;  %v12239_v11 = vld [vmem:[#allocation9 + $0x948] sm:$0xff]  }
 0x24d   :  { %v10813_v24 = vpack.c.bf16 %v1363_v57, %v1363_v57 }
 0x24e   :  { %4378 = vmatmul.mubr.bf16.vlgmr.msra.gmra.mrb[84].mxu0 %v10806_v56  ;;  %v12225_v56 = vld [vmem:[#allocation9 + $0x888] sm:$0xff]  }
 0x24f   :  { %11207 = vmatpush3.bf16.msra.mxu1 %v12204_v28  ;;  %11221 = vmatpush3.bf16.msra.mxu0 %v12205_v13  ;;  %v10808_v28 = vpack.c.bf16 %v1358_v37, %v1358_v37  ;;  %v12242_v37 = vld [vmem:[#allocation9 + $0x8f0] sm:$0xff]  }
 0x250   :  { %5139 = vmatprep.mubr.bf16.mxu0 %v10811_v54  ;;  %11208 = vmatprep.subr.bf16.mxu1 %v12206_v27  ;;  %v12223_v27 = vld [vmem:[#allocation9 + $0x8c8] sm:$0xff]   ;;  %v12226_v54 = vld [vmem:[#allocation9 + $0x870] sm:$0xff]  }
 0x251   :  { %v10906_v52 = vpop.f32.mrb[44].mxu1  ;;  %11222 = vmatprep.subr.bf16.mxu0 %v12207_v42  ;;  %v12224_v42 = vld [vmem:[#allocation9 + $0x828] sm:$0xff]  }
 0x252   :  { %v10907_v60 = vpop.f32.mrb[45].mxu1 }
 0x253   :  { %v10908_v31 = vadd.f32 %v10907_v60, %v10906_v52  ;;  %v10909_v62 = vpop.f32.mrb[46].mxu1  ;;  %11209 = vmatpush3.bf16.msra.mxu1 %v12208_v5  ;;  %11223 = vmatpush3.bf16.msra.mxu0 %v12209_v3  ;;  %v12227_v5 = vld [vmem:[#allocation9 + $0x8d0] sm:$0xff]   ;;  %v1270_v52 = vmul.f32 %v13111_v59, %v13184_v23  ;;  %v12232_v60 = vld [vmem:[#allocation9 + $0x838] sm:$0xff]  }
 0x254   :  { %v10910_v19 = vpop.f32.mrb[47].mxu1  ;;  %11210 = vmatprep.subr.bf16.mxu1 %v12210_v49  ;;  %11224 = vmatprep.subr.bf16.mxu0 %v12211_v7  ;;  %v12229_v3 = vld [vmem:[#allocation9 + $0x890] sm:$0xff]   ;;  %v12230_v49 = vld [vmem:[#allocation9 + $0x878] sm:$0xff]   ;;  %v12235_v62 = vld [vmem:[#allocation9 + $0x940] sm:$0xff]  }
 0x255   :  { %v2664_v33 = vadd.f32 %v10908_v31, %v13575_v55  ;;  %v12231_v7 = vld [vmem:[#allocation9 + $0x8d8] sm:$0xff]   ;;  %v12234_v31 = vld [vmem:[#allocation9 + $0x8e0] sm:$0xff]  }
 0x256   :  { %v12236_v19 = vld [vmem:[#allocation9 + $0x8a0] sm:$0xff]  }
 0x257   :  { %11211 = vmatpush3.bf16.msra.mxu1 %v12212_v43  ;;  %11225 = vmatpush3.bf16.msra.mxu0 %v12213_v15  ;;  %v1275_v43 = vmul.f32 %v13111_v59, %v13390_v26  ;;  %v12233_v15 = vld [vmem:[#allocation9 + $0x898] sm:$0xff]  }
 0x258   :  { %11212 = vmatprep.subr.bf16.mxu1 %v12214_v16  ;;  %11226 = vmatprep.subr.bf16.mxu0 %v12215_v51  ;;  %v1360_v16 = vsel %vm1179_vm4, %v13184_v23, %v1270_v52  ;;  %v12237_v51 = vld [vmem:[#allocation9 + $0x900] sm:$0xff]   ;;  %vm1195_vm4 = vcmp.gt.f32.partialorder %v13482_v10, 0.0 }
 0x259   :  { %v10928_v25 = vpop.f32.mrb[60].mxu0 }
 0x25a   :  { %v10929_v55 = vpop.f32.mrb[61].mxu0 }
 0x25b   :  { %v10930_v6 = vadd.f32 %v10929_v55, %v10928_v25  ;;  %11213 = vmatpush3.bf16.msra.mxu1 %v12216_v47  ;;  %11227 = vmatpush3.bf16.msra.mxu0 %v12217_v53  ;;  %v10931_v21 = vpop.f32.mrb[62].mxu0  ;;  %v10810_v47 = vpack.c.bf16 %v1360_v16, %v1360_v16  ;;  %v12243_v25 = vld [vmem:[#allocation9 + $0x950] sm:$0xff]  }
 0x25c   :  { %v10932_v13 = vpop.f32.mrb[63].mxu0  ;;  %11228 = vmatprep.subr.bf16.mxu0 %v12218_v20  ;;  %11242 = vmatprep.subr.bf16.mxu1 %v12219_v63  ;;  %v12240_v20 = vld [vmem:[#allocation9 + $0x8a8] sm:$0xff]   ;;  %v12246_v21 = vld [vmem:[#allocation9 + $0x8f8] sm:$0xff]   ;;  %v12260_v16 = vld [vmem:[#allocation9 + $0x930] sm:$0xff]  }
 0x25d   :  { %v13602_v38 = vadd.f32 %v10930_v6, %v2664_v33  ;;  %v1365_v33 = vsel %vm1184_vm5, %v13390_v26, %v1275_v43  ;;  %v12241_v63 = vld [vmem:[#allocation9 + $0x908] sm:$0xff]  }
 0x25e   :  { %5100 = vmatmul.mubr.bf16.vlgmr.msra.gmra.mrb[72].mxu1 %v10808_v28  ;;  %v10815_v53 = vpack.c.bf16 %v1365_v33, %v1365_v33  ;;  %v1272_v28 = vmul.f32 %v13111_v59, %v13298_v61  ;;  %v12262_v33 = vld [vmem:[#allocation9 + $0x978] sm:$0xff]  }
 0x25f   :  { %11229 = vmatpush3.bf16.msra.mxu0 %v12220_v29  ;;  %11243 = vmatpush3.bf16.msra.mxu1 %v12221_v8  ;;  %v12244_v29 = vld [vmem:[#allocation9 + $0x8b0] sm:$0xff]  }
 0x260   :  { %5179 = vmatprep.mubr.bf16.mxu1 %v10813_v24  ;;  %11230 = vmatprep.subr.bf16.mxu0 %v12222_v44  ;;  %v12245_v8 = vld [vmem:[#allocation9 + $0x910] sm:$0xff]   ;;  %v12247_v44 = vld [vmem:[#allocation9 + $0x958] sm:$0xff]  }
 0x261   :  { %11244 = vmatprep.subr.bf16.mxu1 %v12223_v27  ;;  %v1277_v27 = vmul.f32 %v13111_v59, %v13474_v30  ;;  %v12248_v24 = vld [vmem:[#allocation9 + $0x8b8] sm:$0xff]  }
 0x263   :  { %11231 = vmatpush3.bf16.msra.mxu0 %v12224_v42  ;;  %11245 = vmatpush3.bf16.msra.mxu1 %v12225_v56  ;;  %v12249_v42 = vld [vmem:[#allocation9 + $0x918] sm:$0xff]   ;;  %v12250_v56 = vld [vmem:[#allocation9 + $0x960] sm:$0xff]  }
 0x264   :  { %11232 = vmatprep.subr.bf16.mxu0 %v12226_v54  ;;  %11246 = vmatprep.subr.bf16.mxu1 %v12227_v5  ;;  %v12251_v54 = vld [vmem:[#allocation9 + $0x9c0] sm:$0xff]   ;;  %v1362_v5 = vsel %vm1181_vm6, %v13298_v61, %v1272_v28 }
 0x265   :  { %v10812_v52 = vpack.c.bf16 %v1362_v5, %v1362_v5  ;;  %v12277_v5 = vld [vmem:[#allocation9 + $0xa10] sm:$0xff]  }
 0x267   :  { %11233 = vmatpush3.bf16.msra.mxu0 %v12228_v14  ;;  %11247 = vmatpush3.bf16.msra.mxu1 %v12229_v3  ;;  %v12252_v14 = vld [vmem:[#allocation9 + $0x920] sm:$0xff]  }
 0x268   :  { %11234 = vmatprep.subr.bf16.mxu0 %v12230_v49  ;;  %11248 = vmatprep.subr.bf16.mxu1 %v12231_v7  ;;  %v12253_v3 = vld [vmem:[#allocation9 + $0x980] sm:$0xff]   ;;  %v1367_v49 = vsel %vm1186_vm7, %v13474_v30, %v1277_v27  ;;  %v12255_v7 = vld [vmem:[#allocation9 + $0x9c8] sm:$0xff]  }
 0x269   :  { %v10817_v43 = vpack.c.bf16 %v1367_v49, %v1367_v49  ;;  %v12273_v27 = vld [vmem:[#allocation9 + $0xa08] sm:$0xff]   ;;  %v12279_v49 = vld [vmem:[#allocation9 + $0xa58] sm:$0xff]  }
 0x26b   :  { %11235 = vmatpush3.bf16.msra.mxu0 %v12232_v60  ;;  %11249 = vmatpush3.bf16.msra.mxu1 %v12233_v15  ;;  %v12256_v60 = vld [vmem:[#allocation9 + $0x928] sm:$0xff]  }
 0x26c   :  { %11250 = vmatprep.subr.bf16.mxu1 %v12234_v31  ;;  %11264 = vmatprep.subr.bf16.mxu0 %v12235_v62  ;;  %v12257_v15 = vld [vmem:[#allocation9 + $0x988] sm:$0xff]   ;;  %v12258_v31 = vld [vmem:[#allocation9 + $0x970] sm:$0xff]  }
 0x26d   :  { %v12259_v62 = vld [vmem:[#allocation9 + $0x9d0] sm:$0xff]  }
 0x26e   :  { %5140 = vmatmul.mubr.bf16.vlgmr.msra.gmra.mrb[88].mxu0 %v10810_v47  ;;  %v12263_v47 = vld [vmem:[#allocation9 + $0x9d8] sm:$0xff]  }
 0x26f   :  { %11251 = vmatpush3.bf16.msra.mxu1 %v12236_v19  ;;  %11265 = vmatpush3.bf16.msra.mxu0 %v12237_v51  ;;  %v12261_v51 = vld [vmem:[#allocation9 + $0x990] sm:$0xff]  }
 0x270   :  { %5219 = vmatprep.mubr.bf16.mxu0 %v10815_v53  ;;  %11252 = vmatprep.subr.bf16.mxu1 %v12238_v9  ;;  %v1274_v53 = vmul.f32 %v13111_v59, %v13384_v12 }
 0x271   :  { %v10950_v23 = vpop.f32.mrb[48].mxu1  ;;  %11266 = vmatprep.subr.bf16.mxu0 %v12239_v11 }
 0x272   :  { %v10951_v55 = vpop.f32.mrb[49].mxu1 }
 0x273   :  { %v10952_v26 = vadd.f32 %v10951_v55, %v10950_v23  ;;  %11253 = vmatpush3.bf16.msra.mxu1 %v12240_v20  ;;  %11267 = vmatpush3.bf16.msra.mxu0 %v12241_v63  ;;  %v10953_v6 = vpop.f32.mrb[50].mxu1  ;;  %v1279_v63 = vmul.f32 %v13111_v59, %v13163_v58  ;;  %v12266_v23 = vld [vmem:[#allocation9 + $0x9e0] sm:$0xff]   ;;  %v1364_v55 = vsel %vm1183_vm8, %v13384_v12, %v1274_v53  ;;  %v12289_v53 = vld [vmem:[#allocation9 + $0xa88] sm:$0xff]  }
 0x274   :  { %11254 = vmatprep.subr.bf16.mxu1 %v12242_v37  ;;  %11268 = vmatprep.subr.bf16.mxu0 %v12243_v25  ;;  %v10954_v57 = vpop.f32.mrb[51].mxu1  ;;  %v12264_v37 = vld [vmem:[#allocation9 + $0x938] sm:$0xff]   ;;  %v12270_v6 = vld [vmem:[#allocation9 + $0x9e8] sm:$0xff]  }
 0x275   :  { %v2744_v13 = vadd.f32 %v10952_v26, %v13602_v38  ;;  %v12254_v38 = vld [vmem:[#allocation9 + $0x968] sm:$0xff]   ;;  %v12265_v25 = vld [vmem:[#allocation9 + $0x998] sm:$0xff]   ;;  %v12269_v26 = vld [vmem:[#allocation9 + $0xa00] sm:$0xff]  }
 0x276   :  { %v12271_v57 = vld [vmem:[#allocation9 + $0xa48] sm:$0xff]  }
 0x277   :  { %11255 = vmatpush3.bf16.msra.mxu1 %v12244_v29  ;;  %11269 = vmatpush3.bf16.msra.mxu0 %v12245_v8  ;;  %v12267_v29 = vld [vmem:[#allocation9 + $0xa40] sm:$0xff]  }
 0x278   :  { %11256 = vmatprep.subr.bf16.mxu1 %v12246_v21  ;;  %11270 = vmatprep.subr.bf16.mxu0 %v12247_v44  ;;  %v12268_v8 = vld [vmem:[#allocation9 + $0x9a0] sm:$0xff]   ;;  %v1369_v21 = vsel %vm1188_vm9, %v13163_v58, %v1279_v63  ;;  %v10814_v44 = vpack.c.bf16 %v1364_v55, %v1364_v55  ;;  %v12294_v55 = vld [vmem:[#allocation9 + $0xa78] sm:$0xff]   ;;  %vm1204_vm9 = vcmp.gt.f32.partialorder %v13425_v40, 0.0 }
 0x279   :  { %v10819_v28 = vpack.c.bf16 %v1369_v21, %v1369_v21 }
 0x27b   :  { %11257 = vmatpush3.bf16.msra.mxu1 %v12248_v24  ;;  %11271 = vmatpush3.bf16.msra.mxu0 %v12249_v42  ;;  %v12274_v24 = vld [vmem:[#allocation9 + $0x9f0] sm:$0xff]  }
 0x27c   :  { %11272 = vmatprep.subr.bf16.mxu0 %v12250_v56  ;;  %11286 = vmatprep.subr.bf16.mxu1 %v12251_v54  ;;  %v12275_v42 = vld [vmem:[#allocation9 + $0xa50] sm:$0xff]  }
 0x27d   :  { %v12276_v56 = vld [vmem:[#allocation9 + $0x9b0] sm:$0xff]  }
 0x27e   :  { %5180 = vmatmul.mubr.bf16.vlgmr.msra.gmra.mrb[76].mxu1 %v10812_v52 }
 0x27f   :  { %11273 = vmatpush3.bf16.msra.mxu0 %v12252_v14  ;;  %11287 = vmatpush3.bf16.msra.mxu1 %v12253_v3  ;;  %v12278_v3 = vld [vmem:[#allocation9 + $0x9f8] sm:$0xff]  }
 0x280   :  { %5259 = vmatprep.mubr.bf16.mxu1 %v10817_v43  ;;  %11274 = vmatprep.subr.bf16.mxu0 %v12254_v38  ;;  %v1281_v43 = vmul.f32 %v13111_v59, %v13219_v17 }
 0x281   :  { %v10972_v61 = vpop.f32.mrb[64].mxu0  ;;  %11288 = vmatprep.subr.bf16.mxu1 %v12255_v7  ;;  %v1276_v7 = vmul.f32 %v13111_v59, %v13469_v18 }
 0x282   :  { %v10973_v19 = vpop.f32.mrb[65].mxu0 }
 0x283   :  { %v10974_v30 = vadd.f32 %v10973_v19, %v10972_v61  ;;  %11275 = vmatpush3.bf16.msra.mxu0 %v12256_v60  ;;  %11289 = vmatpush3.bf16.msra.mxu1 %v12257_v15  ;;  %v10975_v9 = vpop.f32.mrb[66].mxu0  ;;  %v12280_v60 = vld [vmem:[#allocation9 + $0x9b8] sm:$0xff]   ;;  %v1366_v61 = vsel %vm1185_vm10, %v13469_v18, %v1276_v7  ;;  %v12285_v19 = vld [vmem:[#allocation9 + $0xa80] sm:$0xff]   ;;  %v12291_v18 = vld [vmem:[#allocation9 + $0xad0] sm:$0xff]  }
 0x284   :  { %v10976_v11 = vpop.f32.mrb[67].mxu0  ;;  %11276 = vmatprep.subr.bf16.mxu0 %v12258_v31  ;;  %11290 = vmatprep.subr.bf16.mxu1 %v12259_v62  ;;  %v12281_v15 = vld [vmem:[#allocation9 + $0xa18] sm:$0xff]   ;;  %v12282_v31 = vld [vmem:[#allocation9 + $0xa60] sm:$0xff]   ;;  %v12287_v9 = vld [vmem:[#allocation9 + $0xac8] sm:$0xff]  }
 0x285   :  { %v2784_v20 = vadd.f32 %v10974_v30, %v2744_v13  ;;  %v12272_v13 = vld [vmem:[#allocation9 + $0x9a8] sm:$0xff]   ;;  %v12283_v62 = vld [vmem:[#allocation9 + $0xac0] sm:$0xff]   ;;  %v1371_v30 = vsel %vm1190_vm11, %v13219_v17, %v1281_v43  ;;  %v12306_v7 = vld [vmem:[#allocation9 + $0xaf0] sm:$0xff]   ;;  %vm1206_vm11 = vcmp.gt.f32.partialorder %v13497_v46, 0.0 }
 0x286   :  { %v10821_v11 = vpack.c.bf16 %v1371_v30, %v1371_v30 }
 0x287   :  { %11277 = vmatpush3.bf16.msra.mxu0 %v12260_v16  ;;  %11291 = vmatpush3.bf16.msra.mxu1 %v12261_v51  ;;  %v12284_v16 = vld [vmem:[#allocation9 + $0xa20] sm:$0xff]   ;;  %v12286_v51 = vld [vmem:[#allocation9 + $0xa68] sm:$0xff]  }
 0x288   :  { %11278 = vmatprep.subr.bf16.mxu0 %v12262_v33  ;;  %11292 = vmatprep.subr.bf16.mxu1 %v12263_v47  ;;  %v10816_v33 = vpack.c.bf16 %v1366_v61, %v1366_v61  ;;  %v12288_v47 = vld [vmem:[#allocation9 + $0xa28] sm:$0xff]  }
 0x28b   :  { %11279 = vmatpush3.bf16.msra.mxu0 %v12264_v37  ;;  %11293 = vmatpush3.bf16.msra.mxu1 %v12265_v25  ;;  %v12292_v37 = vld [vmem:[#allocation9 + $0xa30] sm:$0xff]  }
 0x28c   :  { %11294 = vmatprep.subr.bf16.mxu1 %v12266_v23  ;;  %11308 = vmatprep.subr.bf16.mxu0 %v12267_v29  ;;  %v12293_v25 = vld [vmem:[#allocation9 + $0xa90] sm:$0xff]  }
 0x28e   :  { %5220 = vmatmul.mubr.bf16.vlgmr.msra.gmra.mrb[92].mxu0 %v10814_v44 }
 0x28f   :  { %11295 = vmatpush3.bf16.msra.mxu1 %v12268_v8  ;;  %11309 = vmatpush3.bf16.msra.mxu0 %v12269_v26  ;;  %v12295_v26 = vld [vmem:[#allocation9 + $0xad8] sm:$0xff]  }
 0x290   :  { %5981 = vmatprep.mubr.bf16.mxu0 %v10819_v28  ;;  %11296 = vmatprep.subr.bf16.mxu1 %v12270_v6  ;;  %v1278_v6 = vmul.f32 %v13111_v59, %v13156_v50  ;;  %v12296_v28 = vld [vmem:[#allocation9 + $0xa38] sm:$0xff]  }
 0x291   :  { %v10994_v12 = vpop.f32.mrb[52].mxu1  ;;  %11310 = vmatprep.subr.bf16.mxu0 %v12271_v57  ;;  %v13929_v57 = vld [vmem:[#allocation38_spill] sm:$0xff] }
 0x292   :  { %v10995_v54 = vpop.f32.mrb[53].mxu1  ;;  %v1283_v44 = vmul.f32 %v13111_v59, %v13929_v57  ;;  %vm1192_vm13 = vcmp.gt.f32.partialorder %v13929_v57, 0.0 }
 0x293   :  { %v10996_v58 = vadd.f32 %v10995_v54, %v10994_v12  ;;  %v10997_v14 = vpop.f32.mrb[54].mxu1  ;;  %11297 = vmatpush3.bf16.msra.mxu1 %v12272_v13  ;;  %11311 = vmatpush3.bf16.msra.mxu0 %v12273_v27  ;;  %v12297_v13 = vld [vmem:[#allocation9 + $0xa98] sm:$0xff]   ;;  %v12298_v27 = vld [vmem:[#allocation9 + $0xae0] sm:$0xff]   ;;  %v12302_v54 = vld [vmem:[#allocation9 + $0xae8] sm:$0xff]  }
 0x294   :  { %v10998_v38 = vpop.f32.mrb[55].mxu1  ;;  %11298 = vmatprep.subr.bf16.mxu1 %v12274_v24  ;;  %11312 = vmatprep.subr.bf16.mxu0 %v12275_v42  ;;  %v12299_v24 = vld [vmem:[#allocation9 + $0xb40] sm:$0xff]   ;;  %v1368_v42 = vsel %vm1187_vm12, %v13156_v50, %v1278_v6  ;;  %v12322_v6 = vld [vmem:[#allocation9 + $0xb70] sm:$0xff]   ;;  %vm1203_vm12 = vcmp.gt.f32.partialorder %v13420_v41, 0.0 }
 0x295   :  { %v3339_v52 = vadd.f32 %v10996_v58, %v2784_v20  ;;  %v12290_v20 = vld [vmem:[#allocation9 + $0xa70] sm:$0xff]   ;;  %v12300_v12 = vld [vmem:[#allocation9 + $0xaa0] sm:$0xff]   ;;  %v12303_v58 = vld [vmem:[#allocation9 + $0xb48] sm:$0xff]   ;;  %v10818_v14 = vpack.c.bf16 %v1368_v42, %v1368_v42 }
 0x296   :  { %v12304_v38 = vld [vmem:[#allocation9 + $0xaa8] sm:$0xff]  }
 0x297   :  { %11299 = vmatpush3.bf16.msra.mxu1 %v12276_v56  ;;  %11313 = vmatpush3.bf16.msra.mxu0 %v12277_v5  ;;  %v12301_v56 = vld [vmem:[#allocation9 + $0xb00] sm:$0xff]   ;;  %v1373_v5 = vsel %vm1192_vm13, %v13929_v57, %v1283_v44  ;;  %v12324_v44 = vld [vmem:[#allocation9 + $0xb30] sm:$0xff]  }
 0x298   :  { %11300 = vmatprep.subr.bf16.mxu1 %v12278_v3  ;;  %11314 = vmatprep.subr.bf16.mxu0 %v12279_v49  ;;  %v10823_v3 = vpack.c.bf16 %v1373_v5, %v1373_v5  ;;  %v12305_v49 = vld [vmem:[#allocation9 + $0xb08] sm:$0xff]  }
 0x29b   :  { %11301 = vmatpush3.bf16.msra.mxu1 %v12280_v60  ;;  %11315 = vmatpush3.bf16.msra.mxu0 %v12281_v15 }
 0x29c   :  { %11316 = vmatprep.subr.bf16.mxu0 %v12282_v31  ;;  %11330 = vmatprep.subr.bf16.mxu1 %v12283_v62  ;;  %v12308_v31 = vld [vmem:[#allocation9 + $0xab0] sm:$0xff]  }
 0x29d   :  { %v12309_v62 = vld [vmem:[#allocation9 + $0xb10] sm:$0xff]  }
 0x29e   :  { %5260 = vmatmul.mubr.bf16.vlgmr.msra.gmra.mrb[80].mxu1 %v10816_v33  ;;  %v1285_v33 = vmul.f32 %v13111_v59, %v13415_v22 }
 0x29f   :  { %11317 = vmatpush3.bf16.msra.mxu0 %v12284_v16  ;;  %11331 = vmatpush3.bf16.msra.mxu1 %v12285_v19  ;;  %v12310_v16 = vld [vmem:[#allocation9 + $0xaf8] sm:$0xff]  }
 0x2a0   :  { %6021 = vmatprep.mubr.bf16.mxu1 %v10821_v11  ;;  %11318 = vmatprep.subr.bf16.mxu0 %v12286_v51  ;;  %v12311_v19 = vld [vmem:[#allocation9 + $0xb58] sm:$0xff]  }
 0x2a1   :  { %v11016_v63 = vpop.f32.mrb[68].mxu0  ;;  %11332 = vmatprep.subr.bf16.mxu1 %v12287_v9  ;;  %v13930_v51 = vld [vmem:[#allocation26_spill] sm:$0xff] }
 0x2a2   :  { %v11017_v17 = vpop.f32.mrb[69].mxu0  ;;  %vm1189_vm14 = vcmp.gt.f32.partialorder %v13930_v51, 0.0  ;;  %v1280_v30 = vmul.f32 %v13111_v59, %v13930_v51  ;;  %v12312_v11 = vld [vmem:[#allocation9 + $0xab8] sm:$0xff]  }
 0x2a3   :  { %v11018_v23 = vadd.f32 %v11017_v17, %v11016_v63  ;;  %v11019_v29 = vpop.f32.mrb[70].mxu0  ;;  %11319 = vmatpush3.bf16.msra.mxu0 %v12288_v47  ;;  %11333 = vmatpush3.bf16.msra.mxu1 %v12289_v53  ;;  %v12313_v47 = vld [vmem:[#allocation9 + $0xb18] sm:$0xff]   ;;  %v12314_v53 = vld [vmem:[#allocation9 + $0xb60] sm:$0xff]   ;;  %v12318_v17 = vld [vmem:[#allocation9 + $0xb68] sm:$0xff]  }
 0x2a4   :  { %v11020_v8 = vpop.f32.mrb[71].mxu0  ;;  %11320 = vmatprep.subr.bf16.mxu0 %v12290_v20  ;;  %11334 = vmatprep.subr.bf16.mxu1 %v12291_v18  ;;  %v12315_v20 = vld [vmem:[#allocation9 + $0xbc0] sm:$0xff]   ;;  %v1370_v18 = vsel %vm1189_vm14, %v13930_v51, %v1280_v30  ;;  %v12339_v51 = vld [vmem:[#allocation9 + $0xc50] sm:$0xff]   ;;  %vm1205_vm14 = vcmp.gt.f32.partialorder %v13490_v39, 0.0 }
 0x2a5   :  { %v3379_v21 = vadd.f32 %v11018_v23, %v3339_v52  ;;  %v12307_v52 = vld [vmem:[#allocation9 + $0xb50] sm:$0xff]   ;;  %v12316_v63 = vld [vmem:[#allocation9 + $0xb20] sm:$0xff]   ;;  %v12319_v23 = vld [vmem:[#allocation9 + $0xbc8] sm:$0xff]   ;;  %v10820_v29 = vpack.c.bf16 %v1370_v18, %v1370_v18 }
 0x2a6   :  { %v12320_v8 = vld [vmem:[#allocation9 + $0xb28] sm:$0xff]   ;;  %v12343_v18 = vld [vmem:[#allocation9 + $0xc58] sm:$0xff]  }
 0x2a7   :  { %11321 = vmatpush3.bf16.msra.mxu0 %v12292_v37  ;;  %11335 = vmatpush3.bf16.msra.mxu1 %v12293_v25  ;;  %v12317_v37 = vld [vmem:[#allocation9 + $0xb80] sm:$0xff]   ;;  %v1375_v25 = vsel %vm1194_vm15, %v13415_v22, %v1285_v33 }
 0x2a8   :  { %11322 = vmatprep.subr.bf16.mxu0 %v12294_v55  ;;  %11336 = vmatprep.subr.bf16.mxu1 %v12295_v26  ;;  %v10825_v55 = vpack.c.bf16 %v1375_v25, %v1375_v25  ;;  %v12321_v26 = vld [vmem:[#allocation9 + $0xb88] sm:$0xff]  }
 0x2a9   :  { %v13933_v25 = vld [vmem:[#allocation21_spill] sm:$0xff] }
 0x2aa   :  { %vm1198_vm3 = vcmp.gt.f32.partialorder %v13933_v25, 0.0 }
 0x2ab   :  { %11323 = vmatpush3.bf16.msra.mxu0 %v12296_v28  ;;  %11337 = vmatpush3.bf16.msra.mxu1 %v12297_v13  ;;  %v12325_v13 = vld [vmem:[#allocation9 + $0xb90] sm:$0xff]  }
 0x2ac   :  { %11338 = vmatprep.subr.bf16.mxu1 %v12298_v27  ;;  %11352 = vmatprep.subr.bf16.mxu0 %v12299_v24  ;;  %v12326_v24 = vld [vmem:[#allocation9 + $0xb78] sm:$0xff]  }
 0x2ae   :  { %5982 = vmatmul.mubr.bf16.vlgmr.msra.gmra.mrb[96].mxu0 %v10818_v14  ;;  %v12328_v14 = vld [vmem:[#allocation9 + $0xb38] sm:$0xff]  }
 0x2af   :  { %11339 = vmatpush3.bf16.msra.mxu1 %v12300_v12  ;;  %11353 = vmatpush3.bf16.msra.mxu0 %v12301_v56  ;;  %v12327_v12 = vld [vmem:[#allocation9 + $0xbd8] sm:$0xff]   ;;  %v13931_v56 = vld [vmem:[#allocation37_spill] sm:$0xff] }
 0x2b0   :  { %6061 = vmatprep.mubr.bf16.mxu0 %v10823_v3  ;;  %11340 = vmatprep.subr.bf16.mxu1 %v12302_v54  ;;  %v1282_v54 = vmul.f32 %v13111_v59, %v13931_v56  ;;  %vm1191_vm0 = vcmp.gt.f32.partialorder %v13931_v56, 0.0  ;;  %v12329_v3 = vld [vmem:[#allocation9 + $0xb98] sm:$0xff]  }
 0x2b1   :  { %v11038_v50 = vpop.f32.mrb[56].mxu1  ;;  %11354 = vmatprep.subr.bf16.mxu0 %v12303_v58  ;;  %v1287_v58 = vmul.f32 %v13111_v59, %v13487_v36 }
 0x2b2   :  { %v11039_v43 = vpop.f32.mrb[57].mxu1 }
 0x2b3   :  { %v11040_v60 = vadd.f32 %v11039_v43, %v11038_v50  ;;  %v11041_v15 = vpop.f32.mrb[58].mxu1  ;;  %11341 = vmatpush3.bf16.msra.mxu1 %v12304_v38  ;;  %11355 = vmatpush3.bf16.msra.mxu0 %v12305_v49  ;;  %v12330_v38 = vld [vmem:[#allocation9 + $0xbe0] sm:$0xff]   ;;  %v12334_v43 = vld [vmem:[#allocation9 + $0xbe8] sm:$0xff]  }
 0x2b4   :  { %v11042_v61 = vpop.f32.mrb[59].mxu1  ;;  %11342 = vmatprep.subr.bf16.mxu1 %v12306_v7  ;;  %11356 = vmatprep.subr.bf16.mxu0 %v12307_v52  ;;  %v12331_v49 = vld [vmem:[#allocation9 + $0xc40] sm:$0xff]   ;;  %v1372_v7 = vsel %vm1191_vm0, %v13931_v56, %v1282_v54  ;;  %v12335_v15 = vld [vmem:[#allocation9 + $0xc48] sm:$0xff]   ;;  %v12355_v56 = vld [vmem:[#allocation9 + $0xcd0] sm:$0xff]  }
 0x2b5   :  { %v3419_v9 = vadd.f32 %v11040_v60, %v3379_v21  ;;  %v12323_v21 = vld [vmem:[#allocation9 + $0xbd0] sm:$0xff]   ;;  %v12332_v52 = vld [vmem:[#allocation9 + $0xba0] sm:$0xff]   ;;  %v1377_v60 = vsel %vm1196_vm1, %v13487_v36, %v1287_v58  ;;  %v12336_v61 = vld [vmem:[#allocation9 + $0xba8] sm:$0xff]  }
 0x2b6   :  { %v12333_v50 = vld [vmem:[#allocation9 + $0xc00] sm:$0xff]  }
 0x2b7   :  { %11343 = vmatpush3.bf16.msra.mxu1 %v12308_v31  ;;  %11357 = vmatpush3.bf16.msra.mxu0 %v12309_v62  ;;  %v10822_v31 = vpack.c.bf16 %v1372_v7, %v1372_v7  ;;  %v10827_v62 = vpack.c.bf16 %v1377_v60, %v1377_v60 }
 0x2b8   :  { %11344 = vmatprep.subr.bf16.mxu1 %v12310_v16  ;;  %11358 = vmatprep.subr.bf16.mxu0 %v12311_v19  ;;  %v12337_v16 = vld [vmem:[#allocation9 + $0xc08] sm:$0xff]   ;;  %v12338_v19 = vld [vmem:[#allocation9 + $0xbf0] sm:$0xff]  }
 0x2bb   :  { %11345 = vmatpush3.bf16.msra.mxu1 %v12312_v11  ;;  %11359 = vmatpush3.bf16.msra.mxu0 %v12313_v47  ;;  %v12341_v11 = vld [vmem:[#allocation9 + $0xc10] sm:$0xff]  }
 0x2bc   :  { %11360 = vmatprep.subr.bf16.mxu0 %v12314_v53  ;;  %11374 = vmatprep.subr.bf16.mxu1 %v12315_v20  ;;  %v12342_v53 = vld [vmem:[#allocation9 + $0xbf8] sm:$0xff]  }
 0x2be   :  { %6022 = vmatmul.mubr.bf16.vlgmr.msra.gmra.mrb[84].mxu1 %v10820_v29  ;;  %v12344_v29 = vld [vmem:[#allocation9 + $0xbb8] sm:$0xff]  }
 0x2bf   :  { %11361 = vmatpush3.bf16.msra.mxu0 %v12316_v63  ;;  %11375 = vmatpush3.bf16.msra.mxu1 %v12317_v37  ;;  %v13932_v63 = vld [vmem:[#allocation47_spill] sm:$0xff] }
 0x2c0   :  { %6101 = vmatprep.mubr.bf16.mxu1 %v10825_v55  ;;  %11362 = vmatprep.subr.bf16.mxu0 %v12318_v17  ;;  %v1284_v37 = vmul.f32 %v13111_v59, %v13932_v63  ;;  %vm1193_vm2 = vcmp.gt.f32.partialorder %v13932_v63, 0.0  ;;  %v12345_v55 = vld [vmem:[#allocation9 + $0xc18] sm:$0xff]  }
 0x2c1   :  { %v11060_v57 = vpop.f32.mrb[72].mxu0  ;;  %11376 = vmatprep.subr.bf16.mxu1 %v12319_v23  ;;  %v1289_v23 = vmul.f32 %v13111_v59, %v13933_v25 }
 0x2c2   :  { %v11061_v28 = vpop.f32.mrb[73].mxu0 }
 0x2c3   :  { %v11062_v22 = vadd.f32 %v11061_v28, %v11060_v57  ;;  %v11063_v27 = vpop.f32.mrb[74].mxu0  ;;  %11363 = vmatpush3.bf16.msra.mxu0 %v12320_v8  ;;  %11377 = vmatpush3.bf16.msra.mxu1 %v12321_v26  ;;  %v12346_v8 = vld [vmem:[#allocation9 + $0xc60] sm:$0xff]   ;;  %v1379_v28 = vsel %vm1198_vm3, %v13933_v25, %v1289_v23  ;;  %v12373_v23 = vld [vmem:[#allocation9 + $0xd10] sm:$0xff]   ;;  %vm1214_vm3 = vcmp.gt.f32.partialorder %v13433_v45, 0.0 }
 0x2c4   :  { %v11064_v42 = vpop.f32.mrb[75].mxu0  ;;  %11364 = vmatprep.subr.bf16.mxu0 %v12322_v6  ;;  %11378 = vmatprep.subr.bf16.mxu1 %v12323_v21  ;;  %v12347_v26 = vld [vmem:[#allocation9 + $0xcc0] sm:$0xff]   ;;  %v1374_v6 = vsel %vm1193_vm2, %v13932_v63, %v1284_v37  ;;  %v10829_v27 = vpack.c.bf16 %v1379_v28, %v1379_v28  ;;  %v12372_v37 = vld [vmem:[#allocation9 + $0xcb0] sm:$0xff]  }
 0x2c5   :  { %v3459_v5 = vadd.f32 %v11062_v22, %v3419_v9  ;;  %v12340_v9 = vld [vmem:[#allocation9 + $0xbb0] sm:$0xff]   ;;  %v12348_v21 = vld [vmem:[#allocation9 + $0xc20] sm:$0xff]   ;;  %v10824_v22 = vpack.c.bf16 %v1374_v6, %v1374_v6  ;;  %v12353_v42 = vld [vmem:[#allocation9 + $0xc88] sm:$0xff]  }
 0x2c6   :  { %v12349_v57 = vld [vmem:[#allocation9 + $0xc80] sm:$0xff]   ;;  %v12375_v6 = vld [vmem:[#allocation9 + $0xd58] sm:$0xff]  }
 0x2c7   :  { %11365 = vmatpush3.bf16.msra.mxu0 %v12324_v44  ;;  %11379 = vmatpush3.bf16.msra.mxu1 %v12325_v13  ;;  %v12350_v44 = vld [vmem:[#allocation9 + $0xc68] sm:$0xff]  }
 0x2c8   :  { %11366 = vmatprep.subr.bf16.mxu0 %v12326_v24  ;;  %11380 = vmatprep.subr.bf16.mxu1 %v12327_v12  ;;  %v12351_v13 = vld [vmem:[#allocation9 + $0xcc8] sm:$0xff]   ;;  %v12354_v12 = vld [vmem:[#allocation9 + $0xc70] sm:$0xff]  }
 0x2c9   :  { %v12352_v24 = vld [vmem:[#allocation9 + $0xc28] sm:$0xff]  }
 0x2cb   :  { %11367 = vmatpush3.bf16.msra.mxu0 %v12328_v14  ;;  %11381 = vmatpush3.bf16.msra.mxu1 %v12329_v3  ;;  %v12357_v14 = vld [vmem:[#allocation9 + $0xc90] sm:$0xff]  }
 0x2cc   :  { %11382 = vmatprep.subr.bf16.mxu1 %v12330_v38  ;;  %11396 = vmatprep.subr.bf16.mxu0 %v12331_v49  ;;  %v12358_v49 = vld [vmem:[#allocation9 + $0xc78] sm:$0xff]  }
 0x2ce   :  { %6062 = vmatmul.mubr.bf16.vlgmr.msra.gmra.mrb[100].mxu0 %v10822_v31  ;;  %v12361_v31 = vld [vmem:[#allocation9 + $0xc98] sm:$0xff]  }
 0x2cf   :  { %11383 = vmatpush3.bf16.msra.mxu1 %v12332_v52  ;;  %11397 = vmatpush3.bf16.msra.mxu0 %v12333_v50  ;;  %v12359_v52 = vld [vmem:[#allocation9 + $0xcd8] sm:$0xff]   ;;  %v1286_v50 = vmul.f32 %v13111_v59, %v13482_v10 }
 0x2d0   :  { %6141 = vmatprep.mubr.bf16.mxu0 %v10827_v62  ;;  %11384 = vmatprep.subr.bf16.mxu1 %v12334_v43  ;;  %v13934_v43 = vld [vmem:[#allocation30_spill] sm:$0xff]  ;;  %v12362_v62 = vld [vmem:[#allocation9 + $0xce0] sm:$0xff]  }
 0x2d1   :  { %v11082_v30 = vpop.f32.mrb[60].mxu1  ;;  %11398 = vmatprep.subr.bf16.mxu0 %v12335_v15  ;;  %v1291_v60 = vmul.f32 %v13111_v59, %v13934_v43  ;;  %v12360_v15 = vld [vmem:[#allocation9 + $0xc38] sm:$0xff]   ;;  %vm1200_vm5 = vcmp.gt.f32.partialorder %v13934_v43, 0.0 }
 0x2d2   :  { %v11083_v33 = vpop.f32.mrb[61].mxu1 }
 0x2d3   :  { %v11084_v36 = vadd.f32 %v11083_v33, %v11082_v30  ;;  %v11085_v47 = vpop.f32.mrb[62].mxu1  ;;  %11385 = vmatpush3.bf16.msra.mxu1 %v12336_v61  ;;  %11399 = vmatpush3.bf16.msra.mxu0 %v12337_v16  ;;  %v12363_v61 = vld [vmem:[#allocation9 + $0xd40] sm:$0xff]   ;;  %v1376_v16 = vsel %vm1195_vm4, %v13482_v10, %v1286_v50  ;;  %v12366_v30 = vld [vmem:[#allocation9 + $0xce8] sm:$0xff]   ;;  %v12371_v10 = vld [vmem:[#allocation9 + $0xd50] sm:$0xff]  }
 0x2d4   :  { %v11086_v20 = vpop.f32.mrb[63].mxu1  ;;  %11386 = vmatprep.subr.bf16.mxu1 %v12338_v19  ;;  %11400 = vmatprep.subr.bf16.mxu0 %v12339_v51  ;;  %v12364_v19 = vld [vmem:[#allocation9 + $0xca0] sm:$0xff]   ;;  %v12367_v33 = vld [vmem:[#allocation9 + $0xd48] sm:$0xff]  }
 0x2d5   :  { %v13665_v17 = vadd.f32 %v11084_v36, %v3459_v5  ;;  %v12356_v5 = vld [vmem:[#allocation9 + $0xc30] sm:$0xff]   ;;  %v12365_v51 = vld [vmem:[#allocation9 + $0xd00] sm:$0xff]   ;;  %v12368_v47 = vld [vmem:[#allocation9 + $0xca8] sm:$0xff]  }
 0x2d6   :  { %v12370_v20 = vld [vmem:[#allocation9 + $0xcf0] sm:$0xff]  }
 0x2d7   :  { %11387 = vmatpush3.bf16.msra.mxu1 %v12340_v9  ;;  %11401 = vmatpush3.bf16.msra.mxu0 %v12341_v11  ;;  %v1381_v9 = vsel %vm1200_vm5, %v13934_v43, %v1291_v60  ;;  %v10826_v11 = vpack.c.bf16 %v1376_v16, %v1376_v16  ;;  %v12390_v16 = vld [vmem:[#allocation9 + $0xd78] sm:$0xff]   ;;  %vm1216_vm5 = vcmp.gt.f32.partialorder %v13507_v2, 0.0 }
 0x2d8   :  { %11388 = vmatprep.subr.bf16.mxu1 %v12342_v53  ;;  %11402 = vmatprep.subr.bf16.mxu0 %v12343_v18  ;;  %v10831_v36 = vpack.c.bf16 %v1381_v9, %v1381_v9  ;;  %v12369_v53 = vld [vmem:[#allocation9 + $0xd08] sm:$0xff]  }
 0x2d9   :  { %v13935_v18 = vld [vmem:[#allocation20_spill] sm:$0xff] }
 0x2da   :  { %vm1197_vm6 = vcmp.gt.f32.partialorder %v13935_v18, 0.0 }
 0x2db   :  { %11389 = vmatpush3.bf16.msra.mxu1 %v12344_v29  ;;  %11403 = vmatpush3.bf16.msra.mxu0 %v12345_v55 }
 0x2dc   :  { %11404 = vmatprep.subr.bf16.mxu0 %v12346_v8  ;;  %11418 = vmatprep.subr.bf16.mxu1 %v12347_v26  ;;  %v12374_v8 = vld [vmem:[#allocation9 + $0xcf8] sm:$0xff]  }
 0x2de   :  { %6102 = vmatmul.mubr.bf16.vlgmr.msra.gmra.mrb[88].mxu1 %v10824_v22  ;;  %v12377_v22 = vld [vmem:[#allocation9 + $0xd18] sm:$0xff]  }
 0x2df   :  { %11405 = vmatpush3.bf16.msra.mxu0 %v12348_v21  ;;  %11419 = vmatpush3.bf16.msra.mxu1 %v12349_v57  ;;  %v1288_v21 = vmul.f32 %v13111_v59, %v13935_v18 }
 0x2e0   :  { %6863 = vmatprep.mubr.bf16.mxu1 %v10829_v27  ;;  %11406 = vmatprep.subr.bf16.mxu0 %v12350_v44  ;;  %v13936_v44 = vld [vmem:[#allocation40_spill] sm:$0xff] }
 0x2e1   :  { %v11104_v54 = vpop.f32.mrb[76].mxu0  ;;  %11420 = vmatprep.subr.bf16.mxu1 %v12351_v13  ;;  %v1293_v28 = vmul.f32 %v13111_v59, %v13936_v44  ;;  %v12376_v13 = vld [vmem:[#allocation9 + $0xcb8] sm:$0xff]   ;;  %v12378_v27 = vld [vmem:[#allocation9 + $0xd60] sm:$0xff]   ;;  %vm1202_vm7 = vcmp.gt.f32.partialorder %v13936_v44, 0.0 }
 0x2e2   :  { %v11105_v58 = vpop.f32.mrb[77].mxu0 }
 0x2e3   :  { %v11106_v3 = vadd.f32 %v11105_v58, %v11104_v54  ;;  %v11107_v38 = vpop.f32.mrb[78].mxu0  ;;  %11407 = vmatpush3.bf16.msra.mxu0 %v12352_v24  ;;  %11421 = vmatpush3.bf16.msra.mxu1 %v12353_v42  ;;  %v12379_v24 = vld [vmem:[#allocation9 + $0xdc0] sm:$0xff]   ;;  %v1378_v42 = vsel %vm1197_vm6, %v13935_v18, %v1288_v21  ;;  %v12382_v54 = vld [vmem:[#allocation9 + $0xd68] sm:$0xff]   ;;  %vm1213_vm6 = vcmp.gt.f32.partialorder %v13430_v48, 0.0 }
 0x2e4   :  { %v11108_v7 = vpop.f32.mrb[79].mxu0  ;;  %11408 = vmatprep.subr.bf16.mxu0 %v12354_v12  ;;  %11422 = vmatprep.subr.bf16.mxu1 %v12355_v56  ;;  %v12380_v12 = vld [vmem:[#allocation9 + $0xd20] sm:$0xff]   ;;  %v12383_v58 = vld [vmem:[#allocation9 + $0xdc8] sm:$0xff]  }
 0x2e5   :  { %v12381_v56 = vld [vmem:[#allocation9 + $0xd80] sm:$0xff]   ;;  %v12384_v38 = vld [vmem:[#allocation9 + $0xd28] sm:$0xff]   ;;  %v12386_v7 = vld [vmem:[#allocation9 + $0xd70] sm:$0xff]  }
 0x2e6   :  { %v12396_v18 = vld [vmem:[#allocation9 + $0xda0] sm:$0xff]  }
 0x2e7   :  { %11409 = vmatpush3.bf16.msra.mxu0 %v12356_v5  ;;  %11423 = vmatpush3.bf16.msra.mxu1 %v12357_v14  ;;  %v1383_v5 = vsel %vm1202_vm7, %v13936_v44, %v1293_v28  ;;  %v10828_v14 = vpack.c.bf16 %v1378_v42, %v1378_v42  ;;  %v12405_v28 = vld [vmem:[#allocation9 + $0xe10] sm:$0xff]   ;;  %v13938_v42 = vld [vmem:[#allocation39_spill] sm:$0xff] }
 0x2e8   :  { %11410 = vmatprep.subr.bf16.mxu0 %v12358_v49  ;;  %11424 = vmatprep.subr.bf16.mxu1 %v12359_v52  ;;  %v12385_v49 = vld [vmem:[#allocation9 + $0xd88] sm:$0xff]   ;;  %v12387_v52 = vld [vmem:[#allocation9 + $0xdd0] sm:$0xff]   ;;  %vm1201_vm10 = vcmp.gt.f32.partialorder %v13938_v42, 0.0 }
 0x2eb   :  { %11411 = vmatpush3.bf16.msra.mxu0 %v12360_v15  ;;  %11425 = vmatpush3.bf16.msra.mxu1 %v12361_v31  ;;  %v12388_v31 = vld [vmem:[#allocation9 + $0xd30] sm:$0xff]  }
 0x2ec   :  { %11426 = vmatprep.subr.bf16.mxu1 %v12362_v62  ;;  %11440 = vmatprep.subr.bf16.mxu0 %v12363_v61  ;;  %v12389_v62 = vld [vmem:[#allocation9 + $0xd90] sm:$0xff]  }
 0x2ee   :  { %6142 = vmatmul.mubr.bf16.vlgmr.msra.gmra.mrb[104].mxu0 %v10826_v11  ;;  %v12392_v11 = vld [vmem:[#allocation9 + $0xd38] sm:$0xff]  }
 0x2ef   :  { %11427 = vmatpush3.bf16.msra.mxu1 %v12364_v19  ;;  %11441 = vmatpush3.bf16.msra.mxu0 %v12365_v51  ;;  %v12391_v19 = vld [vmem:[#allocation9 + $0xdd8] sm:$0xff]   ;;  %v13937_v51 = vld [vmem:[#allocation28_spill] sm:$0xff] }
 0x2f0   :  { %6903 = vmatprep.mubr.bf16.mxu0 %v10831_v36  ;;  %11428 = vmatprep.subr.bf16.mxu1 %v12366_v30  ;;  %vm1199_vm8 = vcmp.gt.f32.partialorder %v13937_v51, 0.0  ;;  %v1290_v30 = vmul.f32 %v13111_v59, %v13937_v51  ;;  %v12393_v36 = vld [vmem:[#allocation9 + $0xd98] sm:$0xff]  }
 0x2f1   :  { %v11126_v63 = vpop.f32.mrb[64].mxu1  ;;  %11442 = vmatprep.subr.bf16.mxu0 %v12367_v33  ;;  %v1295_v33 = vmul.f32 %v13111_v59, %v13425_v40 }
 0x2f2   :  { %v11127_v25 = vpop.f32.mrb[65].mxu1 }
 0x2f3   :  { %v11128_v29 = vadd.f32 %v11127_v25, %v11126_v63  ;;  %v11129_v55 = vpop.f32.mrb[66].mxu1  ;;  %11429 = vmatpush3.bf16.msra.mxu1 %v12368_v47  ;;  %11443 = vmatpush3.bf16.msra.mxu0 %v12369_v53  ;;  %v12394_v47 = vld [vmem:[#allocation9 + $0xde0] sm:$0xff]   ;;  %v12398_v63 = vld [vmem:[#allocation9 + $0xde8] sm:$0xff]  }
 0x2f4   :  { %v11130_v26 = vpop.f32.mrb[67].mxu1  ;;  %11430 = vmatprep.subr.bf16.mxu1 %v12370_v20  ;;  %11444 = vmatprep.subr.bf16.mxu0 %v12371_v10  ;;  %v12395_v53 = vld [vmem:[#allocation9 + $0xe40] sm:$0xff]   ;;  %v1380_v20 = vsel %vm1199_vm8, %v13937_v51, %v1290_v30  ;;  %v12399_v25 = vld [vmem:[#allocation9 + $0xe48] sm:$0xff]   ;;  %v12420_v51 = vld [vmem:[#allocation9 + $0xe30] sm:$0xff]   ;;  %vm1215_vm8 = vcmp.gt.f32.partialorder %v13504_v35, 0.0 }
 0x2f5   :  { %v4260_v57 = vadd.f32 %v11128_v29, %v11106_v3  ;;  %v10833_v3 = vpack.c.bf16 %v1383_v5, %v1383_v5  ;;  %v12397_v10 = vld [vmem:[#allocation9 + $0xe00] sm:$0xff]   ;;  %v12400_v55 = vld [vmem:[#allocation9 + $0xda8] sm:$0xff]   ;;  %v12402_v26 = vld [vmem:[#allocation9 + $0xdf0] sm:$0xff]  }
 0x2f6   :  { %v12408_v5 = vld [vmem:[#allocation9 + $0xdb8] sm:$0xff]  }
 0x2f7   :  { %11431 = vmatpush3.bf16.msra.mxu1 %v12372_v37  ;;  %11445 = vmatpush3.bf16.msra.mxu0 %v12373_v23  ;;  %v1385_v37 = vsel %vm1204_vm9, %v13425_v40, %v1295_v33  ;;  %v10830_v23 = vpack.c.bf16 %v1380_v20, %v1380_v20 }
 0x2f8   :  { %11432 = vmatprep.subr.bf16.mxu1 %v12374_v8  ;;  %11446 = vmatprep.subr.bf16.mxu0 %v12375_v6  ;;  %v10835_v29 = vpack.c.bf16 %v1385_v37, %v1385_v37  ;;  %v12401_v8 = vld [vmem:[#allocation9 + $0xe08] sm:$0xff]   ;;  %v12403_v6 = vld [vmem:[#allocation9 + $0xe50] sm:$0xff]   ;;  %v12424_v37 = vld [vmem:[#allocation9 + $0xe38] sm:$0xff]  }
 0x2fb   :  { %11433 = vmatpush3.bf16.msra.mxu1 %v12376_v13  ;;  %11447 = vmatpush3.bf16.msra.mxu0 %v12377_v22  ;;  %v12406_v22 = vld [vmem:[#allocation9 + $0xdf8] sm:$0xff]  }
 0x2fc   :  { %11448 = vmatprep.subr.bf16.mxu0 %v12378_v27  ;;  %11462 = vmatprep.subr.bf16.mxu1 %v12379_v24  ;;  %v12407_v24 = vld [vmem:[#allocation9 + $0xe58] sm:$0xff]  }
 0x2fe   :  { %6864 = vmatmul.mubr.bf16.vlgmr.msra.gmra.mrb[92].mxu1 %v10828_v14  ;;  %v12410_v14 = vld [vmem:[#allocation9 + $0xe60] sm:$0xff]  }
 0x2ff   :  { %11449 = vmatpush3.bf16.msra.mxu0 %v12380_v12  ;;  %11463 = vmatpush3.bf16.msra.mxu1 %v12381_v56  ;;  %v1292_v12 = vmul.f32 %v13111_v59, %v13938_v42 }
 0x300   :  { %6943 = vmatprep.mubr.bf16.mxu1 %v10833_v3  ;;  %11450 = vmatprep.subr.bf16.mxu0 %v12382_v54  ;;  %v1297_v54 = vmul.f32 %v13111_v59, %v13497_v46  ;;  %v12411_v3 = vld [vmem:[#allocation9 + $0xec0] sm:$0xff]  }
 0x301   :  { %v11148_v50 = vpop.f32.mrb[80].mxu0  ;;  %11464 = vmatprep.subr.bf16.mxu1 %v12383_v58  ;;  %v12409_v58 = vld [vmem:[#allocation9 + $0xe18] sm:$0xff]  }
 0x302   :  { %v11149_v43 = vpop.f32.mrb[81].mxu0 }
 0x303   :  { %v11150_v60 = vadd.f32 %v11149_v43, %v11148_v50  ;;  %v11151_v15 = vpop.f32.mrb[82].mxu0  ;;  %11451 = vmatpush3.bf16.msra.mxu0 %v12384_v38  ;;  %11465 = vmatpush3.bf16.msra.mxu1 %v12385_v49  ;;  %v1382_v38 = vsel %vm1201_vm10, %v13938_v42, %v1292_v12  ;;  %v12412_v49 = vld [vmem:[#allocation9 + $0xe20] sm:$0xff]   ;;  %v1387_v50 = vsel %vm1206_vm11, %v13497_v46, %v1297_v54  ;;  %v12415_v43 = vld [vmem:[#allocation9 + $0xec8] sm:$0xff]   ;;  %v12437_v42 = vld [vmem:[#allocation9 + $0xf10] sm:$0xff]  }
 0x304   :  { %v11152_v61 = vpop.f32.mrb[83].mxu0  ;;  %11452 = vmatprep.subr.bf16.mxu0 %v12386_v7  ;;  %11466 = vmatprep.subr.bf16.mxu1 %v12387_v52  ;;  %v12413_v7 = vld [vmem:[#allocation9 + $0xe80] sm:$0xff]   ;;  %v12414_v52 = vld [vmem:[#allocation9 + $0xe68] sm:$0xff]   ;;  %v10837_v15 = vpack.c.bf16 %v1387_v50, %v1387_v50  ;;  %v12438_v54 = vld [vmem:[#allocation9 + $0xef8] sm:$0xff]  }
 0x305   :  { %v4300_v9 = vadd.f32 %v11150_v60, %v4260_v57  ;;  %v12404_v57 = vld [vmem:[#allocation9 + $0xdb0] sm:$0xff]   ;;  %v10832_v60 = vpack.c.bf16 %v1382_v38, %v1382_v38  ;;  %v12443_v50 = vld [vmem:[#allocation9 + $0xfc0] sm:$0xff]  }
 0x306   :  { %v12418_v61 = vld [vmem:[#allocation9 + $0xe70] sm:$0xff]  }
 0x307   :  { %11453 = vmatpush3.bf16.msra.mxu0 %v12388_v31  ;;  %11467 = vmatpush3.bf16.msra.mxu1 %v12389_v62  ;;  %v12416_v31 = vld [vmem:[#allocation9 + $0xe28] sm:$0xff]  }
 0x308   :  { %11454 = vmatprep.subr.bf16.mxu0 %v12390_v16  ;;  %11468 = vmatprep.subr.bf16.mxu1 %v12391_v19  ;;  %v12417_v62 = vld [vmem:[#allocation9 + $0xe88] sm:$0xff]   ;;  %v12419_v16 = vld [vmem:[#allocation9 + $0xed0] sm:$0xff]  }
 0x30b   :  { %11455 = vmatpush3.bf16.msra.mxu0 %v12392_v11  ;;  %11469 = vmatpush3.bf16.msra.mxu1 %v12393_v36  ;;  %v12422_v11 = vld [vmem:[#allocation9 + $0xe78] sm:$0xff]  }
 0x30c   :  { %11470 = vmatprep.subr.bf16.mxu1 %v12394_v47  ;;  %11484 = vmatprep.subr.bf16.mxu0 %v12395_v53  ;;  %v12423_v47 = vld [vmem:[#allocation9 + $0xed8] sm:$0xff]   ;;  %v1294_v53 = vmul.f32 %v13111_v59, %v13420_v41 }
 0x30e   :  { %6904 = vmatmul.mubr.bf16.vlgmr.msra.gmra.mrb[108].mxu0 %v10830_v23  ;;  %v12426_v23 = vld [vmem:[#allocation9 + $0xee0] sm:$0xff]  }
 0x30f   :  { %11471 = vmatpush3.bf16.msra.mxu1 %v12396_v18  ;;  %11485 = vmatpush3.bf16.msra.mxu0 %v12397_v10  ;;  %v13939_v18 = vld [vmem:[#allocation23_spill] sm:$0xff] }
 0x310   :  { %6983 = vmatprep.mubr.bf16.mxu0 %v10835_v29  ;;  %11472 = vmatprep.subr.bf16.mxu1 %v12398_v63  ;;  %v1299_v10 = vmul.f32 %v13111_v59, %v13939_v18  ;;  %v12427_v29 = vld [vmem:[#allocation9 + $0xf40] sm:$0xff]   ;;  %vm1208_vm13 = vcmp.gt.f32.partialorder %v13939_v18, 0.0 }
 0x311   :  { %v11170_v21 = vpop.f32.mrb[68].mxu1  ;;  %11486 = vmatprep.subr.bf16.mxu0 %v12399_v25  ;;  %v12425_v25 = vld [vmem:[#allocation9 + $0xe98] sm:$0xff]  }
 0x312   :  { %v11171_v44 = vpop.f32.mrb[69].mxu1 }
 0x313   :  { %v11172_v40 = vadd.f32 %v11171_v44, %v11170_v21  ;;  %v11173_v13 = vpop.f32.mrb[70].mxu1  ;;  %11473 = vmatpush3.bf16.msra.mxu1 %v12400_v55  ;;  %11487 = vmatpush3.bf16.msra.mxu0 %v12401_v8  ;;  %v1384_v55 = vsel %vm1203_vm12, %v13420_v41, %v1294_v53  ;;  %v12428_v8 = vld [vmem:[#allocation9 + $0xea0] sm:$0xff]   ;;  %v12431_v21 = vld [vmem:[#allocation9 + $0xf48] sm:$0xff]  }
 0x314   :  { %v11174_v27 = vpop.f32.mrb[71].mxu1  ;;  %11474 = vmatprep.subr.bf16.mxu1 %v12402_v26  ;;  %11488 = vmatprep.subr.bf16.mxu0 %v12403_v6  ;;  %v12429_v26 = vld [vmem:[#allocation9 + $0xf00] sm:$0xff]   ;;  %v12430_v6 = vld [vmem:[#allocation9 + $0xee8] sm:$0xff]   ;;  %v12434_v13 = vld [vmem:[#allocation9 + $0xef0] sm:$0xff]  }
 0x315   :  { %v4340_v56 = vadd.f32 %v11172_v40, %v4300_v9  ;;  %v12421_v9 = vld [vmem:[#allocation9 + $0xe90] sm:$0xff]   ;;  %v12433_v40 = vld [vmem:[#allocation9 + $0xf08] sm:$0xff]  }
 0x316   :  { %v12436_v27 = vld [vmem:[#allocation9 + $0xeb0] sm:$0xff]  }
 0x317   :  { %11475 = vmatpush3.bf16.msra.mxu1 %v12404_v57  ;;  %11489 = vmatpush3.bf16.msra.mxu0 %v12405_v28  ;;  %v10834_v57 = vpack.c.bf16 %v1384_v55, %v1384_v55  ;;  %v12432_v28 = vld [vmem:[#allocation9 + $0xea8] sm:$0xff]  }
 0x318   :  { %11476 = vmatprep.subr.bf16.mxu1 %v12406_v22  ;;  %11490 = vmatprep.subr.bf16.mxu0 %v12407_v24  ;;  %v12435_v22 = vld [vmem:[#allocation9 + $0xf50] sm:$0xff]  }
 0x31b   :  { %11477 = vmatpush3.bf16.msra.mxu1 %v12408_v5  ;;  %11491 = vmatpush3.bf16.msra.mxu0 %v12409_v58  ;;  %v12439_v58 = vld [vmem:[#allocation9 + $0xf58] sm:$0xff]  }
 0x31c   :  { %11492 = vmatprep.subr.bf16.mxu0 %v12410_v14  ;;  %11506 = vmatprep.subr.bf16.mxu1 %v12411_v3  ;;  %v1296_v14 = vmul.f32 %v13111_v59, %v13490_v39  ;;  %v13940_v3 = vld [vmem:[#allocation32_spill] sm:$0xff] }
 0x31d   :  { %v1301_v38 = vmul.f32 %v13111_v59, %v13940_v3  ;;  %vm1210_vm15 = vcmp.gt.f32.partialorder %v13940_v3, 0.0 }
 0x31e   :  { %6944 = vmatmul.mubr.bf16.vlgmr.msra.gmra.mrb[96].mxu1 %v10832_v60  ;;  %v12444_v60 = vld [vmem:[#allocation9 + $0xf20] sm:$0xff]  }
 0x31f   :  { %11493 = vmatpush3.bf16.msra.mxu0 %v12412_v49  ;;  %11507 = vmatpush3.bf16.msra.mxu1 %v12413_v7  ;;  %v12440_v49 = vld [vmem:[#allocation9 + $0xeb8] sm:$0xff]  }
 0x320   :  { %7023 = vmatprep.mubr.bf16.mxu1 %v10837_v15  ;;  %11494 = vmatprep.subr.bf16.mxu0 %v12414_v52  ;;  %v12441_v7 = vld [vmem:[#allocation9 + $0xf18] sm:$0xff]   ;;  %v12442_v52 = vld [vmem:[#allocation9 + $0xf60] sm:$0xff]  }
 0x321   :  { %v11192_v19 = vpop.f32.mrb[84].mxu0  ;;  %11508 = vmatprep.subr.bf16.mxu1 %v12415_v43  ;;  %v1386_v43 = vsel %vm1205_vm14, %v13490_v39, %v1296_v14  ;;  %v12445_v15 = vld [vmem:[#allocation9 + $0xf80] sm:$0xff]   ;;  %v12451_v39 = vld [vmem:[#allocation9 + $0xfd0] sm:$0xff]  }
 0x322   :  { %v11193_v30 = vpop.f32.mrb[85].mxu0  ;;  %v12468_v14 = vld [vmem:[#allocation9 + $0xfb0] sm:$0xff]  }
 0x323   :  { %v11194_v46 = vadd.f32 %v11193_v30, %v11192_v19  ;;  %v11195_v33 = vpop.f32.mrb[86].mxu0  ;;  %11495 = vmatpush3.bf16.msra.mxu0 %v12416_v31  ;;  %11509 = vmatpush3.bf16.msra.mxu1 %v12417_v62  ;;  %v12446_v31 = vld [vmem:[#allocation9 + $0xf68] sm:$0xff]   ;;  %v1391_v62 = vsel %vm1210_vm15, %v13940_v3, %v1301_v38  ;;  %v12469_v3 = vld [vmem:[#allocation9 + $0x1010] sm:$0xff]   ;;  %vm1226_vm15 = vcmp.gt.f32.partialorder %v13516_v34, 0.0 }
 0x324   :  { %v11196_v36 = vpop.f32.mrb[87].mxu0  ;;  %11496 = vmatprep.subr.bf16.mxu0 %v12418_v61  ;;  %11510 = vmatprep.subr.bf16.mxu1 %v12419_v16  ;;  %v12447_v61 = vld [vmem:[#allocation9 + $0xfc8] sm:$0xff]   ;;  %v10836_v16 = vpack.c.bf16 %v1386_v43, %v1386_v43  ;;  %v10841_v19 = vpack.c.bf16 %v1391_v62, %v1391_v62  ;;  %v12474_v62 = vld [vmem:[#allocation9 + $0x1060] sm:$0xff]  }
 0x325   :  { %v4380_v20 = vadd.f32 %v11194_v46, %v4340_v56  ;;  %v12449_v30 = vld [vmem:[#allocation9 + $0xf88] sm:$0xff]   ;;  %v13941_v46 = vld [vmem:[#allocation22_spill] sm:$0xff] }
 0x326   :  { %vm1207_vm0 = vcmp.gt.f32.partialorder %v13941_v46, 0.0 }
 0x327   :  { %v13713_v63 = vadd.f32 %v4380_v20, %v13665_v17  ;;  %11497 = vmatpush3.bf16.msra.mxu0 %v12420_v51  ;;  %11511 = vmatpush3.bf16.msra.mxu1 %v12421_v9  ;;  %v1389_v17 = vsel %vm1208_vm13, %v13939_v18, %v1299_v10  ;;  %v12448_v51 = vld [vmem:[#allocation9 + $0xf28] sm:$0xff]   ;;  %v12450_v9 = vld [vmem:[#allocation9 + $0xf70] sm:$0xff]   ;;  %v12454_v18 = vld [vmem:[#allocation9 + $0xf78] sm:$0xff]   ;;  %vm1224_vm13 = vcmp.gt.f32.partialorder %v13441_v1, 0.0 }
 0x328   :  { %11498 = vmatprep.subr.bf16.mxu0 %v12422_v11  ;;  %11512 = vmatprep.subr.bf16.mxu1 %v12423_v47  ;;  %v10839_v44 = vpack.c.bf16 %v1389_v17, %v1389_v17  ;;  %v12452_v11 = vld [vmem:[#allocation9 + $0xf30] sm:$0xff]   ;;  %v12459_v17 = vld [vmem:[#allocation9 + $0x1040] sm:$0xff]  }
 0x329   :  { %v12453_v47 = vld [vmem:[#allocation9 + $0xf90] sm:$0xff]  }
 0x32b   :  { %11499 = vmatpush3.bf16.msra.mxu0 %v12424_v37  ;;  %11513 = vmatpush3.bf16.msra.mxu1 %v12425_v25  ;;  %v12455_v37 = vld [vmem:[#allocation9 + $0xfd8] sm:$0xff]   ;;  %v1298_v25 = vmul.f32 %v13111_v59, %v13941_v46 }
 0x32c   :  { %11514 = vmatprep.subr.bf16.mxu1 %v12426_v23  ;;  %11528 = vmatprep.subr.bf16.mxu0 %v12427_v29  ;;  %v13942_v29 = vld [vmem:[#allocation42_spill] sm:$0xff] }
 0x32d   :  { %v1303_v55 = vmul.f32 %v13111_v59, %v13942_v29  ;;  %vm1212_vm1 = vcmp.gt.f32.partialorder %v13942_v29, 0.0 }
 0x32e   :  { %6984 = vmatmul.mubr.bf16.vlgmr.msra.gmra.mrb[112].mxu0 %v10834_v57  ;;  %v12460_v57 = vld [vmem:[#allocation9 + $0xfa0] sm:$0xff]  }
 0x32f   :  { %11515 = vmatpush3.bf16.msra.mxu1 %v12428_v8  ;;  %11529 = vmatpush3.bf16.msra.mxu0 %v12429_v26  ;;  %v12456_v8 = vld [vmem:[#allocation9 + $0xf38] sm:$0xff]  }
 0x330   :  { %7745 = vmatprep.mubr.bf16.mxu0 %v10839_v44  ;;  %11516 = vmatprep.subr.bf16.mxu1 %v12430_v6  ;;  %v12457_v26 = vld [vmem:[#allocation9 + $0xf98] sm:$0xff]   ;;  %v12458_v6 = vld [vmem:[#allocation9 + $0xfe0] sm:$0xff]  }
 0x331   :  { %v11214_v41 = vpop.f32.mrb[72].mxu1  ;;  %11530 = vmatprep.subr.bf16.mxu0 %v12431_v21  ;;  %v1388_v21 = vsel %vm1207_vm0, %v13941_v46, %v1298_v25  ;;  %v12461_v44 = vld [vmem:[#allocation9 + $0x1000] sm:$0xff]   ;;  %v12479_v46 = vld [vmem:[#allocation9 + $0x10c8] sm:$0xff]   ;;  %vm1223_vm0 = vcmp.gt.f32.partialorder %v13438_v4, 0.0 }
 0x332   :  { %v11215_v24 = vpop.f32.mrb[73].mxu1 }
 0x333   :  { %v11216_v12 = vadd.f32 %v11215_v24, %v11214_v41  ;;  %v11217_v56 = vpop.f32.mrb[74].mxu1  ;;  %11517 = vmatpush3.bf16.msra.mxu1 %v12432_v28  ;;  %11531 = vmatpush3.bf16.msra.mxu0 %v12433_v40  ;;  %v12462_v28 = vld [vmem:[#allocation9 + $0xfe8] sm:$0xff]   ;;  %v1393_v40 = vsel %vm1212_vm1, %v13942_v29, %v1303_v55  ;;  %v12487_v55 = vld [vmem:[#allocation9 + $0x10d8] sm:$0xff]  }
 0x334   :  { %v11218_v5 = vpop.f32.mrb[75].mxu1  ;;  %11518 = vmatprep.subr.bf16.mxu1 %v12434_v13  ;;  %11532 = vmatprep.subr.bf16.mxu0 %v12435_v22  ;;  %v12463_v13 = vld [vmem:[#allocation9 + $0x1048] sm:$0xff]   ;;  %v10838_v22 = vpack.c.bf16 %v1388_v21, %v1388_v21  ;;  %v10843_v41 = vpack.c.bf16 %v1393_v40, %v1393_v40  ;;  %v12488_v21 = vld [vmem:[#allocation9 + $0x1038] sm:$0xff]  }
 0x335   :  { %v12465_v24 = vld [vmem:[#allocation9 + $0x1008] sm:$0xff]  }
 0x337   :  { %11519 = vmatpush3.bf16.msra.mxu1 %v12436_v27  ;;  %11533 = vmatpush3.bf16.msra.mxu0 %v12437_v42  ;;  %v12464_v27 = vld [vmem:[#allocation9 + $0xfa8] sm:$0xff]   ;;  %v12466_v42 = vld [vmem:[#allocation9 + $0xff0] sm:$0xff]  }
 0x338   :  { %11520 = vmatprep.subr.bf16.mxu1 %v12438_v54  ;;  %11534 = vmatprep.subr.bf16.mxu0 %v12439_v58 }
 0x33b   :  { %11521 = vmatpush3.bf16.msra.mxu1 %v12440_v49  ;;  %11535 = vmatpush3.bf16.msra.mxu0 %v12441_v7  ;;  %v12470_v49 = vld [vmem:[#allocation9 + $0xff8] sm:$0xff]  }
 0x33c   :  { %11536 = vmatprep.subr.bf16.mxu0 %v12442_v52  ;;  %11550 = vmatprep.subr.bf16.mxu1 %v12443_v50  ;;  %v12471_v7 = vld [vmem:[#allocation9 + $0x1058] sm:$0xff]  }
 0x33d   :  { %v13943_v52 = vld [vmem:[#allocation31_spill] sm:$0xff] }
 0x33e   :  { %7024 = vmatmul.mubr.bf16.vlgmr.msra.gmra.mrb[100].mxu1 %v10836_v16  ;;  %vm1209_vm2 = vcmp.gt.f32.partialorder %v13943_v52, 0.0  ;;  %v1300_v50 = vmul.f32 %v13111_v59, %v13943_v52 }
 0x33f   :  { %11537 = vmatpush3.bf16.msra.mxu0 %v12444_v60  ;;  %11551 = vmatpush3.bf16.msra.mxu1 %v12445_v15  ;;  %v1305_v60 = vmul.f32 %v13111_v59, %v13433_v45  ;;  %v12472_v15 = vld [vmem:[#allocation9 + $0xfb8] sm:$0xff]  }
 0x340   :  { %7785 = vmatprep.mubr.bf16.mxu1 %v10841_v19  ;;  %11538 = vmatprep.subr.bf16.mxu0 %v12446_v31  ;;  %v12473_v31 = vld [vmem:[#allocation9 + $0x1018] sm:$0xff]   ;;  %v1390_v16 = vsel %vm1209_vm2, %v13943_v52, %v1300_v50  ;;  %v12476_v19 = vld [vmem:[#allocation9 + $0x1020] sm:$0xff]  }
 0x341   :  { %v11236_v33 = vpop.f32.mrb[88].mxu0  ;;  %11552 = vmatprep.subr.bf16.mxu1 %v12447_v61  ;;  %v12475_v61 = vld [vmem:[#allocation9 + $0x10c0] sm:$0xff]   ;;  %v12502_v52 = vld [vmem:[#allocation9 + $0x10f8] sm:$0xff]  }
 0x342   :  { %v11237_v36 = vpop.f32.mrb[89].mxu0 }
 0x343   :  { %v11238_v53 = vadd.f32 %v11237_v36, %v11236_v33  ;;  %v11239_v20 = vpop.f32.mrb[90].mxu0  ;;  %11539 = vmatpush3.bf16.msra.mxu0 %v12448_v51  ;;  %11553 = vmatpush3.bf16.msra.mxu1 %v12449_v30  ;;  %v12477_v51 = vld [vmem:[#allocation9 + $0x1080] sm:$0xff]   ;;  %v12478_v30 = vld [vmem:[#allocation9 + $0x1068] sm:$0xff]  }
 0x344   :  { %v11240_v10 = vpop.f32.mrb[91].mxu0  ;;  %11540 = vmatprep.subr.bf16.mxu0 %v12450_v9  ;;  %11554 = vmatprep.subr.bf16.mxu1 %v12451_v39  ;;  %v1395_v9 = vsel %vm1214_vm3, %v13433_v45, %v1305_v60  ;;  %v10840_v39 = vpack.c.bf16 %v1390_v16, %v1390_v16  ;;  %v12481_v36 = vld [vmem:[#allocation9 + $0x1088] sm:$0xff]   ;;  %v1304_v60 = vmul.f32 %v13111_v59, %v13430_v48  ;;  %v12504_v16 = vld [vmem:[#allocation9 + $0x10b8] sm:$0xff]  }
 0x345   :  { %v5142_v23 = vadd.f32 %v11238_v53, %v11216_v12  ;;  %v12467_v12 = vld [vmem:[#allocation9 + $0x1050] sm:$0xff]   ;;  %v10845_v33 = vpack.c.bf16 %v1395_v9, %v1395_v9 }
 0x346   :  { %v12483_v53 = vld [vmem:[#allocation9 + $0x10d0] sm:$0xff]   ;;  %v1394_v9 = vsel %vm1213_vm6, %v13430_v48, %v1304_v60  ;;  %v13947_v60 = vld [vmem:[#allocation24_spill] sm:$0xff] }
 0x347   :  { %11541 = vmatpush3.bf16.msra.mxu0 %v12452_v11  ;;  %11555 = vmatpush3.bf16.msra.mxu1 %v12453_v47  ;;  %v12480_v11 = vld [vmem:[#allocation9 + $0x1028] sm:$0xff]   ;;  %v12482_v47 = vld [vmem:[#allocation9 + $0x1070] sm:$0xff]   ;;  %vm1217_vm10 = vcmp.gt.f32.partialorder %v13947_v60, 0.0 }
 0x348   :  { %11542 = vmatprep.subr.bf16.mxu0 %v12454_v18  ;;  %11556 = vmatprep.subr.bf16.mxu1 %v12455_v37  ;;  %v12484_v18 = vld [vmem:[#allocation9 + $0x1030] sm:$0xff]  }
 0x349   :  { %v12485_v37 = vld [vmem:[#allocation9 + $0x1090] sm:$0xff]  }
 0x34a   :  { %v12514_v48 = vld [vmem:[#allocation9 + $0x1170] sm:$0xff]  }
 0x34b   :  { %11543 = vmatpush3.bf16.msra.mxu0 %v12456_v8  ;;  %11557 = vmatpush3.bf16.msra.mxu1 %v12457_v26  ;;  %v13944_v8 = vld [vmem:[#allocation41_spill] sm:$0xff] }
 0x34c   :  { %11558 = vmatprep.subr.bf16.mxu1 %v12458_v6  ;;  %11572 = vmatprep.subr.bf16.mxu0 %v12459_v17  ;;  %v1302_v26 = vmul.f32 %v13111_v59, %v13944_v8  ;;  %vm1211_vm4 = vcmp.gt.f32.partialorder %v13944_v8, 0.0  ;;  %v1307_v17 = vmul.f32 %v13111_v59, %v13507_v2 }
 0x34e   :  { %7746 = vmatmul.mubr.bf16.vlgmr.msra.gmra.mrb[116].mxu0 %v10838_v22  ;;  %v1392_v40 = vsel %vm1211_vm4, %v13944_v8, %v1302_v26  ;;  %v12493_v22 = vld [vmem:[#allocation9 + $0x1100] sm:$0xff]   ;;  %v12518_v8 = vld [vmem:[#allocation9 + $0x1178] sm:$0xff]  }
 0x34f   :  { %11559 = vmatpush3.bf16.msra.mxu1 %v12460_v57  ;;  %11573 = vmatpush3.bf16.msra.mxu0 %v12461_v44  ;;  %v12489_v57 = vld [vmem:[#allocation9 + $0x1098] sm:$0xff]   ;;  %v12490_v44 = vld [vmem:[#allocation9 + $0x10e0] sm:$0xff]  }
 0x350   :  { %7825 = vmatprep.mubr.bf16.mxu0 %v10843_v41  ;;  %11560 = vmatprep.subr.bf16.mxu1 %v12462_v28  ;;  %v12491_v28 = vld [vmem:[#allocation9 + $0x1140] sm:$0xff]   ;;  %v12494_v41 = vld [vmem:[#allocation9 + $0x10e8] sm:$0xff]   ;;  %v12519_v26 = vld [vmem:[#allocation9 + $0x11d8] sm:$0xff]  }
 0x351   :  { %v11258_v56 = vpop.f32.mrb[76].mxu1  ;;  %11574 = vmatprep.subr.bf16.mxu0 %v12463_v13  ;;  %v12492_v13 = vld [vmem:[#allocation9 + $0x10a0] sm:$0xff]  }
 0x352   :  { %v11259_v54 = vpop.f32.mrb[77].mxu1 }
 0x353   :  { %v11260_v5 = vadd.f32 %v11259_v54, %v11258_v56  ;;  %v11261_v58 = vpop.f32.mrb[78].mxu1  ;;  %11561 = vmatpush3.bf16.msra.mxu1 %v12464_v27  ;;  %11575 = vmatpush3.bf16.msra.mxu0 %v12465_v24  ;;  %v1397_v27 = vsel %vm1216_vm5, %v13507_v2, %v1307_v17  ;;  %v12495_v24 = vld [vmem:[#allocation9 + $0x1148] sm:$0xff]   ;;  %v13946_v17 = vld [vmem:[#allocation34_spill] sm:$0xff] }
 0x354   :  { %v11262_v38 = vpop.f32.mrb[79].mxu1  ;;  %11562 = vmatprep.subr.bf16.mxu1 %v12466_v42  ;;  %11576 = vmatprep.subr.bf16.mxu0 %v12467_v12  ;;  %v10842_v42 = vpack.c.bf16 %v1392_v40, %v1392_v40  ;;  %v10847_v12 = vpack.c.bf16 %v1397_v27, %v1397_v27  ;;  %v12496_v56 = vld [vmem:[#allocation9 + $0x10a8] sm:$0xff]   ;;  %v12499_v58 = vld [vmem:[#allocation9 + $0x1150] sm:$0xff]   ;;  %v12523_v40 = vld [vmem:[#allocation9 + $0x1240] sm:$0xff]   ;;  %vm1220_vm9 = vcmp.gt.f32.partialorder %v13946_v17, 0.0 }
 0x355   :  { %v5182_v43 = vadd.f32 %v11260_v5, %v5142_v23  ;;  %v12486_v23 = vld [vmem:[#allocation9 + $0x1078] sm:$0xff]   ;;  %v12497_v54 = vld [vmem:[#allocation9 + $0x1108] sm:$0xff]   ;;  %v12498_v5 = vld [vmem:[#allocation9 + $0x10f0] sm:$0xff]  }
 0x357   :  { %11563 = vmatpush3.bf16.msra.mxu1 %v12468_v14  ;;  %11577 = vmatpush3.bf16.msra.mxu0 %v12469_v3  ;;  %v12500_v3 = vld [vmem:[#allocation9 + $0x10b0] sm:$0xff]  }
 0x358   :  { %11564 = vmatprep.subr.bf16.mxu1 %v12470_v49  ;;  %11578 = vmatprep.subr.bf16.mxu0 %v12471_v7  ;;  %v12501_v49 = vld [vmem:[#allocation9 + $0x1110] sm:$0xff]  }
 0x35b   :  { %11565 = vmatpush3.bf16.msra.mxu1 %v12472_v15  ;;  %11579 = vmatpush3.bf16.msra.mxu0 %v12473_v31  ;;  %v13945_v31 = vld [vmem:[#allocation25_spill] sm:$0xff] }
 0x35c   :  { %11580 = vmatprep.subr.bf16.mxu0 %v12474_v62  ;;  %11594 = vmatprep.subr.bf16.mxu1 %v12475_v61  ;;  %v1309_v62 = vmul.f32 %v13111_v59, %v13945_v31  ;;  %vm1218_vm7 = vcmp.gt.f32.partialorder %v13945_v31, 0.0 }
 0x35e   :  { %7786 = vmatmul.mubr.bf16.vlgmr.msra.gmra.mrb[104].mxu1 %v10840_v39  ;;  %v12509_v39 = vld [vmem:[#allocation9 + $0x1180] sm:$0xff]  }
 0x35f   :  { %11581 = vmatpush3.bf16.msra.mxu0 %v12476_v19  ;;  %11595 = vmatpush3.bf16.msra.mxu1 %v12477_v51  ;;  %v12505_v19 = vld [vmem:[#allocation9 + $0x1118] sm:$0xff]   ;;  %v12506_v51 = vld [vmem:[#allocation9 + $0x1160] sm:$0xff]  }
 0x360   :  { %7865 = vmatprep.mubr.bf16.mxu1 %v10845_v33  ;;  %11582 = vmatprep.subr.bf16.mxu0 %v12478_v30  ;;  %v12507_v30 = vld [vmem:[#allocation9 + $0x11c0] sm:$0xff]   ;;  %v1399_v33 = vsel %vm1218_vm7, %v13945_v31, %v1309_v62 }
 0x361   :  { %v11280_v20 = vpop.f32.mrb[92].mxu0  ;;  %11596 = vmatprep.subr.bf16.mxu1 %v12479_v46  ;;  %v12508_v46 = vld [vmem:[#allocation9 + $0x1120] sm:$0xff]  }
 0x362   :  { %v11281_v10 = vpop.f32.mrb[93].mxu0  ;;  %v13948_v62 = vld [vmem:[#allocation44_spill] sm:$0xff] }
 0x363   :  { %v11282_v45 = vadd.f32 %v11281_v10, %v11280_v20  ;;  %v11283_v25 = vpop.f32.mrb[94].mxu0  ;;  %11583 = vmatpush3.bf16.msra.mxu0 %v12480_v11  ;;  %11597 = vmatpush3.bf16.msra.mxu1 %v12481_v36  ;;  %v12510_v11 = vld [vmem:[#allocation9 + $0x1168] sm:$0xff]   ;;  %vm1222_vm11 = vcmp.gt.f32.partialorder %v13948_v62, 0.0 }
 0x364   :  { %v11284_v29 = vpop.f32.mrb[95].mxu0  ;;  %11584 = vmatprep.subr.bf16.mxu0 %v12482_v47  ;;  %11598 = vmatprep.subr.bf16.mxu1 %v12483_v53  ;;  %v12511_v36 = vld [vmem:[#allocation9 + $0x11c8] sm:$0xff]   ;;  %v10849_v47 = vpack.c.bf16 %v1399_v33, %v1399_v33  ;;  %v12541_v33 = vld [vmem:[#allocation9 + $0x1280] sm:$0xff]  }
 0x365   :  { %v5222_v6 = vadd.f32 %v11282_v45, %v5182_v43  ;;  %v12503_v43 = vld [vmem:[#allocation9 + $0x1158] sm:$0xff]   ;;  %v12512_v53 = vld [vmem:[#allocation9 + $0x1128] sm:$0xff]   ;;  %v12517_v29 = vld [vmem:[#allocation9 + $0x1190] sm:$0xff]  }
 0x366   :  { %v12513_v20 = vld [vmem:[#allocation9 + $0x1188] sm:$0xff]  }
 0x367   :  { %11585 = vmatpush3.bf16.msra.mxu0 %v12484_v18  ;;  %11599 = vmatpush3.bf16.msra.mxu1 %v12485_v37  ;;  %v12515_v18 = vld [vmem:[#allocation9 + $0x11d0] sm:$0xff]  }
 0x368   :  { %11586 = vmatprep.subr.bf16.mxu0 %v12486_v23  ;;  %11600 = vmatprep.subr.bf16.mxu1 %v12487_v55  ;;  %v12516_v23 = vld [vmem:[#allocation9 + $0x1130] sm:$0xff]  }
 0x36b   :  { %11587 = vmatpush3.bf16.msra.mxu0 %v12488_v21  ;;  %11601 = vmatpush3.bf16.msra.mxu1 %v12489_v57  ;;  %v1311_v21 = vmul.f32 %v13111_v59, %v13946_v17  ;;  %v12520_v57 = vld [vmem:[#allocation9 + $0x1138] sm:$0xff]  }
 0x36c   :  { %11602 = vmatprep.subr.bf16.mxu1 %v12490_v44  ;;  %11616 = vmatprep.subr.bf16.mxu0 %v12491_v28  ;;  %v12521_v44 = vld [vmem:[#allocation9 + $0x1198] sm:$0xff]   ;;  %v12522_v28 = vld [vmem:[#allocation9 + $0x11e0] sm:$0xff]  }
 0x36d   :  { %v1401_v27 = vsel %vm1220_vm9, %v13946_v17, %v1311_v21  ;;  %v13949_v17 = vld [vmem:[#allocation33_spill] sm:$0xff]  ;;  %vm1236_vm9 = vcmp.gt.f32.partialorder %v13531_v32, 0.0 }
 0x36e   :  { %7826 = vmatmul.mubr.bf16.vlgmr.msra.gmra.mrb[120].mxu0 %v10842_v42  ;;  %v12526_v42 = vld [vmem:[#allocation9 + $0x11e8] sm:$0xff]   ;;  %v1310_v21 = vmul.f32 %v13111_v59, %v13949_v17  ;;  %vm1219_vm12 = vcmp.gt.f32.partialorder %v13949_v17, 0.0 }
 0x36f   :  { %11603 = vmatpush3.bf16.msra.mxu1 %v12492_v13  ;;  %11617 = vmatpush3.bf16.msra.mxu0 %v12493_v22  ;;  %v12524_v22 = vld [vmem:[#allocation9 + $0x11a0] sm:$0xff]  }
 0x370   :  { %7905 = vmatprep.mubr.bf16.mxu0 %v10847_v12  ;;  %11604 = vmatprep.subr.bf16.mxu1 %v12494_v41  ;;  %v12525_v41 = vld [vmem:[#allocation9 + $0x1200] sm:$0xff]   ;;  %v12527_v12 = vld [vmem:[#allocation9 + $0x1248] sm:$0xff]  }
 0x371   :  { %v11302_v14 = vpop.f32.mrb[80].mxu1  ;;  %11618 = vmatprep.subr.bf16.mxu0 %v12495_v24 }
 0x372   :  { %v11303_v38 = vpop.f32.mrb[81].mxu1 }
 0x373   :  { %v11304_v2 = vadd.f32 %v11303_v38, %v11302_v14  ;;  %v11305_v7 = vpop.f32.mrb[82].mxu1  ;;  %11605 = vmatpush3.bf16.msra.mxu1 %v12496_v56  ;;  %11619 = vmatpush3.bf16.msra.mxu0 %v12497_v54  ;;  %v10851_v56 = vpack.c.bf16 %v1401_v27, %v1401_v27  ;;  %v12528_v54 = vld [vmem:[#allocation9 + $0x11a8] sm:$0xff]   ;;  %v12556_v27 = vld [vmem:[#allocation9 + $0x12a0] sm:$0xff]  }
 0x374   :  { %v11306_v50 = vpop.f32.mrb[83].mxu1  ;;  %11606 = vmatprep.subr.bf16.mxu1 %v12498_v5  ;;  %11620 = vmatprep.subr.bf16.mxu0 %v12499_v58  ;;  %v12529_v5 = vld [vmem:[#allocation9 + $0x1208] sm:$0xff]   ;;  %v12531_v58 = vld [vmem:[#allocation9 + $0x1250] sm:$0xff]  }
 0x375   :  { %v5262_v15 = vadd.f32 %v11304_v2, %v5222_v6  ;;  %v1306_v6 = vmul.f32 %v13111_v59, %v13504_v35  ;;  %v12532_v2 = vld [vmem:[#allocation9 + $0x11b0] sm:$0xff]   ;;  %v12534_v50 = vld [vmem:[#allocation9 + $0x11f8] sm:$0xff]  }
 0x376   :  { %v12533_v7 = vld [vmem:[#allocation9 + $0x1210] sm:$0xff]  }
 0x377   :  { %v13758_v61 = vadd.f32 %v5262_v15, %v13713_v63  ;;  %11607 = vmatpush3.bf16.msra.mxu1 %v12500_v3  ;;  %11621 = vmatpush3.bf16.msra.mxu0 %v12501_v49  ;;  %v10844_v63 = vpack.c.bf16 %v1394_v9, %v1394_v9  ;;  %v1396_v13 = vsel %vm1215_vm8, %v13504_v35, %v1306_v6  ;;  %v12530_v35 = vld [vmem:[#allocation9 + $0x11f0] sm:$0xff]   ;;  %v12539_v9 = vld [vmem:[#allocation9 + $0x12c0] sm:$0xff]   ;;  %v12551_v6 = vld [vmem:[#allocation9 + $0x12d8] sm:$0xff]  }
 0x378   :  { %11608 = vmatprep.subr.bf16.mxu1 %v12502_v52  ;;  %11622 = vmatprep.subr.bf16.mxu0 %v12503_v43  ;;  %v10846_v24 = vpack.c.bf16 %v1396_v13, %v1396_v13  ;;  %v12535_v43 = vld [vmem:[#allocation9 + $0x1258] sm:$0xff]   ;;  %v1308_v15 = vmul.f32 %v13111_v59, %v13947_v60  ;;  %v12554_v13 = vld [vmem:[#allocation9 + $0x12e0] sm:$0xff]  }
 0x37b   :  { %11609 = vmatpush3.bf16.msra.mxu1 %v12504_v16  ;;  %11623 = vmatpush3.bf16.msra.mxu0 %v12505_v19  ;;  %v1313_v16 = vmul.f32 %v13111_v59, %v13948_v62  ;;  %v12536_v19 = vld [vmem:[#allocation9 + $0x11b8] sm:$0xff]  }
 0x37c   :  { %11624 = vmatprep.subr.bf16.mxu0 %v12506_v51  ;;  %11638 = vmatprep.subr.bf16.mxu1 %v12507_v30  ;;  %v12537_v51 = vld [vmem:[#allocation9 + $0x1218] sm:$0xff]   ;;  %v12538_v30 = vld [vmem:[#allocation9 + $0x1260] sm:$0xff]  }
 0x37e   :  { %7866 = vmatmul.mubr.bf16.vlgmr.msra.gmra.mrb[108].mxu1 %v10844_v63  ;;  %v1403_v63 = vsel %vm1222_vm11, %v13948_v62, %v1313_v16  ;;  %v1317_v16 = vmul.f32 %v13111_v59, %v13516_v34  ;;  %vm1235_vm11 = vcmp.gt.f32.partialorder %v13525_v0, 0.0 }
 0x37f   :  { %11625 = vmatpush3.bf16.msra.mxu0 %v12508_v46  ;;  %11639 = vmatpush3.bf16.msra.mxu1 %v12509_v39  ;;  %v1398_v46 = vsel %vm1217_vm10, %v13947_v60, %v1308_v15  ;;  %v12540_v39 = vld [vmem:[#allocation9 + $0x1220] sm:$0xff]   ;;  %v12567_v60 = vld [vmem:[#allocation9 + $0x1358] sm:$0xff]  }
 0x380   :  { %8627 = vmatprep.mubr.bf16.mxu1 %v10849_v47  ;;  %11626 = vmatprep.subr.bf16.mxu0 %v12510_v11  ;;  %v10848_v11 = vpack.c.bf16 %v1398_v46, %v1398_v46  ;;  %v12543_v47 = vld [vmem:[#allocation9 + $0x12c8] sm:$0xff]   ;;  %v13950_v15 = vld [vmem:[#allocation43_spill] sm:$0xff] }
 0x381   :  { %v11324_v10 = vpop.f32.mrb[96].mxu0  ;;  %11640 = vmatprep.subr.bf16.mxu1 %v12511_v36  ;;  %v12542_v36 = vld [vmem:[#allocation9 + $0x1268] sm:$0xff]   ;;  %vm1221_vm14 = vcmp.gt.f32.partialorder %v13950_v15, 0.0 }
 0x382   :  { %v11325_v37 = vpop.f32.mrb[97].mxu0 }
 0x383   :  { %v11326_v45 = vadd.f32 %v11325_v37, %v11324_v10  ;;  %v11327_v25 = vpop.f32.mrb[98].mxu0  ;;  %11627 = vmatpush3.bf16.msra.mxu0 %v12512_v53  ;;  %11641 = vmatpush3.bf16.msra.mxu1 %v12513_v20  ;;  %v10853_v53 = vpack.c.bf16 %v1403_v63, %v1403_v63  ;;  %v12544_v20 = vld [vmem:[#allocation9 + $0x1228] sm:$0xff]   ;;  %v12547_v10 = vld [vmem:[#allocation9 + $0x12d0] sm:$0xff]   ;;  %v1407_v63 = vsel %vm1226_vm15, %v13516_v34, %v1317_v16  ;;  %v12601_v16 = vld [vmem:[#allocation9 + $0x1418] sm:$0xff]  }
 0x384   :  { %v11328_v55 = vpop.f32.mrb[99].mxu0  ;;  %11628 = vmatprep.subr.bf16.mxu0 %v12514_v48  ;;  %11642 = vmatprep.subr.bf16.mxu1 %v12515_v18  ;;  %v12545_v48 = vld [vmem:[#allocation9 + $0x1288] sm:$0xff]   ;;  %v12546_v18 = vld [vmem:[#allocation9 + $0x1270] sm:$0xff]  }
 0x385   :  { %v12549_v55 = vld [vmem:[#allocation9 + $0x1290] sm:$0xff]  }
 0x387   :  { %11629 = vmatpush3.bf16.msra.mxu0 %v12516_v23  ;;  %11643 = vmatpush3.bf16.msra.mxu1 %v12517_v29  ;;  %v12548_v29 = vld [vmem:[#allocation9 + $0x1230] sm:$0xff]  }
 0x388   :  { %11630 = vmatprep.subr.bf16.mxu0 %v12518_v8  ;;  %11644 = vmatprep.subr.bf16.mxu1 %v12519_v26  ;;  %v12550_v26 = vld [vmem:[#allocation9 + $0x1278] sm:$0xff]  }
 0x38b   :  { %11631 = vmatpush3.bf16.msra.mxu0 %v12520_v57  ;;  %11645 = vmatpush3.bf16.msra.mxu1 %v12521_v44  ;;  %v1315_v44 = vmul.f32 %v13111_v59, %v13441_v1 }
 0x38c   :  { %11646 = vmatprep.subr.bf16.mxu1 %v12522_v28  ;;  %11660 = vmatprep.subr.bf16.mxu0 %v12523_v40  ;;  %v12552_v28 = vld [vmem:[#allocation9 + $0x1238] sm:$0xff]  }
 0x38d   :  { %v12553_v40 = vld [vmem:[#allocation9 + $0x1298] sm:$0xff]  }
 0x38e   :  { %7906 = vmatmul.mubr.bf16.vlgmr.msra.gmra.mrb[124].mxu0 %v10846_v24  ;;  %v12557_v24 = vld [vmem:[#allocation9 + $0x1300] sm:$0xff]  }
 0x38f   :  { %11647 = vmatpush3.bf16.msra.mxu1 %v12524_v22  ;;  %11661 = vmatpush3.bf16.msra.mxu0 %v12525_v41  ;;  %v12555_v22 = vld [vmem:[#allocation9 + $0x1340] sm:$0xff]   ;;  %v1400_v41 = vsel %vm1219_vm12, %v13949_v17, %v1310_v21  ;;  %v13951_v21 = vld [vmem:[#allocation29_spill] sm:$0xff]  ;;  %vm12838_vm12 = vmmov 0  }
 0x390   :  { %8667 = vmatprep.mubr.bf16.mxu0 %v10851_v56  ;;  %11648 = vmatprep.subr.bf16.mxu1 %v12526_v42  ;;  %v1405_v42 = vsel %vm1224_vm13, %v13441_v1, %v1315_v44  ;;  %v12558_v56 = vld [vmem:[#allocation9 + $0x12e8] sm:$0xff]   ;;  %vm1228_vm1 = vcmp.gt.f32.partialorder %v13951_v21, 0.0 }
 0x391   :  { %v11346_v14 = vpop.f32.mrb[84].mxu1  ;;  %11662 = vmatprep.subr.bf16.mxu0 %v12527_v12  ;;  %v10850_v12 = vpack.c.bf16 %v1400_v41, %v1400_v41 }
 0x392   :  { %v11347_v3 = vpop.f32.mrb[85].mxu1 }
 0x393   :  { %v11348_v38 = vadd.f32 %v11347_v3, %v11346_v14  ;;  %v11349_v49 = vpop.f32.mrb[86].mxu1  ;;  %11649 = vmatpush3.bf16.msra.mxu1 %v12528_v54  ;;  %11663 = vmatpush3.bf16.msra.mxu0 %v12529_v5  ;;  %v12559_v54 = vld [vmem:[#allocation9 + $0x1348] sm:$0xff]   ;;  %v10855_v5 = vpack.c.bf16 %v1405_v42, %v1405_v42  ;;  %v12562_v14 = vld [vmem:[#allocation9 + $0x12f0] sm:$0xff]  }
 0x394   :  { %v11350_v52 = vpop.f32.mrb[87].mxu1  ;;  %11650 = vmatprep.subr.bf16.mxu1 %v12530_v35  ;;  %11664 = vmatprep.subr.bf16.mxu0 %v12531_v58  ;;  %v12560_v35 = vld [vmem:[#allocation9 + $0x12a8] sm:$0xff]   ;;  %v12563_v3 = vld [vmem:[#allocation9 + $0x1350] sm:$0xff]  }
 0x395   :  { %v6024_v31 = vadd.f32 %v11348_v38, %v11326_v45  ;;  %v12561_v58 = vld [vmem:[#allocation9 + $0x1308] sm:$0xff]   ;;  %v12565_v52 = vld [vmem:[#allocation9 + $0x1310] sm:$0xff]  }
 0x397   :  { %11651 = vmatpush3.bf16.msra.mxu1 %v12532_v2  ;;  %11665 = vmatpush3.bf16.msra.mxu0 %v12533_v7  ;;  %v12564_v7 = vld [vmem:[#allocation9 + $0x12b0] sm:$0xff]  }
 0x398   :  { %11652 = vmatprep.subr.bf16.mxu1 %v12534_v50  ;;  %11666 = vmatprep.subr.bf16.mxu0 %v12535_v43  ;;  %v12566_v43 = vld [vmem:[#allocation9 + $0x12f8] sm:$0xff]  }
 0x39b   :  { %11653 = vmatpush3.bf16.msra.mxu1 %v12536_v19  ;;  %11667 = vmatpush3.bf16.msra.mxu0 %v12537_v51  ;;  %v12568_v19 = vld [vmem:[#allocation9 + $0x12b8] sm:$0xff]  }
 0x39c   :  { %11668 = vmatprep.subr.bf16.mxu0 %v12538_v30  ;;  %11682 = vmatprep.subr.bf16.mxu1 %v12539_v9  ;;  %v12569_v51 = vld [vmem:[#allocation9 + $0x1318] sm:$0xff]   ;;  %v12570_v30 = vld [vmem:[#allocation9 + $0x1360] sm:$0xff]  }
 0x39d   :  { %v12571_v9 = vld [vmem:[#allocation9 + $0x13c0] sm:$0xff]  }
 0x39e   :  { %8628 = vmatmul.mubr.bf16.vlgmr.msra.gmra.mrb[112].mxu1 %v10848_v11 }
 0x39f   :  { %11669 = vmatpush3.bf16.msra.mxu0 %v12540_v39  ;;  %11683 = vmatpush3.bf16.msra.mxu1 %v12541_v33  ;;  %v12572_v39 = vld [vmem:[#allocation9 + $0x1320] sm:$0xff]  }
 0x3a0   :  { %8707 = vmatprep.mubr.bf16.mxu1 %v10853_v53  ;;  %11670 = vmatprep.subr.bf16.mxu0 %v12542_v36  ;;  %v12573_v33 = vld [vmem:[#allocation9 + $0x1380] sm:$0xff]   ;;  %v12574_v36 = vld [vmem:[#allocation9 + $0x1368] sm:$0xff]   ;;  %v10857_v53 = vpack.c.bf16 %v1407_v63, %v1407_v63 }
 0x3a1   :  { %v11368_v37 = vpop.f32.mrb[100].mxu0  ;;  %11684 = vmatprep.subr.bf16.mxu1 %v12543_v47  ;;  %v12575_v47 = vld [vmem:[#allocation9 + $0x13c8] sm:$0xff]  }
 0x3a2   :  { %v11369_v45 = vpop.f32.mrb[101].mxu0  ;;  %v12606_v63 = vld [vmem:[#allocation9 + $0x1468] sm:$0xff]  }
 0x3a3   :  { %v11370_v25 = vadd.f32 %v11369_v45, %v11368_v37  ;;  %v11371_v23 = vpop.f32.mrb[102].mxu0  ;;  %11671 = vmatpush3.bf16.msra.mxu0 %v12544_v20  ;;  %11685 = vmatpush3.bf16.msra.mxu1 %v12545_v48  ;;  %v12576_v20 = vld [vmem:[#allocation9 + $0x1328] sm:$0xff]  }
 0x3a4   :  { %v11372_v8 = vpop.f32.mrb[103].mxu0  ;;  %11672 = vmatprep.subr.bf16.mxu0 %v12546_v18  ;;  %11686 = vmatprep.subr.bf16.mxu1 %v12547_v10  ;;  %v12577_v48 = vld [vmem:[#allocation9 + $0x1388] sm:$0xff]   ;;  %v12578_v18 = vld [vmem:[#allocation9 + $0x1370] sm:$0xff]  }
 0x3a5   :  { %v6064_v57 = vadd.f32 %v11370_v25, %v6024_v31  ;;  %v1312_v31 = vmul.f32 %v13111_v59, %v13950_v15  ;;  %v12579_v10 = vld [vmem:[#allocation9 + $0x13d0] sm:$0xff]   ;;  %v12582_v8 = vld [vmem:[#allocation9 + $0x1378] sm:$0xff]  }
 0x3a6   :  { %v12580_v23 = vld [vmem:[#allocation9 + $0x1330] sm:$0xff]  }
 0x3a7   :  { %11673 = vmatpush3.bf16.msra.mxu0 %v12548_v29  ;;  %11687 = vmatpush3.bf16.msra.mxu1 %v12549_v55  ;;  %v1402_v46 = vsel %vm1221_vm14, %v13950_v15, %v1312_v31  ;;  %v12581_v29 = vld [vmem:[#allocation9 + $0x1390] sm:$0xff]   ;;  %v13953_v15 = vld [vmem:[#allocation36_spill] sm:$0xff]  ;;  %vm9696_vm14 = vcmask 64512  }
 0x3a8   :  { %11674 = vmatprep.subr.bf16.mxu0 %v12550_v26  ;;  %11688 = vmatprep.subr.bf16.mxu1 %v12551_v6  ;;  %v10852_v11 = vpack.c.bf16 %v1402_v46, %v1402_v46  ;;  %v12583_v26 = vld [vmem:[#allocation9 + $0x13d8] sm:$0xff]   ;;  %v1314_v6 = vmul.f32 %v13111_v59, %v13438_v4  ;;  %v1321_v31 = vmul.f32 %v13111_v59, %v13953_v15  ;;  %vm1230_vm3 = vcmp.gt.f32.partialorder %v13953_v15, 0.0  ;;  %v12605_v46 = vld [vmem:[#allocation9 + $0x1480] sm:$0xff]  }
 0x3aa   :  { %v1404_v41 = vsel %vm1223_vm0, %v13438_v4, %v1314_v6  ;;  %v12594_v4 = vld [vmem:[#allocation9 + $0x13f0] sm:$0xff]  }
 0x3ab   :  { %11675 = vmatpush3.bf16.msra.mxu0 %v12552_v28  ;;  %11689 = vmatpush3.bf16.msra.mxu1 %v12553_v40  ;;  %v12584_v28 = vld [vmem:[#allocation9 + $0x1338] sm:$0xff]  }
 0x3ac   :  { %11690 = vmatprep.subr.bf16.mxu1 %v12554_v13  ;;  %11704 = vmatprep.subr.bf16.mxu0 %v12555_v22  ;;  %v12585_v40 = vld [vmem:[#allocation9 + $0x1398] sm:$0xff]   ;;  %v12586_v13 = vld [vmem:[#allocation9 + $0x13e0] sm:$0xff]  }
 0x3ad   :  { %v12587_v22 = vld [vmem:[#allocation9 + $0x1440] sm:$0xff]  }
 0x3ae   :  { %8668 = vmatmul.mubr.bf16.vlgmr.msra.gmra.mrb[128].mxu0 %v10850_v12  ;;  %v12590_v12 = vld [vmem:[#allocation9 + $0x13e8] sm:$0xff]  }
 0x3af   :  { %11691 = vmatpush3.bf16.msra.mxu1 %v12556_v27  ;;  %11705 = vmatpush3.bf16.msra.mxu0 %v12557_v24  ;;  %v12588_v27 = vld [vmem:[#allocation9 + $0x13a0] sm:$0xff]  }
 0x3b0   :  { %8747 = vmatprep.mubr.bf16.mxu0 %v10855_v5  ;;  %11692 = vmatprep.subr.bf16.mxu1 %v12558_v56  ;;  %v12589_v24 = vld [vmem:[#allocation9 + $0x1400] sm:$0xff]   ;;  %v12591_v56 = vld [vmem:[#allocation9 + $0x1448] sm:$0xff]  }
 0x3b1   :  { %v11390_v38 = vpop.f32.mrb[88].mxu1  ;;  %11706 = vmatprep.subr.bf16.mxu0 %v12559_v54  ;;  %v12592_v5 = vld [vmem:[#allocation9 + $0x13a8] sm:$0xff]  }
 0x3b2   :  { %v11391_v49 = vpop.f32.mrb[89].mxu1 }
 0x3b3   :  { %v11392_v2 = vadd.f32 %v11391_v49, %v11390_v38  ;;  %v11393_v1 = vpop.f32.mrb[90].mxu1  ;;  %11693 = vmatpush3.bf16.msra.mxu1 %v12560_v35  ;;  %11707 = vmatpush3.bf16.msra.mxu0 %v12561_v58  ;;  %v12593_v35 = vld [vmem:[#allocation9 + $0x1408] sm:$0xff]   ;;  %v12595_v58 = vld [vmem:[#allocation9 + $0x1450] sm:$0xff]  }
 0x3b4   :  { %v11394_v50 = vpop.f32.mrb[91].mxu1  ;;  %11694 = vmatprep.subr.bf16.mxu1 %v12562_v14  ;;  %11708 = vmatprep.subr.bf16.mxu0 %v12563_v3  ;;  %v12597_v1 = vld [vmem:[#allocation9 + $0x1410] sm:$0xff]  }
 0x3b5   :  { %v6104_v62 = vadd.f32 %v11392_v2, %v6064_v57  ;;  %v1319_v57 = vmul.f32 %v13111_v59, %v13951_v21  ;;  %v12596_v2 = vld [vmem:[#allocation9 + $0x13b0] sm:$0xff]   ;;  %v12599_v50 = vld [vmem:[#allocation9 + $0x1458] sm:$0xff]  }
 0x3b7   :  { %11695 = vmatpush3.bf16.msra.mxu1 %v12564_v7  ;;  %11709 = vmatpush3.bf16.msra.mxu0 %v12565_v52  ;;  %v1409_v42 = vsel %vm1228_vm1, %v13951_v21, %v1319_v57  ;;  %v12598_v52 = vld [vmem:[#allocation9 + $0x13f8] sm:$0xff]  }
 0x3b8   :  { %11696 = vmatprep.subr.bf16.mxu1 %v12566_v43  ;;  %11710 = vmatprep.subr.bf16.mxu0 %v12567_v60  ;;  %v10859_v54 = vpack.c.bf16 %v1409_v42, %v1409_v42  ;;  %v13952_v43 = vld [vmem:[#allocation50_spill] sm:$0xff] }
 0x3b9   :  { %v1316_v60 = vmul.f32 %v13111_v59, %v13952_v43  ;;  %vm1225_vm2 = vcmp.gt.f32.partialorder %v13952_v43, 0.0  ;;  %v12616_v57 = vld [vmem:[#allocation9 + $0x1438] sm:$0xff]  }
 0x3bb   :  { %11697 = vmatpush3.bf16.msra.mxu1 %v12568_v19  ;;  %11711 = vmatpush3.bf16.msra.mxu0 %v12569_v51  ;;  %v12602_v19 = vld [vmem:[#allocation9 + $0x1460] sm:$0xff]  }
 0x3bc   :  { %11712 = vmatprep.subr.bf16.mxu0 %v12570_v30  ;;  %11726 = vmatprep.subr.bf16.mxu1 %v12571_v9  ;;  %v12603_v51 = vld [vmem:[#allocation9 + $0x14c0] sm:$0xff]   ;;  %v1406_v30 = vsel %vm1225_vm2, %v13952_v43, %v1316_v60 }
 0x3bd   :  { %v12604_v9 = vld [vmem:[#allocation9 + $0x1420] sm:$0xff]  }
 0x3be   :  { %8708 = vmatmul.mubr.bf16.vlgmr.msra.gmra.mrb[116].mxu1 %v10852_v11  ;;  %v12607_v11 = vld [vmem:[#allocation9 + $0x14c8] sm:$0xff]  }
 0x3bf   :  { %11713 = vmatpush3.bf16.msra.mxu0 %v12572_v39  ;;  %11727 = vmatpush3.bf16.msra.mxu1 %v12573_v33  ;;  %v1411_v39 = vsel %vm1230_vm3, %v13953_v15, %v1321_v31  ;;  %v10856_v33 = vpack.c.bf16 %v1406_v30, %v1406_v30  ;;  %v13957_v15 = vld [vmem:[#allocation49_spill] sm:$0xff] }
 0x3c0   :  { %8787 = vmatprep.mubr.bf16.mxu1 %v10857_v53  ;;  %11714 = vmatprep.subr.bf16.mxu0 %v12574_v36  ;;  %v10861_v36 = vpack.c.bf16 %v1411_v39, %v1411_v39  ;;  %v12609_v53 = vld [vmem:[#allocation9 + $0x1488] sm:$0xff]   ;;  %v1325_v31 = vmul.f32 %v13111_v59, %v13957_v15  ;;  %vm1234_vm7 = vcmp.gt.f32.partialorder %v13957_v15, 0.0 }
 0x3c1   :  { %v11412_v37 = vpop.f32.mrb[104].mxu0  ;;  %11728 = vmatprep.subr.bf16.mxu1 %v12575_v47  ;;  %v12608_v47 = vld [vmem:[#allocation9 + $0x1428] sm:$0xff]  }
 0x3c2   :  { %v11413_v45 = vpop.f32.mrb[105].mxu0  ;;  %v1415_v39 = vsel %vm1234_vm7, %v13957_v15, %v1325_v31  ;;  %v12665_v15 = vld [vmem:[#allocation9 + $0x1618] sm:$0xff]   ;;  %v12666_v31 = vld [vmem:[#allocation9 + $0x1660] sm:$0xff]  }
 0x3c3   :  { %v11414_v25 = vadd.f32 %v11413_v45, %v11412_v37  ;;  %v11415_v34 = vpop.f32.mrb[106].mxu0  ;;  %11715 = vmatpush3.bf16.msra.mxu0 %v12576_v20  ;;  %11729 = vmatpush3.bf16.msra.mxu1 %v12577_v48  ;;  %v12610_v20 = vld [vmem:[#allocation9 + $0x1470] sm:$0xff]  }
 0x3c4   :  { %v11416_v55 = vpop.f32.mrb[107].mxu0  ;;  %11716 = vmatprep.subr.bf16.mxu0 %v12578_v18  ;;  %11730 = vmatprep.subr.bf16.mxu1 %v12579_v10  ;;  %v12611_v48 = vld [vmem:[#allocation9 + $0x14d0] sm:$0xff]  }
 0x3c5   :  { %v6144_v17 = vadd.f32 %v11414_v25, %v6104_v62  ;;  %v12600_v62 = vld [vmem:[#allocation9 + $0x13b8] sm:$0xff]   ;;  %v12612_v25 = vld [vmem:[#allocation9 + $0x1430] sm:$0xff]  }
 0x3c6   :  { %v12613_v34 = vld [vmem:[#allocation9 + $0x1490] sm:$0xff]   ;;  %v12615_v55 = vld [vmem:[#allocation9 + $0x14d8] sm:$0xff]  }
 0x3c7   :  { %v13801_v44 = vadd.f32 %v6144_v17, %v13758_v61  ;;  %11717 = vmatpush3.bf16.msra.mxu0 %v12580_v23  ;;  %11731 = vmatpush3.bf16.msra.mxu1 %v12581_v29  ;;  %v10854_v61 = vpack.c.bf16 %v1404_v41, %v1404_v41  ;;  %v12614_v29 = vld [vmem:[#allocation9 + $0x1478] sm:$0xff]   ;;  %v12620_v41 = vld [vmem:[#allocation9 + $0x14a0] sm:$0xff]  }
 0x3c8   :  { %11718 = vmatprep.subr.bf16.mxu0 %v12582_v8  ;;  %11732 = vmatprep.subr.bf16.mxu1 %v12583_v26  ;;  %v13954_v8 = vld [vmem:[#allocation27_spill] sm:$0xff]  ;;  %v13955_v17 = vld [vmem:[#allocation46_spill] sm:$0xff] }
 0x3c9   :  { %v1318_v26 = vmul.f32 %v13111_v59, %v13954_v8  ;;  %vm1227_vm4 = vcmp.gt.f32.partialorder %v13954_v8, 0.0  ;;  %v1323_v21 = vmul.f32 %v13111_v59, %v13955_v17  ;;  %vm1232_vm5 = vcmp.gt.f32.partialorder %v13955_v17, 0.0 }
 0x3cb   :  { %11719 = vmatpush3.bf16.msra.mxu0 %v12584_v28  ;;  %11733 = vmatpush3.bf16.msra.mxu1 %v12585_v40  ;;  %v12617_v28 = vld [vmem:[#allocation9 + $0x1498] sm:$0xff]   ;;  %v12618_v40 = vld [vmem:[#allocation9 + $0x14e0] sm:$0xff]  }
 0x3cc   :  { %11734 = vmatprep.subr.bf16.mxu1 %v12586_v13  ;;  %11748 = vmatprep.subr.bf16.mxu0 %v12587_v22  ;;  %v12619_v13 = vld [vmem:[#allocation9 + $0x1540] sm:$0xff]   ;;  %v1408_v22 = vsel %vm1227_vm4, %v13954_v8, %v1318_v26  ;;  %v13958_v8 = vld [vmem:[#allocation45_spill] sm:$0xff] }
 0x3cd   :  { %v10858_v42 = vpack.c.bf16 %v1408_v22, %v1408_v22  ;;  %v1322_v26 = vmul.f32 %v13111_v59, %v13958_v8  ;;  %vm1231_vm8 = vcmp.gt.f32.partialorder %v13958_v8, 0.0  ;;  %v12652_v22 = vld [vmem:[#allocation9 + $0x15a0] sm:$0xff]  }
 0x3ce   :  { %8748 = vmatmul.mubr.bf16.vlgmr.msra.gmra.mrb[132].mxu0 %v10854_v61  ;;  %v12622_v61 = vld [vmem:[#allocation9 + $0x14e8] sm:$0xff]  }
 0x3cf   :  { %11735 = vmatpush3.bf16.msra.mxu1 %v12588_v27  ;;  %11749 = vmatpush3.bf16.msra.mxu0 %v12589_v24  ;;  %v12621_v27 = vld [vmem:[#allocation9 + $0x1500] sm:$0xff]   ;;  %v1413_v24 = vsel %vm1232_vm5, %v13955_v17, %v1323_v21  ;;  %v1327_v17 = vmul.f32 %v13111_v59, %v13531_v32  ;;  %v12648_v21 = vld [vmem:[#allocation9 + $0x1538] sm:$0xff]  }
 0x3d0   :  { %9509 = vmatprep.mubr.bf16.mxu0 %v10859_v54  ;;  %11736 = vmatprep.subr.bf16.mxu1 %v12590_v12  ;;  %v12623_v12 = vld [vmem:[#allocation9 + $0x1548] sm:$0xff]  }
 0x3d1   :  { %v11434_v14 = vpop.f32.mrb[92].mxu1  ;;  %11750 = vmatprep.subr.bf16.mxu0 %v12591_v56  ;;  %v10863_v56 = vpack.c.bf16 %v1413_v24, %v1413_v24  ;;  %v12624_v54 = vld [vmem:[#allocation9 + $0x14a8] sm:$0xff]  }
 0x3d2   :  { %v11435_v3 = vpop.f32.mrb[93].mxu1 }
 0x3d3   :  { %v11436_v38 = vadd.f32 %v11435_v3, %v11434_v14  ;;  %v11437_v49 = vpop.f32.mrb[94].mxu1  ;;  %11737 = vmatpush3.bf16.msra.mxu1 %v12592_v5  ;;  %11751 = vmatpush3.bf16.msra.mxu0 %v12593_v35  ;;  %v12625_v5 = vld [vmem:[#allocation9 + $0x1508] sm:$0xff]   ;;  %v12626_v35 = vld [vmem:[#allocation9 + $0x14f0] sm:$0xff]  }
 0x3d4   :  { %v11438_v7 = vpop.f32.mrb[95].mxu1  ;;  %11738 = vmatprep.subr.bf16.mxu1 %v12594_v4  ;;  %11752 = vmatprep.subr.bf16.mxu0 %v12595_v58  ;;  %v12627_v4 = vld [vmem:[#allocation9 + $0x1550] sm:$0xff]  }
 0x3d5   :  { %v12628_v49 = vld [vmem:[#allocation9 + $0x14b0] sm:$0xff]   ;;  %v12630_v7 = vld [vmem:[#allocation9 + $0x14f8] sm:$0xff]  }
 0x3d7   :  { %11739 = vmatpush3.bf16.msra.mxu1 %v12596_v2  ;;  %11753 = vmatpush3.bf16.msra.mxu0 %v12597_v1  ;;  %v12629_v2 = vld [vmem:[#allocation9 + $0x1510] sm:$0xff]  }
 0x3d8   :  { %11740 = vmatprep.subr.bf16.mxu1 %v12598_v52  ;;  %11754 = vmatprep.subr.bf16.mxu0 %v12599_v50  ;;  %v12631_v52 = vld [vmem:[#allocation9 + $0x1558] sm:$0xff]  }
 0x3d9   :  { %v13956_v50 = vld [vmem:[#allocation35_spill] sm:$0xff] }
 0x3da   :  { %v1320_v43 = vmul.f32 %v13111_v59, %v13956_v50  ;;  %vm1229_vm6 = vcmp.gt.f32.partialorder %v13956_v50, 0.0 }
 0x3db   :  { %11741 = vmatpush3.bf16.msra.mxu1 %v12600_v62  ;;  %11755 = vmatpush3.bf16.msra.mxu0 %v12601_v16  ;;  %v12632_v62 = vld [vmem:[#allocation9 + $0x14b8] sm:$0xff]  }
 0x3dc   :  { %11756 = vmatprep.subr.bf16.mxu0 %v12602_v19  ;;  %11770 = vmatprep.subr.bf16.mxu1 %v12603_v51  ;;  %v12633_v16 = vld [vmem:[#allocation9 + $0x1518] sm:$0xff]   ;;  %v12634_v19 = vld [vmem:[#allocation9 + $0x1560] sm:$0xff]   ;;  %v1410_v30 = vsel %vm1229_vm6, %v13956_v50, %v1320_v43 }
 0x3dd   :  { %v12635_v51 = vld [vmem:[#allocation9 + $0x15c0] sm:$0xff]  }
 0x3de   :  { %8788 = vmatmul.mubr.bf16.vlgmr.msra.gmra.mrb[120].mxu1 %v10856_v33  ;;  %v10860_v33 = vpack.c.bf16 %v1410_v30, %v1410_v30  ;;  %v12669_v30 = vld [vmem:[#allocation9 + $0x1628] sm:$0xff]  }
 0x3df   :  { %11757 = vmatpush3.bf16.msra.mxu0 %v12604_v9  ;;  %11771 = vmatpush3.bf16.msra.mxu1 %v12605_v46  ;;  %v12636_v9 = vld [vmem:[#allocation9 + $0x1520] sm:$0xff]  }
 0x3e0   :  { %9549 = vmatprep.mubr.bf16.mxu1 %v10861_v36  ;;  %11758 = vmatprep.subr.bf16.mxu0 %v12606_v63  ;;  %v12637_v46 = vld [vmem:[#allocation9 + $0x1580] sm:$0xff]   ;;  %v12638_v63 = vld [vmem:[#allocation9 + $0x1568] sm:$0xff]   ;;  %v10865_v36 = vpack.c.bf16 %v1415_v39, %v1415_v39 }
 0x3e1   :  { %v11456_v18 = vpop.f32.mrb[108].mxu0  ;;  %11772 = vmatprep.subr.bf16.mxu1 %v12607_v11  ;;  %v12639_v11 = vld [vmem:[#allocation9 + $0x15c8] sm:$0xff]  }
 0x3e2   :  { %v11457_v10 = vpop.f32.mrb[109].mxu0 }
 0x3e3   :  { %v11458_v37 = vadd.f32 %v11457_v10, %v11456_v18  ;;  %v11459_v45 = vpop.f32.mrb[110].mxu0  ;;  %11759 = vmatpush3.bf16.msra.mxu0 %v12608_v47  ;;  %11773 = vmatpush3.bf16.msra.mxu1 %v12609_v53  ;;  %v12640_v47 = vld [vmem:[#allocation9 + $0x1528] sm:$0xff]  }
 0x3e4   :  { %v11460_v23 = vpop.f32.mrb[111].mxu0  ;;  %11760 = vmatprep.subr.bf16.mxu0 %v12610_v20  ;;  %11774 = vmatprep.subr.bf16.mxu1 %v12611_v48  ;;  %v12641_v53 = vld [vmem:[#allocation9 + $0x1588] sm:$0xff]   ;;  %v12642_v20 = vld [vmem:[#allocation9 + $0x1570] sm:$0xff]  }
 0x3e5   :  { %v6906_v6 = vadd.f32 %v11458_v37, %v11436_v38  ;;  %v12643_v48 = vld [vmem:[#allocation9 + $0x15d0] sm:$0xff]  }
 0x3e7   :  { %11761 = vmatpush3.bf16.msra.mxu0 %v12612_v25  ;;  %11775 = vmatpush3.bf16.msra.mxu1 %v12613_v34  ;;  %v12644_v25 = vld [vmem:[#allocation9 + $0x1530] sm:$0xff]  }
 0x3e8   :  { %11762 = vmatprep.subr.bf16.mxu0 %v12614_v29  ;;  %11776 = vmatprep.subr.bf16.mxu1 %v12615_v55  ;;  %v12645_v34 = vld [vmem:[#allocation9 + $0x1590] sm:$0xff]   ;;  %v12646_v29 = vld [vmem:[#allocation9 + $0x1578] sm:$0xff]  }
 0x3e9   :  { %v12647_v55 = vld [vmem:[#allocation9 + $0x15d8] sm:$0xff]  }
 0x3eb   :  { %11763 = vmatpush3.bf16.msra.mxu0 %v12616_v57  ;;  %11777 = vmatpush3.bf16.msra.mxu1 %v12617_v28  ;;  %v12649_v57 = vld [vmem:[#allocation9 + $0x1598] sm:$0xff]   ;;  %v12650_v28 = vld [vmem:[#allocation9 + $0x15e0] sm:$0xff]  }
 0x3ec   :  { %11778 = vmatprep.subr.bf16.mxu1 %v12618_v40  ;;  %11792 = vmatprep.subr.bf16.mxu0 %v12619_v13  ;;  %v12651_v40 = vld [vmem:[#allocation9 + $0x1640] sm:$0xff]   ;;  %v1412_v13 = vsel %vm1231_vm8, %v13958_v8, %v1322_v26 }
 0x3ed   :  { %v10862_v24 = vpack.c.bf16 %v1412_v13, %v1412_v13 }
 0x3ee   :  { %9510 = vmatmul.mubr.bf16.vlgmr.msra.gmra.mrb[136].mxu0 %v10858_v42  ;;  %v12654_v42 = vld [vmem:[#allocation9 + $0x15e8] sm:$0xff]  }
 0x3ef   :  { %11779 = vmatpush3.bf16.msra.mxu1 %v12620_v41  ;;  %11793 = vmatpush3.bf16.msra.mxu0 %v12621_v27  ;;  %v12653_v41 = vld [vmem:[#allocation9 + $0x1600] sm:$0xff]   ;;  %v1417_v27 = vsel %vm1236_vm9, %v13531_v32, %v1327_v17 }
 0x3f0   :  { %9589 = vmatprep.mubr.bf16.mxu0 %v10863_v56  ;;  %11780 = vmatprep.subr.bf16.mxu1 %v12622_v61  ;;  %v12655_v61 = vld [vmem:[#allocation9 + $0x1648] sm:$0xff]  }
 0x3f1   :  { %v11478_v58 = vpop.f32.mrb[96].mxu1  ;;  %11794 = vmatprep.subr.bf16.mxu0 %v12623_v12  ;;  %v10867_v12 = vpack.c.bf16 %v1417_v27, %v1417_v27  ;;  %v12656_v56 = vld [vmem:[#allocation9 + $0x15a8] sm:$0xff]  }
 0x3f2   :  { %v11479_v14 = vpop.f32.mrb[97].mxu1 }
 0x3f3   :  { %v11480_v3 = vadd.f32 %v11479_v14, %v11478_v58  ;;  %v11481_v38 = vpop.f32.mrb[98].mxu1  ;;  %11781 = vmatpush3.bf16.msra.mxu1 %v12624_v54  ;;  %11795 = vmatpush3.bf16.msra.mxu0 %v12625_v5  ;;  %v12657_v54 = vld [vmem:[#allocation9 + $0x1608] sm:$0xff]   ;;  %v12658_v5 = vld [vmem:[#allocation9 + $0x15f0] sm:$0xff]  }
 0x3f4   :  { %v11482_v1 = vpop.f32.mrb[99].mxu1  ;;  %11782 = vmatprep.subr.bf16.mxu1 %v12626_v35  ;;  %11796 = vmatprep.subr.bf16.mxu0 %v12627_v4  ;;  %v12659_v35 = vld [vmem:[#allocation9 + $0x1650] sm:$0xff]  }
 0x3f5   :  { %v6946_v60 = vadd.f32 %v11480_v3, %v6906_v6  ;;  %v12660_v3 = vld [vmem:[#allocation9 + $0x15b0] sm:$0xff]   ;;  %v12663_v1 = vld [vmem:[#allocation9 + $0x1658] sm:$0xff]  }
 0x3f6   :  { %v12661_v38 = vld [vmem:[#allocation9 + $0x1610] sm:$0xff]  }
 0x3f7   :  { %11783 = vmatpush3.bf16.msra.mxu1 %v12628_v49  ;;  %11797 = vmatpush3.bf16.msra.mxu0 %v12629_v2  ;;  %v12662_v2 = vld [vmem:[#allocation9 + $0x15f8] sm:$0xff]  }
 0x3f8   :  { %11784 = vmatprep.subr.bf16.mxu1 %v12630_v7  ;;  %11798 = vmatprep.subr.bf16.mxu0 %v12631_v52  ;;  %v13959_v7 = vld [vmem:[#allocation48_spill] sm:$0xff] }
 0x3f9   :  { %v1324_v52 = vmul.f32 %v13111_v59, %v13959_v7  ;;  %vm1233_vm10 = vcmp.gt.f32.partialorder %v13959_v7, 0.0 }
 0x3fb   :  { %11785 = vmatpush3.bf16.msra.mxu1 %v12632_v62  ;;  %11799 = vmatpush3.bf16.msra.mxu0 %v12633_v16  ;;  %v1414_v62 = vsel %vm1233_vm10, %v13959_v7, %v1324_v52  ;;  %v12667_v16 = vld [vmem:[#allocation9 + $0x1620] sm:$0xff]  }
 0x3fc   :  { %11800 = vmatprep.subr.bf16.mxu0 %v12634_v19  ;;  %11814 = vmatprep.subr.bf16.mxu1 %v12635_v51  ;;  %v10864_v19 = vpack.c.bf16 %v1414_v62, %v1414_v62  ;;  %v12668_v51 = vld [vmem:[#allocation9 + $0x1668] sm:$0xff]  }
 0x3fe   :  { %9550 = vmatmul.mubr.bf16.vlgmr.msra.gmra.mrb[124].mxu1 %v10860_v33 }
 0x3ff   :  { %11801 = vmatpush3.bf16.msra.mxu0 %v12636_v9  ;;  %11815 = vmatpush3.bf16.msra.mxu1 %v12637_v46 }
 0x400   :  { %9629 = vmatprep.mubr.bf16.mxu1 %v10865_v36  ;;  %11802 = vmatprep.subr.bf16.mxu0 %v12638_v63  ;;  %v12671_v63 = vld [vmem:[#allocation9 + $0x1630] sm:$0xff]   ;;  %v12672_v36 = vld [vmem:[#allocation9 + $0x1678] sm:$0xff]  }
 0x401   :  { %v11500_v18 = vpop.f32.mrb[112].mxu0  ;;  %11816 = vmatprep.subr.bf16.mxu1 %v12639_v11 }
 0x402   :  { %v11501_v10 = vpop.f32.mrb[113].mxu0 }
 0x403   :  { %v11502_v37 = vadd.f32 %v11501_v10, %v11500_v18  ;;  %v11503_v45 = vpop.f32.mrb[114].mxu0  ;;  %11803 = vmatpush3.bf16.msra.mxu0 %v12640_v47  ;;  %11817 = vmatpush3.bf16.msra.mxu1 %v12641_v53  ;;  %v1326_v47 = vmul.f32 %v13111_v59, %v13525_v0  ;;  %v12673_v53 = vld [vmem:[#allocation9 + $0x1638] sm:$0xff]  }
 0x404   :  { %v11504_v23 = vpop.f32.mrb[115].mxu0  ;;  %11804 = vmatprep.subr.bf16.mxu0 %v12642_v20  ;;  %11818 = vmatprep.subr.bf16.mxu1 %v12643_v48 }
 0x405   :  { %v6986_v6 = vadd.f32 %v11502_v37, %v6946_v60  ;;  %v12664_v60 = vld [vmem:[#allocation9 + $0x15b8] sm:$0xff]   ;;  %v1416_v20 = vsel %vm1235_vm11, %v13525_v0, %v1326_v47 }
 0x406   :  { %v10866_v48 = vpack.c.bf16 %v1416_v20, %v1416_v20 }
 0x407   :  { %11805 = vmatpush3.bf16.msra.mxu0 %v12644_v25  ;;  %11819 = vmatpush3.bf16.msra.mxu1 %v12645_v34 }
 0x408   :  { %11806 = vmatprep.subr.bf16.mxu0 %v12646_v29  ;;  %11820 = vmatprep.subr.bf16.mxu1 %v12647_v55 }
 0x40b   :  { %11807 = vmatpush3.bf16.msra.mxu0 %v12648_v21  ;;  %11821 = vmatpush3.bf16.msra.mxu1 %v12649_v57 }
 0x40c   :  { %11822 = vmatprep.subr.bf16.mxu1 %v12650_v28  ;;  %11836 = vmatprep.subr.bf16.mxu0 %v12651_v40 }
 0x40e   :  { %9590 = vmatmul.mubr.bf16.vlgmr.msra.gmra.mrb[140].mxu0 %v10862_v24 }
 0x40f   :  { %11823 = vmatpush3.bf16.msra.mxu1 %v12652_v22  ;;  %11837 = vmatpush3.bf16.msra.mxu0 %v12653_v41 }
 0x410   :  { %9669 = vmatprep.mubr.bf16.mxu0 %v10867_v12  ;;  %11824 = vmatprep.subr.bf16.mxu1 %v12654_v42 }
 0x411   :  { %v11522_v4 = vpop.f32.mrb[100].mxu1  ;;  %11838 = vmatprep.subr.bf16.mxu0 %v12655_v61 }
 0x412   :  { %v11523_v58 = vpop.f32.mrb[101].mxu1 }
 0x413   :  { %v11524_v14 = vadd.f32 %v11523_v58, %v11522_v4  ;;  %v11525_v32 = vpop.f32.mrb[102].mxu1  ;;  %11825 = vmatpush3.bf16.msra.mxu1 %v12656_v56  ;;  %11839 = vmatpush3.bf16.msra.mxu0 %v12657_v54 }
 0x414   :  { %v11526_v49 = vpop.f32.mrb[103].mxu1  ;;  %11826 = vmatprep.subr.bf16.mxu1 %v12658_v5  ;;  %11840 = vmatprep.subr.bf16.mxu0 %v12659_v35 }
 0x415   :  { %v7026_v50 = vadd.f32 %v11524_v14, %v6986_v6 }
 0x417   :  { %v7031_v43 = vadd.f32 %v7026_v50, %v13801_v44  ;;  %11827 = vmatpush3.bf16.msra.mxu1 %v12660_v3  ;;  %11841 = vmatpush3.bf16.msra.mxu0 %v12661_v38  ;;  %v12670_v44 = vld [vmem:[#allocation9 + $0x1670] sm:$0xff]   ;;  %v12837_v38 = vmov 0.0  }
 0x418   :  { %11828 = vmatprep.subr.bf16.mxu1 %v12662_v2  ;;  %11842 = vmatprep.subr.bf16.mxu0 %v12663_v1 }
 0x41b   :  { %11829 = vmatpush3.bf16.msra.mxu1 %v12664_v60  ;;  %11843 = vmatpush3.bf16.msra.mxu0 %v12665_v15 }
 0x41c   :  { %11844 = vmatprep.subr.bf16.mxu0 %v12666_v31  ;;  %11860 = vmatprep.subr.mxu1 %v12837_v38 }
 0x41e   :  { %9630 = vmatmul.mubr.bf16.vlgmr.msra.gmra.mrb[128].mxu1 %v10864_v19 }
 0x41f   :  { %11845 = vmatpush3.bf16.msra.mxu0 %v12667_v16  ;;  %11862 = vmatprep.mubr.msk.f32.mxu1 %vm12838_vm12, %v12837_v38 }
 0x420   :  { %11846 = vmatprep.subr.bf16.mxu0 %v12668_v51 }
 0x421   :  { %v11544_v9 = vpop.f32.mrb[116].mxu0 }
 0x422   :  { %v11545_v46 = vpop.f32.mrb[117].mxu0 }
 0x423   :  { %v11546_v39 = vadd.f32 %v11545_v46, %v11544_v9  ;;  %v11547_v33 = vpop.f32.mrb[118].mxu0  ;;  %11847 = vmatpush3.bf16.msra.mxu0 %v12669_v30 }
 0x424   :  { %v11548_v11 = vpop.f32.mrb[119].mxu0  ;;  %11848 = vmatprep.subr.bf16.mxu0 %v12670_v44 }
 0x427   :  { %11849 = vmatpush3.bf16.msra.mxu0 %v12671_v63 }
 0x428   :  { %11850 = vmatprep.subr.bf16.mxu0 %v12672_v36 }
 0x42b   :  { %11851 = vmatpush3.bf16.msra.mxu0 %v12673_v53 }
 0x42e   :  { %9670 = vmatmul.mubr.bf16.vlgmr.msra.gmra.mrb[144].mxu0 %v10866_v48 }
 0x431   :  { %v11566_v18 = vpop.f32.mrb[104].mxu1 }
 0x432   :  { %v11567_v10 = vpop.f32.mrb[105].mxu1 }
 0x433   :  { %v11568_v37 = vadd.f32 %v11567_v10, %v11566_v18  ;;  %v11569_v45 = vpop.f32.mrb[106].mxu1 }
 0x434   :  { %v11570_v25 = vpop.f32.mrb[107].mxu1 }
 0x435   :  { %v7788_v34 = vadd.f32 %v11568_v37, %v11546_v39 }
 0x441   :  { %v11588_v23 = vpop.f32.mrb[120].mxu0 }
 0x442   :  { %v11589_v29 = vpop.f32.mrb[121].mxu0 }
 0x443   :  { %v11590_v55 = vadd.f32 %v11589_v29, %v11588_v23  ;;  %v11591_v59 = vpop.f32.mrb[122].mxu0 }
 0x444   :  { %v11592_v8 = vpop.f32.mrb[123].mxu0 }
 0x445   :  { %v7828_v26 = vadd.f32 %v11590_v55, %v7788_v34 }
 0x451   :  { %v11610_v6 = vpop.f32.mrb[108].mxu1 }
 0x452   :  { %v11611_v17 = vpop.f32.mrb[109].mxu1 }
 0x453   :  { %v11612_v21 = vadd.f32 %v11611_v17, %v11610_v6  ;;  %v11613_v57 = vpop.f32.mrb[110].mxu1 }
 0x454   :  { %v11614_v0 = vpop.f32.mrb[111].mxu1 }
 0x455   :  { %v7868_v28 = vadd.f32 %v11612_v21, %v7828_v26 }
 0x461   :  { %v11632_v40 = vpop.f32.mrb[124].mxu0 }
 0x462   :  { %v11633_v13 = vpop.f32.mrb[125].mxu0 }
 0x463   :  { %v11634_v22 = vadd.f32 %v11633_v13, %v11632_v40  ;;  %v11635_v41 = vpop.f32.mrb[126].mxu0 }
 0x464   :  { %v11636_v27 = vpop.f32.mrb[127].mxu0  ;;  %v10729_v41 = vld [vmem:[#allocation10] ss:$0 sm:$0xff] }
 0x465   :  { %v7908_v24 = vadd.f32 %v11634_v22, %v7868_v28 }
 0x467   :  { %v7913_v42 = vadd.f32 %v7908_v24, %v7031_v43  ;;  %v10730_v24 = vld [vmem:[#allocation10 + $0x1] ss:$0 sm:$0xff] }
 0x471   :  { %v11654_v61 = vpop.f32.mrb[112].mxu1 }
 0x472   :  { %v11655_v12 = vpop.f32.mrb[113].mxu1 }
 0x473   :  { %v11656_v56 = vadd.f32 %v11655_v12, %v11654_v61  ;;  %v11657_v54 = vpop.f32.mrb[114].mxu1  ;;  %v9692_v61 = vstv %s10731_s30 }
 0x474   :  { %v11658_v5 = vpop.f32.mrb[115].mxu1  ;;  %v9695_v54 = vld [vmem:[#allocation12] sm:$0x3] }
 0x481   :  { %v11676_v35 = vpop.f32.mrb[128].mxu0 }
 0x482   :  { %v11677_v4 = vpop.f32.mrb[129].mxu0 }
 0x483   :  { %v11678_v58 = vadd.f32 %v11677_v4, %v11676_v35  ;;  %v11679_v14 = vpop.f32.mrb[130].mxu0 }
 0x484   :  { %v11680_v32 = vpop.f32.mrb[131].mxu0 }
 0x485   :  { %v8670_v3 = vadd.f32 %v11678_v58, %v11656_v56 }
 0x491   :  { %v11698_v49 = vpop.f32.mrb[116].mxu1 }
 0x492   :  { %v11699_v2 = vpop.f32.mrb[117].mxu1 }
 0x493   :  { %v11700_v1 = vadd.f32 %v11699_v2, %v11698_v49  ;;  %v11701_v7 = vpop.f32.mrb[118].mxu1 }
 0x494   :  { %v11702_v52 = vpop.f32.mrb[119].mxu1 }
 0x495   :  { %v8710_v50 = vadd.f32 %v11700_v1, %v8670_v3 }
 0x4a1   :  { %v11720_v43 = vpop.f32.mrb[132].mxu0 }
 0x4a2   :  { %v11721_v60 = vpop.f32.mrb[133].mxu0 }
 0x4a3   :  { %v11722_v15 = vadd.f32 %v11721_v60, %v11720_v43  ;;  %v11723_v31 = vpop.f32.mrb[134].mxu0 }
 0x4a4   :  { %v11724_v62 = vpop.f32.mrb[135].mxu0 }
 0x4a5   :  { %v8750_v16 = vadd.f32 %v11722_v15, %v8710_v50 }
 0x4b1   :  { %v11742_v19 = vpop.f32.mrb[120].mxu1 }
 0x4b2   :  { %v11743_v51 = vpop.f32.mrb[121].mxu1 }
 0x4b3   :  { %v11744_v30 = vadd.f32 %v11743_v51, %v11742_v19  ;;  %v11745_v44 = vpop.f32.mrb[122].mxu1 }
 0x4b4   :  { %v11746_v9 = vpop.f32.mrb[123].mxu1 }
 0x4b5   :  { %v8790_v46 = vadd.f32 %v11744_v30, %v8750_v16 }
 0x4b7   :  { %v8795_v39 = vadd.f32 %v8790_v46, %v7913_v42 }
 0x4c1   :  { %v11764_v33 = vpop.f32.mrb[136].mxu0 }
 0x4c2   :  { %v11765_v63 = vpop.f32.mrb[137].mxu0 }
 0x4c3   :  { %v11766_v11 = vadd.f32 %v11765_v63, %v11764_v33  ;;  %v11767_v36 = vpop.f32.mrb[138].mxu0 }
 0x4c4   :  { %v11768_v47 = vpop.f32.mrb[139].mxu0 }
 0x4d1   :  { %v11786_v53 = vpop.f32.mrb[124].mxu1 }
 0x4d2   :  { %v11787_v20 = vpop.f32.mrb[125].mxu1 }
 0x4d3   :  { %v11788_v48 = vadd.f32 %v11787_v20, %v11786_v53  ;;  %v11789_v18 = vpop.f32.mrb[126].mxu1 }
 0x4d4   :  { %v11790_v10 = vpop.f32.mrb[127].mxu1 }
 0x4d5   :  { %v9552_v37 = vadd.f32 %v11788_v48, %v11766_v11 }
 0x4e1   :  { %v11808_v45 = vpop.f32.mrb[140].mxu0 }
 0x4e2   :  { %v11809_v25 = vpop.f32.mrb[141].mxu0 }
 0x4e3   :  { %v11810_v34 = vadd.f32 %v11809_v25, %v11808_v45  ;;  %v11811_v23 = vpop.f32.mrb[142].mxu0 }
 0x4e4   :  { %v11812_v29 = vpop.f32.mrb[143].mxu0 }
 0x4e5   :  { %v9592_v55 = vadd.f32 %v11810_v34, %v9552_v37 }
 0x4f1   :  { %v11830_v59 = vpop.f32.mrb[128].mxu1 }
 0x4f2   :  { %v11831_v8 = vpop.f32.mrb[129].mxu1 }
 0x4f3   :  { %v11832_v26 = vadd.f32 %v11831_v8, %v11830_v59  ;;  %v11833_v6 = vpop.f32.mrb[130].mxu1 }
 0x4f4   :  { %v11834_v17 = vpop.f32.mrb[131].mxu1 }
 0x4f5   :  { %v9632_v21 = vadd.f32 %v11832_v26, %v9592_v55 }
 0x501   :  { %v11852_v57 = vpop.f32.mrb[144].mxu0 }
 0x502   :  { %v11853_v0 = vpop.f32.mrb[145].mxu0 }
 0x503   :  { %v11854_v28 = vadd.f32 %v11853_v0, %v11852_v57  ;;  %v11855_v40 = vpop.f32.mrb[146].mxu0 }
 0x504   :  { %v11856_v13 = vpop.f32.mrb[147].mxu0 }
 0x505   :  { %v9672_v22 = vadd.f32 %v11854_v28, %v9632_v21 }
 0x507   :  { %v9677_v27 = vadd.f32 %v9672_v22, %v8795_v39 }
 0x509   :  { %v9683_v42 = vmul.f32 %v10729_v41, %v9677_v27 }
 0x50b   :  { %v9689_v12 = vadd.f32 %v10730_v24, %v9683_v42 }
 0x50d   :  { %vm9691_vm13 = vcmp.gt.f32.partialorder %v9689_v12, 0.0  ;;  %v9693_v56 = vmul.f32 %v9692_v61, %v9689_v12 }
 0x50f   :  { %v9694_v5 = vsel %vm9691_vm13, %v9689_v12, %v9693_v56 }
 0x510   :  { %11861 = vmatpush3.msra.mxu1 %v9694_v5 }
 0x511   :  { %11863 = vmatmul.mubr.msk.f32.vlgmr.msra.gmra.mrb[132].mxu1 %vm9696_vm14, %v9695_v54 }
 0x5e4   :  { %v9766_v35 = vpop.f32.mrb[132].mxu1 }
 0x5e5   :  { %9770 = vst [vmem:[#allocation14] sm:$0x3] %v9766_v35  ;;  %v11864_v4 = vpop.f32.mrb[133].mxu1 }
 0x5e6   :  { %12805 = shalt.err (!%p12802_p5)
}
 0x5e7   :  { %s12806_s27 = scalar_lea.hbm %s13866_s7, 32 }
 0x5e8   :  { %p12807_p6 = scmp.ne.s32.totalorder %s13866_s7, %s12806_s27  ;;  %p12810_p7 = scmp.lt.u32.totalorder %s12806_s27, %s13866_s7 }
 0x5ea   :  { %p12812_p8 = pnand %p12810_p7, %p12807_p6 }
 0x5ec   :  { %12815 = shalt.err (!%p12812_p8)
}
 0x5ed   :  { %9780 = dma.vmem_to_hbm [thread:$0]  %s9778_s9, 32, %s13866_s7, [#allocation5]  }
 0x5ee   :  { %12824 = dma.done.wait [#allocation5], 32  }
 0x5ef   :  { %12825 = vsyncadd [#allocation5], 4294967264 }
 0x5f0   :  { %9784 = vsyncpa [#allocation4], 1 }
 0x5f1   :  { %9785 = vsyncpa [#allocation8], 1 }
 0x5f2   :  { %9786 = vsyncpa [#allocation11], 1 }
 0x5f3   :  { %9787 = vsyncpa [#allocation5], 1 }
 0x5f4   :  { %9788 = vsyncpa [#allocation6], 1 }

</bundles_post_ra>
